<compile_context>
chip_gen: v6e
topology: v6e:2x2x1
jax: 0.10.0
libtpu: 0.0.40
codegen_flags: <defaults>
</compile_context>

<pallas_src>
import functools
import math

import jax
import jax.numpy as jnp
from jax.experimental import pallas as pl
from jax.experimental.pallas import tpu as pltpu


# ----------------------------- helpers ---------------------------------------

LANE = 128
TM_MAX = 1024            # M tile cap; fits VMEM comfortably on v5e/v6e/v7x


def _round_up(x, m):
    return (x + m - 1) // m * m


@functools.lru_cache(maxsize=None)
def _n_tensorcores():
    """2 on v7x (two TensorCores per chip that a 'parallel' grid axis can be
    sharded across), 1 on v5e/v6e.  Detection failure falls back to 1, which is
    always correct (just no cross-core split)."""
    try:
        kind = jax.devices()[0].device_kind.lower()
    except Exception:
        return 1
    return 2 if ("v7" in kind or "7x" in kind) else 1


def _tiling(m, n_tc):
    """Pick an M tile and padded M so that TM | Mp and TM is a multiple of 8.
    On multi-TensorCore chips force at least 2 grid steps when M >= 16 so the
    'parallel' grid axis actually uses both cores."""
    m8 = _round_up(max(m, 8), 8)
    tm = min(TM_MAX, m8)
    if n_tc > 1 and m8 >= 16:
        tm = min(tm, max(16, _round_up(pl.cdiv(m8, 2), 16)))
    mp = _round_up(m8, tm)
    return tm, mp


def _sigmoid_f32(v):
    # tanh form rides the EUP slot and avoids exp(-v) overflow for very
    # negative pre-activations (perf-review correctness concern).
    return 0.5 * (jnp.tanh(0.5 * v) + 1.0)


def _parallel_params():
    return pltpu.CompilerParams(dimension_semantics=("parallel",))


# --------------------------- Pallas kernels ----------------------------------

def _conv_mm_kernel(x_ref, w_ref, b_ref, o_ref):
    """Fused (TM,K)bf16 @ (K,128)bf16 -> f32 acc, + folded-BN bias, SiLU."""
    acc = jnp.dot(x_ref[...], w_ref[...], preferred_element_type=jnp.float32)
    acc = acc + b_ref[...]
    o_ref[...] = (acc * _sigmoid_f32(acc)).astype(o_ref.dtype)


def _conv_detect_kernel(x_ref, w_ref, b_ref, dw_ref, db_ref, cc_ref,
                        act_ref, out_ref, *, stride, log2_w, w_mask, h_mask):
    """Backbone Conv (im2col matmul + folded bias + SiLU) fused with the Detect
    head epilogue for one level:
        raw = silu @ dW + db                 (1x1 conv, f32 accumulator)
        y   = sigmoid(raw)
        xy  = (2*y + grid - 0.5) * stride    (cols o%NO in {0,1})
        wh  = (2*y)**2 * anchor_grid         (cols o%NO in {2,3})
        conf= y                              (remaining cols)
    cc rows: 0 is_xy mask, 1 is_wh mask, 2 sel_x (x vs y grid), 3 4*anchor_grid.
    out_ref lanes [0,64): raw logits (valid lanes [0,NA*NO)),
    out_ref lanes [64,128): decoded preds rolled up by 64 lanes."""
    acc = jnp.dot(x_ref[...], w_ref[...], preferred_element_type=jnp.float32)
    acc = acc + b_ref[...]
    act = acc * _sigmoid_f32(acc)                        # SiLU
    act_bf = act.astype(act_ref.dtype)
    act_ref[...] = act_bf

    # Detect 1x1 conv on the SiLU tile already resident in vregs/VMEM.
    raw = jnp.dot(act_bf, dw_ref[...], preferred_element_type=jnp.float32)
    raw = raw + db_ref[...]
    y = _sigmoid_f32(raw)

    cc = cc_ref[...]
    is_xy = cc[0:1, :]
    is_wh = cc[1:2, :]
    sel_x = cc[2:3, :]
    wh4 = cc[3:4, :]                                      # 4 * anchor_grid

    # In-kernel grid offsets: rows are (batch, gy, gx) flattened; spatial dims
    # are static powers of two, so gx/gy are shift/and of the row index.  These
    # VPU ops ride in slack bundle slots; no aux HBM tensor is needed.
    rows = (pl.program_id(0) * y.shape[0]
            + jax.lax.broadcasted_iota(jnp.int32, y.shape, 0))
    gx = (rows & w_mask).astype(jnp.float32)
    gy = ((rows >> log2_w) & h_mask).astype(jnp.float32)
    g = jnp.where(sel_x > 0.5, gx, gy)

    dec = (is_xy * ((2.0 * y + g - 0.5) * stride)
           + is_wh * wh4 * (y * y)
           + (1.0 - is_xy - is_wh) * y)

    # Pack raw (lanes 0..63) and decoded (lanes 64..127) into a single
    # lane-dense f32 store (NA*NO = 27 <= 64): halves detect output DMA.
    lane = jax.lax.broadcasted_iota(jnp.int32, y.shape, 1)
    out_ref[...] = jnp.where(lane < 64, raw, pltpu.roll(dec, shift=64, axis=1))


# ------------------------- kernel call wrappers -------------------------------

def conv_silu(pat, w, b):
    """pat: (M, K) bf16 im2col patches (K unpadded). Returns (Mp, 128) bf16."""
    M, K = pat.shape
    Np = w.shape[1]
    TM, Mp = _tiling(M, _n_tensorcores())
    if Mp != M:
        pat = jnp.pad(pat, ((0, Mp - M), (0, 0)))
    return pl.pallas_call(
        _conv_mm_kernel,
        out_shape=jax.ShapeDtypeStruct((Mp, Np), jnp.bfloat16),
        grid=(Mp // TM,),
        in_specs=[
            pl.BlockSpec((TM, K), lambda i: (i, 0)),    # patches, tiled over M
            pl.BlockSpec((K, Np), lambda i: (0, 0)),    # folded weight, resident
            pl.BlockSpec((1, Np), lambda i: (0, 0)),    # folded bias, resident
        ],
        out_specs=pl.BlockSpec((TM, Np), lambda i: (i, 0)),
        compiler_params=_parallel_params(),
    )(pat, w, b)


def conv_silu_detect(pat, w, b, dw, db, cc, *, hdim, wdim, stride):
    """Fused backbone Conv + Detect head for one P level.
    Returns (act (Mp,128) bf16, packed raw/decoded (Mp,128) f32)."""
    assert wdim & (wdim - 1) == 0 and hdim & (hdim - 1) == 0, "pow2 spatial dims"
    M, K = pat.shape
    Np = w.shape[1]
    DNp = dw.shape[1]
    TM, Mp = _tiling(M, _n_tensorcores())
    if Mp != M:
        pat = jnp.pad(pat, ((0, Mp - M), (0, 0)))
    kern = functools.partial(
        _conv_detect_kernel, stride=float(stride),
        log2_w=int(round(math.log2(wdim))), w_mask=wdim - 1, h_mask=hdim - 1)
    return pl.pallas_call(
        kern,
        out_shape=(jax.ShapeDtypeStruct((Mp, Np), jnp.bfloat16),
                   jax.ShapeDtypeStruct((Mp, DNp), jnp.float32)),
        grid=(Mp // TM,),
        in_specs=[
            pl.BlockSpec((TM, K), lambda i: (i, 0)),    # patches, tiled over M
            pl.BlockSpec((K, Np), lambda i: (0, 0)),    # conv weight, resident
            pl.BlockSpec((1, Np), lambda i: (0, 0)),    # conv bias, resident
            pl.BlockSpec((Np, DNp), lambda i: (0, 0)),  # detect weight, resident
            pl.BlockSpec((1, DNp), lambda i: (0, 0)),   # detect bias, resident
            pl.BlockSpec((8, DNp), lambda i: (0, 0)),   # per-column decode consts
        ],
        out_specs=(pl.BlockSpec((TM, Np), lambda i: (i, 0)),
                   pl.BlockSpec((TM, DNp), lambda i: (i, 0))),
        compiler_params=_parallel_params(),
    )(pat, w, b, dw, db, cc)


# ---------------------- model layers (glue in plain JAX) ---------------------

def _im2col_k3s2(x):
    """3x3 / stride-2 / pad-1 patch extraction (NHWC, bf16); K left unpadded."""
    n, h, w, c1 = x.shape
    ho, wo = h // 2, w // 2
    xp = jnp.pad(x, ((0, 0), (1, 1), (1, 1), (0, 0)))
    pats = [xp[:, i:i + 2 * ho:2, j:j + 2 * wo:2, :]
            for i in range(3) for j in range(3)]
    pat = jnp.concatenate(pats, axis=-1).reshape(n * ho * wo, 9 * c1)
    return pat, (n, ho, wo)


# ------------------------- model definition ----------------------------------

ANCHORS = [[10, 13, 16, 30, 33, 23],
           [30, 61, 62, 45, 59, 119],
           [116, 90, 156, 198, 373, 326]]
NC = 4                      # number of classes
NA = 3                      # anchors per level
NO = NC + 5                 # outputs per anchor
BACKBONE = [(3, 8), (8, 16), (16, 16), (16, 32), (32, 32)]  # Conv(c1,c2,k=3,s=2)
DETECT_CH = [16, 32, 32]    # P3 / P4 / P5 channels
STRIDES = [8.0, 16.0, 32.0]
FIRST_DETECT_LAYER = len(BACKBONE) - len(DETECT_CH)          # layers 2,3,4
BN_EPS = 1e-3               # YOLOv5 initialize_weights() sets BN eps=1e-3


def init_params(key):
    params = {"backbone": [], "detect_w": [], "detect_b": [], "detect_cc": []}
    # Backbone Conv blocks: BN folded (as model.fuse() does), weights
    # pre-transposed to (9*c1, c2) with K UNPADDED, N padded to 128 lanes, bf16.
    for (c1, c2) in BACKBONE:
        key, k1, k2, k3, k4, k5 = jax.random.split(key, 6)
        w = jax.random.normal(k1, (c2, c1, 3, 3), jnp.float32) * 0.1
        gamma = 1.0 + 0.05 * jax.random.normal(k2, (c2,), jnp.float32)
        beta = 0.05 * jax.random.normal(k3, (c2,), jnp.float32)
        mean = 0.05 * jax.random.normal(k4, (c2,), jnp.float32)
        var = 1.0 + 0.05 * jax.random.uniform(k5, (c2,), jnp.float32)
        scale = gamma / jnp.sqrt(var + BN_EPS)
        w_fold = w * scale[:, None, None, None]
        b_fold = beta - mean * scale
        K = 9 * c1
        Np = _round_up(c2, LANE)
        w_mat = jnp.transpose(w_fold, (2, 3, 1, 0)).reshape(K, c2)  # (ki,kj,c1,c2)
        params["backbone"].append({
            "w": jnp.pad(w_mat, ((0, 0), (0, Np - c2))).astype(jnp.bfloat16),
            "b": jnp.pad(b_fold.reshape(1, c2), ((0, 0), (0, Np - c2))),
        })
    # Detect head: 1x1 convs with bias (+ Detect._initialize_biases()).
    for i, (ci, s) in enumerate(zip(DETECT_CH, STRIDES)):
        key, k1, k2 = jax.random.split(key, 3)
        w = jax.random.normal(k1, (NA * NO, ci), jnp.float32) * 0.05
        b = 0.01 * jax.random.normal(k2, (NA * NO,), jnp.float32).reshape(NA, NO)
        b = b.at[:, 4].add(math.log(8.0 / (640.0 / s) ** 2))
        b = b.at[:, 5:5 + NC].add(math.log(0.6 / (NC - 0.99999)))
        b = b.reshape(1, NA * NO)
        Kp = _round_up(ci, LANE)          # detect consumes the (.,128) SiLU tile
        Np = _round_up(NA * NO, LANE)
        params["detect_w"].append(
            jnp.pad(w.T, ((0, Kp - ci), (0, Np - NA * NO))).astype(jnp.bfloat16))
        params["detect_b"].append(jnp.pad(b, ((0, 0), (0, Np - NA * NO))))
        # Per-column decode constants for this level (anchor_grid = anchors*s,
        # with the (2*sig)^2 factor 4 pre-folded into row 3).
        cc = [[0.0] * Np for _ in range(8)]
        for j in range(NA * NO):
            a, o = divmod(j, NO)
            if o < 2:
                cc[0][j] = 1.0
                cc[2][j] = 1.0 if o == 0 else 0.0
            elif o < 4:
                cc[1][j] = 1.0
                cc[3][j] = 4.0 * float(ANCHORS[i][2 * a + (o - 2)])
        params["detect_cc"].append(jnp.asarray(cc, jnp.float32))
    # anchors buffer divided by stride, as in DetectionModel.__init__ (parity only)
    a = jnp.asarray(ANCHORS, jnp.float32).reshape(len(ANCHORS), NA, 2)
    params["anchors"] = a / jnp.asarray(STRIDES, jnp.float32)[:, None, None]
    return params


def detection_model_forward(params, x_nchw):
    """Inference path of DetectionModel.forward (training=False, export=False).
    Returns (concatenated decoded predictions, list of raw per-level maps)."""
    x = jnp.transpose(x_nchw, (0, 2, 3, 1)).astype(jnp.bfloat16)   # NCHW -> NHWC
    det_out, det_shape = [], []
    for li, ((c1, c2), p) in enumerate(zip(BACKBONE, params["backbone"])):
        pat, (n, ho, wo) = _im2col_k3s2(x)
        M = n * ho * wo
        if li < FIRST_DETECT_LAYER:
            out = conv_silu(pat, p["w"], p["b"])
        else:                                                      # P3 / P4 / P5
            lvl = li - FIRST_DETECT_LAYER
            out, packed = conv_silu_detect(
                pat, p["w"], p["b"],
                params["detect_w"][lvl], params["detect_b"][lvl],
                params["detect_cc"][lvl],
                hdim=ho, wdim=wo, stride=STRIDES[lvl])
            det_out.append(packed)
            det_shape.append((n, ho, wo))
        x = out[:M, :c2].reshape(n, ho, wo, c2)

    z, raw = [], []
    for packed, (n, h, w) in zip(det_out, det_shape):
        M = n * h * w
        # (bs*ny*nx, na*no) -> (bs, na, ny, nx, no)  (matches torch view/permute)
        r = packed[:M, :NA * NO].reshape(n, h, w, NA, NO).transpose(0, 3, 1, 2, 4)
        d = packed[:M, 64:64 + NA * NO].reshape(n, h, w, NA, NO).transpose(0, 3, 1, 2, 4)
        raw.append(r)
        z.append(d.reshape(n, NA * h * w, NO))

    return jnp.concatenate(z, axis=1), raw


# ------------------------------- main -----------------------------------------

if __name__ == "__main__":
    key = jax.random.PRNGKey(0)
    kp, kx = jax.random.split(key)
    params = init_params(kp)
    x = jax.random.normal(kx, (2, 3, 64, 64), jnp.float32)  # NCHW, like PyTorch

    fwd = jax.jit(detection_model_forward)
    pred, raw = fwd(params, x)
    jax.block_until_ready(pred)

    # sanity: (bs, na * (8*8 + 4*4 + 2*2), nc+5)
    assert pred.shape == (2, NA * (8 * 8 + 4 * 4 + 2 * 2), NO), pred.shape
    assert raw[0].shape == (2, NA, 8, 8, NO)
    assert raw[1].shape == (2, NA, 4, 4, NO)
    assert raw[2].shape == (2, NA, 2, 2, NO)
    assert bool(jnp.all(jnp.isfinite(pred)))
    print("KERNEL_OK")
</pallas_src>

<mosaic_0001>
module attributes {stable_mosaic.version = 11 : i64} {
  func.func @_conv_mm_kernel(%arg0: i32, %arg1: memref<1024x27xbf16, #tpu.memory_space<vmem>>, %arg2: memref<27x128xbf16, #tpu.memory_space<vmem>>, %arg3: memref<1x128xf32, #tpu.memory_space<vmem>>, %arg4: memref<1024x128xbf16, #tpu.memory_space<vmem>>) attributes {dimension_semantics = [#tpu.dimension_semantics<parallel>], iteration_bounds = array<i64: 2>, scalar_prefetch = 0 : i64, scratch_operands = 0 : i64, tpu.core_type = #tpu.core_type<tc>, window_params = [{transform_indices = @transform_0, window_bounds = array<i64: 1024, 27>}, {pipeline_mode = #tpu.pipeline_mode<synchronous>, transform_indices = @transform_1, window_bounds = array<i64: 27, 128>}, {pipeline_mode = #tpu.pipeline_mode<synchronous>, transform_indices = @transform_2, window_bounds = array<i64: 1, 128>}, {transform_indices = @transform_3, window_bounds = array<i64: 1024, 128>}]} {
    %c0 = arith.constant 0 : index
    %c0_0 = arith.constant 0 : index
    %0 = vector.load %arg1[%c0, %c0_0] : memref<1024x27xbf16, #tpu.memory_space<vmem>>, vector<1024x27xbf16>
    %c0_1 = arith.constant 0 : index
    %c0_2 = arith.constant 0 : index
    %1 = vector.load %arg2[%c0_1, %c0_2] : memref<27x128xbf16, #tpu.memory_space<vmem>>, vector<27x128xbf16>
    %cst = arith.constant dense<0.000000e+00> : vector<1024x128xf32>
    %2 = tpu.matmul %0, %1, %cst {dimension_numbers = #tpu.dot_dimension_numbers<[1], [0], [0], [1], [0, 0, 1, 1], [], []>} : vector<1024x27xbf16>, vector<27x128xbf16>, vector<1024x128xf32> -> vector<1024x128xf32>
    %c0_3 = arith.constant 0 : index
    %c0_4 = arith.constant 0 : index
    %3 = vector.load %arg3[%c0_3, %c0_4] : memref<1x128xf32, #tpu.memory_space<vmem>>, vector<1x128xf32>
    %4 = vector.broadcast %3 : vector<1x128xf32> to vector<1024x128xf32>
    %5 = arith.addf %2, %4 : vector<1024x128xf32>
    %cst_5 = arith.constant 5.000000e-01 : f32
    %6 = vector.broadcast %cst_5 : f32 to vector<1024x128xf32>
    %7 = arith.mulf %6, %5 : vector<1024x128xf32>
    %8 = math.tanh %7 : vector<1024x128xf32>
    %cst_6 = arith.constant 1.000000e+00 : f32
    %9 = vector.broadcast %cst_6 : f32 to vector<1024x128xf32>
    %10 = arith.addf %8, %9 : vector<1024x128xf32>
    %cst_7 = arith.constant 5.000000e-01 : f32
    %11 = vector.broadcast %cst_7 : f32 to vector<1024x128xf32>
    %12 = arith.mulf %11, %10 : vector<1024x128xf32>
    %13 = arith.mulf %5, %12 : vector<1024x128xf32>
    %14 = arith.truncf %13 : vector<1024x128xf32> to vector<1024x128xbf16>
    %c0_8 = arith.constant 0 : index
    %c0_9 = arith.constant 0 : index
    %15 = vector.load %arg4[%c0_8, %c0_9] : memref<1024x128xbf16, #tpu.memory_space<vmem>>, vector<1024x128xbf16>
    tpu.vector_store %arg4[%c0_8, %c0_9], %14 {strides = array<i32>} : memref<1024x128xbf16, #tpu.memory_space<vmem>>, vector<1024x128xbf16>,
    return
  }
  func.func @transform_0(%arg0: i32) -> (i32, i32) {
    %c0_i32 = arith.constant 0 : i32
    %c0_i32_0 = arith.constant 0 : i32
    return %arg0, %c0_i32 : i32, i32
  }
  func.func @transform_1(%arg0: i32) -> (i32, i32) {
    %c0_i32 = arith.constant 0 : i32
    %c0_i32_0 = arith.constant 0 : i32
    %c0_i32_1 = arith.constant 0 : i32
    return %c0_i32, %c0_i32_0 : i32, i32
  }
  func.func @transform_2(%arg0: i32) -> (i32, i32) {
    %c0_i32 = arith.constant 0 : i32
    %c0_i32_0 = arith.constant 0 : i32
    %c0_i32_1 = arith.constant 0 : i32
    return %c0_i32, %c0_i32_0 : i32, i32
  }
  func.func @transform_3(%arg0: i32) -> (i32, i32) {
    %c0_i32 = arith.constant 0 : i32
    %c0_i32_0 = arith.constant 0 : i32
    return %arg0, %c0_i32 : i32, i32
  }
}

module attributes {stable_mosaic.version = 11 : i64} {
  func.func @_conv_mm_kernel(%arg0: i32, %arg1: memref<512x72xbf16, #tpu.memory_space<vmem>>, %arg2: memref<72x128xbf16, #tpu.memory_space<vmem>>, %arg3: memref<1x128xf32, #tpu.memory_space<vmem>>, %arg4: memref<512x128xbf16, #tpu.memory_space<vmem>>) attributes {dimension_semantics = [#tpu.dimension_semantics<parallel>], iteration_bounds = array<i64: 1>, scalar_prefetch = 0 : i64, scratch_operands = 0 : i64, tpu.core_type = #tpu.core_type<tc>, window_params = [{transform_indices = @transform_0, window_bounds = array<i64: 512, 72>}, {pipeline_mode = #tpu.pipeline_mode<synchronous>, transform_indices = @transform_1, window_bounds = array<i64: 72, 128>}, {pipeline_mode = #tpu.pipeline_mode<synchronous>, transform_indices = @transform_2, window_bounds = array<i64: 1, 128>}, {transform_indices = @transform_3, window_bounds = array<i64: 512, 128>}]} {
    %c0 = arith.constant 0 : index
    %c0_0 = arith.constant 0 : index
    %0 = vector.load %arg1[%c0, %c0_0] : memref<512x72xbf16, #tpu.memory_space<vmem>>, vector<512x72xbf16>
    %c0_1 = arith.constant 0 : index
    %c0_2 = arith.constant 0 : index
    %1 = vector.load %arg2[%c0_1, %c0_2] : memref<72x128xbf16, #tpu.memory_space<vmem>>, vector<72x128xbf16>
    %cst = arith.constant dense<0.000000e+00> : vector<512x128xf32>
    %2 = tpu.matmul %0, %1, %cst {dimension_numbers = #tpu.dot_dimension_numbers<[1], [0], [0], [1], [0, 0, 1, 1], [], []>} : vector<512x72xbf16>, vector<72x128xbf16>, vector<512x128xf32> -> vector<512x128xf32>
    %c0_3 = arith.constant 0 : index
    %c0_4 = arith.constant 0 : index
    %3 = vector.load %arg3[%c0_3, %c0_4] : memref<1x128xf32, #tpu.memory_space<vmem>>, vector<1x128xf32>
    %4 = vector.broadcast %3 : vector<1x128xf32> to vector<512x128xf32>
    %5 = arith.addf %2, %4 : vector<512x128xf32>
    %cst_5 = arith.constant 5.000000e-01 : f32
    %6 = vector.broadcast %cst_5 : f32 to vector<512x128xf32>
    %7 = arith.mulf %6, %5 : vector<512x128xf32>
    %8 = math.tanh %7 : vector<512x128xf32>
    %cst_6 = arith.constant 1.000000e+00 : f32
    %9 = vector.broadcast %cst_6 : f32 to vector<512x128xf32>
    %10 = arith.addf %8, %9 : vector<512x128xf32>
    %cst_7 = arith.constant 5.000000e-01 : f32
    %11 = vector.broadcast %cst_7 : f32 to vector<512x128xf32>
    %12 = arith.mulf %11, %10 : vector<512x128xf32>
    %13 = arith.mulf %5, %12 : vector<512x128xf32>
    %14 = arith.truncf %13 : vector<512x128xf32> to vector<512x128xbf16>
    %c0_8 = arith.constant 0 : index
    %c0_9 = arith.constant 0 : index
    %15 = vector.load %arg4[%c0_8, %c0_9] : memref<512x128xbf16, #tpu.memory_space<vmem>>, vector<512x128xbf16>
    tpu.vector_store %arg4[%c0_8, %c0_9], %14 {strides = array<i32>} : memref<512x128xbf16, #tpu.memory_space<vmem>>, vector<512x128xbf16>,
    return
  }
  func.func @transform_0(%arg0: i32) -> (i32, i32) {
    %c0_i32 = arith.constant 0 : i32
    %c0_i32_0 = arith.constant 0 : i32
    return %arg0, %c0_i32 : i32, i32
  }
  func.func @transform_1(%arg0: i32) -> (i32, i32) {
    %c0_i32 = arith.constant 0 : i32
    %c0_i32_0 = arith.constant 0 : i32
    %c0_i32_1 = arith.constant 0 : i32
    return %c0_i32, %c0_i32_0 : i32, i32
  }
  func.func @transform_2(%arg0: i32) -> (i32, i32) {
    %c0_i32 = arith.constant 0 : i32
    %c0_i32_0 = arith.constant 0 : i32
    %c0_i32_1 = arith.constant 0 : i32
    return %c0_i32, %c0_i32_0 : i32, i32
  }
  func.func @transform_3(%arg0: i32) -> (i32, i32) {
    %c0_i32 = arith.constant 0 : i32
    %c0_i32_0 = arith.constant 0 : i32
    return %arg0, %c0_i32 : i32, i32
  }
}

module attributes {stable_mosaic.version = 11 : i64} {
  func.func @_conv_detect_kernel(%arg0: i32, %arg1: memref<128x144xbf16, #tpu.memory_space<vmem>>, %arg2: memref<144x128xbf16, #tpu.memory_space<vmem>>, %arg3: memref<1x128xf32, #tpu.memory_space<vmem>>, %arg4: memref<128x128xbf16, #tpu.memory_space<vmem>>, %arg5: memref<1x128xf32, #tpu.memory_space<vmem>>, %arg6: memref<8x128xf32, #tpu.memory_space<vmem>>, %arg7: memref<128x128xbf16, #tpu.memory_space<vmem>>, %arg8: memref<128x128xf32, #tpu.memory_space<vmem>>) attributes {dimension_semantics = [#tpu.dimension_semantics<parallel>], iteration_bounds = array<i64: 1>, scalar_prefetch = 0 : i64, scratch_operands = 0 : i64, tpu.core_type = #tpu.core_type<tc>, window_params = [{transform_indices = @transform_0, window_bounds = array<i64: 128, 144>}, {pipeline_mode = #tpu.pipeline_mode<synchronous>, transform_indices = @transform_1, window_bounds = array<i64: 144, 128>}, {pipeline_mode = #tpu.pipeline_mode<synchronous>, transform_indices = @transform_2, window_bounds = array<i64: 1, 128>}, {pipeline_mode = #tpu.pipeline_mode<synchronous>, transform_indices = @transform_3, window_bounds = array<i64: 128, 128>}, {pipeline_mode = #tpu.pipeline_mode<synchronous>, transform_indices = @transform_4, window_bounds = array<i64: 1, 128>}, {pipeline_mode = #tpu.pipeline_mode<synchronous>, transform_indices = @transform_5, window_bounds = array<i64: 8, 128>}, {transform_indices = @transform_6, window_bounds = array<i64: 128, 128>}, {transform_indices = @transform_7, window_bounds = array<i64: 128, 128>}]} {
    %c0 = arith.constant 0 : index
    %c0_0 = arith.constant 0 : index
    %0 = vector.load %arg1[%c0, %c0_0] : memref<128x144xbf16, #tpu.memory_space<vmem>>, vector<128x144xbf16>
    %c0_1 = arith.constant 0 : index
    %c0_2 = arith.constant 0 : index
    %1 = vector.load %arg2[%c0_1, %c0_2] : memref<144x128xbf16, #tpu.memory_space<vmem>>, vector<144x128xbf16>
    %cst = arith.constant dense<0.000000e+00> : vector<128x128xf32>
    %2 = tpu.matmul %0, %1, %cst {dimension_numbers = #tpu.dot_dimension_numbers<[1], [0], [0], [1], [0, 0, 1, 1], [], []>} : vector<128x144xbf16>, vector<144x128xbf16>, vector<128x128xf32> -> vector<128x128xf32>
    %c0_3 = arith.constant 0 : index
    %c0_4 = arith.constant 0 : index
    %3 = vector.load %arg3[%c0_3, %c0_4] : memref<1x128xf32, #tpu.memory_space<vmem>>, vector<1x128xf32>
    %4 = vector.broadcast %3 : vector<1x128xf32> to vector<128x128xf32>
    %5 = arith.addf %2, %4 : vector<128x128xf32>
    %cst_5 = arith.constant 5.000000e-01 : f32
    %6 = vector.broadcast %cst_5 : f32 to vector<128x128xf32>
    %7 = arith.mulf %6, %5 : vector<128x128xf32>
    %8 = math.tanh %7 : vector<128x128xf32>
    %cst_6 = arith.constant 1.000000e+00 : f32
    %9 = vector.broadcast %cst_6 : f32 to vector<128x128xf32>
    %10 = arith.addf %8, %9 : vector<128x128xf32>
    %cst_7 = arith.constant 5.000000e-01 : f32
    %11 = vector.broadcast %cst_7 : f32 to vector<128x128xf32>
    %12 = arith.mulf %11, %10 : vector<128x128xf32>
    %13 = arith.mulf %5, %12 : vector<128x128xf32>
    %14 = arith.truncf %13 : vector<128x128xf32> to vector<128x128xbf16>
    %c0_8 = arith.constant 0 : index
    %c0_9 = arith.constant 0 : index
    %15 = vector.load %arg7[%c0_8, %c0_9] : memref<128x128xbf16, #tpu.memory_space<vmem>>, vector<128x128xbf16>
    tpu.vector_store %arg7[%c0_8, %c0_9], %14 {strides = array<i32>} : memref<128x128xbf16, #tpu.memory_space<vmem>>, vector<128x128xbf16>,
    %c0_10 = arith.constant 0 : index
    %c0_11 = arith.constant 0 : index
    %16 = vector.load %arg4[%c0_10, %c0_11] : memref<128x128xbf16, #tpu.memory_space<vmem>>, vector<128x128xbf16>
    %cst_12 = arith.constant dense<0.000000e+00> : vector<128x128xf32>
    %17 = tpu.matmul %14, %16, %cst_12 {dimension_numbers = #tpu.dot_dimension_numbers<[1], [0], [0], [1], [0, 0, 1, 1], [], []>} : vector<128x128xbf16>, vector<128x128xbf16>, vector<128x128xf32> -> vector<128x128xf32>
    %c0_13 = arith.constant 0 : index
    %c0_14 = arith.constant 0 : index
    %18 = vector.load %arg5[%c0_13, %c0_14] : memref<1x128xf32, #tpu.memory_space<vmem>>, vector<1x128xf32>
    %19 = vector.broadcast %18 : vector<1x128xf32> to vector<128x128xf32>
    %20 = arith.addf %17, %19 : vector<128x128xf32>
    %cst_15 = arith.constant 5.000000e-01 : f32
    %21 = vector.broadcast %cst_15 : f32 to vector<128x128xf32>
    %22 = arith.mulf %21, %20 : vector<128x128xf32>
    %23 = math.tanh %22 : vector<128x128xf32>
    %cst_16 = arith.constant 1.000000e+00 : f32
    %24 = vector.broadcast %cst_16 : f32 to vector<128x128xf32>
    %25 = arith.addf %23, %24 : vector<128x128xf32>
    %cst_17 = arith.constant 5.000000e-01 : f32
    %26 = vector.broadcast %cst_17 : f32 to vector<128x128xf32>
    %27 = arith.mulf %26, %25 : vector<128x128xf32>
    %c0_18 = arith.constant 0 : index
    %c0_19 = arith.constant 0 : index
    %28 = vector.load %arg6[%c0_18, %c0_19] : memref<8x128xf32, #tpu.memory_space<vmem>>, vector<8x128xf32>
    %29 = vector.extract_strided_slice %28 {offsets = [0, 0], sizes = [1, 128], strides = [1, 1]} : vector<8x128xf32> to vector<1x128xf32>
    %30 = vector.extract_strided_slice %28 {offsets = [1, 0], sizes = [1, 128], strides = [1, 1]} : vector<8x128xf32> to vector<1x128xf32>
    %31 = vector.extract_strided_slice %28 {offsets = [2, 0], sizes = [1, 128], strides = [1, 1]} : vector<8x128xf32> to vector<1x128xf32>
    %32 = vector.extract_strided_slice %28 {offsets = [3, 0], sizes = [1, 128], strides = [1, 1]} : vector<8x128xf32> to vector<1x128xf32>
    %c128_i32 = arith.constant 128 : i32
    %33 = arith.muli %arg0, %c128_i32 : i32
    %34 = tpu.iota {dimensions = array<i32: 0>} : vector<128x128xi32>
    %35 = vector.broadcast %33 : i32 to vector<128x128xi32>
    %36 = arith.addi %35, %34 : vector<128x128xi32>
    %c7_i32 = arith.constant 7 : i32
    %37 = vector.broadcast %c7_i32 : i32 to vector<128x128xi32>
    %38 = arith.andi %36, %37 : vector<128x128xi32>
    %39 = arith.sitofp %38 : vector<128x128xi32> to vector<128x128xf32>
    %c3_i32 = arith.constant 3 : i32
    %40 = vector.broadcast %c3_i32 : i32 to vector<128x128xi32>
    %41 = arith.shrsi %36, %40 : vector<128x128xi32>
    %c7_i32_20 = arith.constant 7 : i32
    %42 = vector.broadcast %c7_i32_20 : i32 to vector<128x128xi32>
    %43 = arith.andi %41, %42 : vector<128x128xi32>
    %44 = arith.sitofp %43 : vector<128x128xi32> to vector<128x128xf32>
    %cst_21 = arith.constant 5.000000e-01 : f32
    %45 = vector.broadcast %cst_21 : f32 to vector<1x128xf32>
    %46 = arith.cmpf ogt, %31, %45 : vector<1x128xf32>
    %47 = vector.shape_cast %46 : vector<1x128xi1> to vector<1x128xi1>
    %48 = vector.broadcast %47 : vector<1x128xi1> to vector<128x128xi1>
    %49 = arith.select %48, %39, %44 : vector<128x128xi1>, vector<128x128xf32>
    %cst_22 = arith.constant 2.000000e+00 : f32
    %50 = vector.broadcast %cst_22 : f32 to vector<128x128xf32>
    %51 = arith.mulf %50, %27 : vector<128x128xf32>
    %52 = arith.addf %51, %49 : vector<128x128xf32>
    %cst_23 = arith.constant 5.000000e-01 : f32
    %53 = vector.broadcast %cst_23 : f32 to vector<128x128xf32>
    %54 = arith.subf %52, %53 : vector<128x128xf32>
    %cst_24 = arith.constant 8.000000e+00 : f32
    %55 = vector.broadcast %cst_24 : f32 to vector<128x128xf32>
    %56 = arith.mulf %54, %55 : vector<128x128xf32>
    %57 = vector.broadcast %29 : vector<1x128xf32> to vector<128x128xf32>
    %58 = arith.mulf %57, %56 : vector<128x128xf32>
    %59 = arith.mulf %30, %32 : vector<1x128xf32>
    %60 = arith.mulf %27, %27 : vector<128x128xf32>
    %61 = vector.broadcast %59 : vector<1x128xf32> to vector<128x128xf32>
    %62 = arith.mulf %61, %60 : vector<128x128xf32>
    %63 = arith.addf %58, %62 : vector<128x128xf32>
    %cst_25 = arith.constant 1.000000e+00 : f32
    %64 = vector.broadcast %cst_25 : f32 to vector<1x128xf32>
    %65 = arith.subf %64, %29 : vector<1x128xf32>
    %66 = arith.subf %65, %30 : vector<1x128xf32>
    %67 = vector.broadcast %66 : vector<1x128xf32> to vector<128x128xf32>
    %68 = arith.mulf %67, %27 : vector<128x128xf32>
    %69 = arith.addf %63, %68 : vector<128x128xf32>
    %70 = tpu.iota {dimensions = array<i32: 1>} : vector<128x128xi32>
    %c64_i32 = arith.constant 64 : i32
    %71 = vector.broadcast %c64_i32 : i32 to vector<128x128xi32>
    %72 = arith.cmpi slt, %70, %71 : vector<128x128xi32>
    %c64_i32_26 = arith.constant 64 : i32
    %73 = tpu.dynamic_rotate %69 by %c64_i32_26 dim 1 : vector<128x128xf32>, i32 -> vector<128x128xf32>
    %74 = arith.select %72, %20, %73 : vector<128x128xi1>, vector<128x128xf32>
    %c0_27 = arith.constant 0 : index
    %c0_28 = arith.constant 0 : index
    %75 = vector.load %arg8[%c0_27, %c0_28] : memref<128x128xf32, #tpu.memory_space<vmem>>, vector<128x128xf32>
    tpu.vector_store %arg8[%c0_27, %c0_28], %74 {strides = array<i32>} : memref<128x128xf32, #tpu.memory_space<vmem>>, vector<128x128xf32>,
    return
  }
  func.func @transform_0(%arg0: i32) -> (i32, i32) {
    %c0_i32 = arith.constant 0 : i32
    %c0_i32_0 = arith.constant 0 : i32
    return %arg0, %c0_i32 : i32, i32
  }
  func.func @transform_1(%arg0: i32) -> (i32, i32) {
    %c0_i32 = arith.constant 0 : i32
    %c0_i32_0 = arith.constant 0 : i32
    %c0_i32_1 = arith.constant 0 : i32
    return %c0_i32, %c0_i32_0 : i32, i32
  }
  func.func @transform_2(%arg0: i32) -> (i32, i32) {
    %c0_i32 = arith.constant 0 : i32
    %c0_i32_0 = arith.constant 0 : i32
    %c0_i32_1 = arith.constant 0 : i32
    return %c0_i32, %c0_i32_0 : i32, i32
  }
  func.func @transform_3(%arg0: i32) -> (i32, i32) {
    %c0_i32 = arith.constant 0 : i32
    %c0_i32_0 = arith.constant 0 : i32
    %c0_i32_1 = arith.constant 0 : i32
    return %c0_i32, %c0_i32_0 : i32, i32
  }
  func.func @transform_4(%arg0: i32) -> (i32, i32) {
    %c0_i32 = arith.constant 0 : i32
    %c0_i32_0 = arith.constant 0 : i32
    %c0_i32_1 = arith.constant 0 : i32
    return %c0_i32, %c0_i32_0 : i32, i32
  }
  func.func @transform_5(%arg0: i32) -> (i32, i32) {
    %c0_i32 = arith.constant 0 : i32
    %c0_i32_0 = arith.constant 0 : i32
    %c0_i32_1 = arith.constant 0 : i32
    return %c0_i32, %c0_i32_0 : i32, i32
  }
  func.func @transform_6(%arg0: i32) -> (i32, i32) {
    %c0_i32 = arith.constant 0 : i32
    %c0_i32_0 = arith.constant 0 : i32
    return %arg0, %c0_i32 : i32, i32
  }
  func.func @transform_7(%arg0: i32) -> (i32, i32) {
    %c0_i32 = arith.constant 0 : i32
    %c0_i32_0 = arith.constant 0 : i32
    return %arg0, %c0_i32 : i32, i32
  }
}

module attributes {stable_mosaic.version = 11 : i64} {
  func.func @_conv_detect_kernel(%arg0: i32, %arg1: memref<32x144xbf16, #tpu.memory_space<vmem>>, %arg2: memref<144x128xbf16, #tpu.memory_space<vmem>>, %arg3: memref<1x128xf32, #tpu.memory_space<vmem>>, %arg4: memref<128x128xbf16, #tpu.memory_space<vmem>>, %arg5: memref<1x128xf32, #tpu.memory_space<vmem>>, %arg6: memref<8x128xf32, #tpu.memory_space<vmem>>, %arg7: memref<32x128xbf16, #tpu.memory_space<vmem>>, %arg8: memref<32x128xf32, #tpu.memory_space<vmem>>) attributes {dimension_semantics = [#tpu.dimension_semantics<parallel>], iteration_bounds = array<i64: 1>, scalar_prefetch = 0 : i64, scratch_operands = 0 : i64, tpu.core_type = #tpu.core_type<tc>, window_params = [{transform_indices = @transform_0, window_bounds = array<i64: 32, 144>}, {pipeline_mode = #tpu.pipeline_mode<synchronous>, transform_indices = @transform_1, window_bounds = array<i64: 144, 128>}, {pipeline_mode = #tpu.pipeline_mode<synchronous>, transform_indices = @transform_2, window_bounds = array<i64: 1, 128>}, {pipeline_mode = #tpu.pipeline_mode<synchronous>, transform_indices = @transform_3, window_bounds = array<i64: 128, 128>}, {pipeline_mode = #tpu.pipeline_mode<synchronous>, transform_indices = @transform_4, window_bounds = array<i64: 1, 128>}, {pipeline_mode = #tpu.pipeline_mode<synchronous>, transform_indices = @transform_5, window_bounds = array<i64: 8, 128>}, {transform_indices = @transform_6, window_bounds = array<i64: 32, 128>}, {transform_indices = @transform_7, window_bounds = array<i64: 32, 128>}]} {
    %c0 = arith.constant 0 : index
    %c0_0 = arith.constant 0 : index
    %0 = vector.load %arg1[%c0, %c0_0] : memref<32x144xbf16, #tpu.memory_space<vmem>>, vector<32x144xbf16>
    %c0_1 = arith.constant 0 : index
    %c0_2 = arith.constant 0 : index
    %1 = vector.load %arg2[%c0_1, %c0_2] : memref<144x128xbf16, #tpu.memory_space<vmem>>, vector<144x128xbf16>
    %cst = arith.constant dense<0.000000e+00> : vector<32x128xf32>
    %2 = tpu.matmul %0, %1, %cst {dimension_numbers = #tpu.dot_dimension_numbers<[1], [0], [0], [1], [0, 0, 1, 1], [], []>} : vector<32x144xbf16>, vector<144x128xbf16>, vector<32x128xf32> -> vector<32x128xf32>
    %c0_3 = arith.constant 0 : index
    %c0_4 = arith.constant 0 : index
    %3 = vector.load %arg3[%c0_3, %c0_4] : memref<1x128xf32, #tpu.memory_space<vmem>>, vector<1x128xf32>
    %4 = vector.broadcast %3 : vector<1x128xf32> to vector<32x128xf32>
    %5 = arith.addf %2, %4 : vector<32x128xf32>
    %cst_5 = arith.constant 5.000000e-01 : f32
    %6 = vector.broadcast %cst_5 : f32 to vector<32x128xf32>
    %7 = arith.mulf %6, %5 : vector<32x128xf32>
    %8 = math.tanh %7 : vector<32x128xf32>
    %cst_6 = arith.constant 1.000000e+00 : f32
    %9 = vector.broadcast %cst_6 : f32 to vector<32x128xf32>
    %10 = arith.addf %8, %9 : vector<32x128xf32>
    %cst_7 = arith.constant 5.000000e-01 : f32
    %11 = vector.broadcast %cst_7 : f32 to vector<32x128xf32>
    %12 = arith.mulf %11, %10 : vector<32x128xf32>
    %13 = arith.mulf %5, %12 : vector<32x128xf32>
    %14 = arith.truncf %13 : vector<32x128xf32> to vector<32x128xbf16>
    %c0_8 = arith.constant 0 : index
    %c0_9 = arith.constant 0 : index
    %15 = vector.load %arg7[%c0_8, %c0_9] : memref<32x128xbf16, #tpu.memory_space<vmem>>, vector<32x128xbf16>
    tpu.vector_store %arg7[%c0_8, %c0_9], %14 {strides = array<i32>} : memref<32x128xbf16, #tpu.memory_space<vmem>>, vector<32x128xbf16>,
    %c0_10 = arith.constant 0 : index
    %c0_11 = arith.constant 0 : index
    %16 = vector.load %arg4[%c0_10, %c0_11] : memref<128x128xbf16, #tpu.memory_space<vmem>>, vector<128x128xbf16>
    %cst_12 = arith.constant dense<0.000000e+00> : vector<32x128xf32>
    %17 = tpu.matmul %14, %16, %cst_12 {dimension_numbers = #tpu.dot_dimension_numbers<[1], [0], [0], [1], [0, 0, 1, 1], [], []>} : vector<32x128xbf16>, vector<128x128xbf16>, vector<32x128xf32> -> vector<32x128xf32>
    %c0_13 = arith.constant 0 : index
    %c0_14 = arith.constant 0 : index
    %18 = vector.load %arg5[%c0_13, %c0_14] : memref<1x128xf32, #tpu.memory_space<vmem>>, vector<1x128xf32>
    %19 = vector.broadcast %18 : vector<1x128xf32> to vector<32x128xf32>
    %20 = arith.addf %17, %19 : vector<32x128xf32>
    %cst_15 = arith.constant 5.000000e-01 : f32
    %21 = vector.broadcast %cst_15 : f32 to vector<32x128xf32>
    %22 = arith.mulf %21, %20 : vector<32x128xf32>
    %23 = math.tanh %22 : vector<32x128xf32>
    %cst_16 = arith.constant 1.000000e+00 : f32
    %24 = vector.broadcast %cst_16 : f32 to vector<32x128xf32>
    %25 = arith.addf %23, %24 : vector<32x128xf32>
    %cst_17 = arith.constant 5.000000e-01 : f32
    %26 = vector.broadcast %cst_17 : f32 to vector<32x128xf32>
    %27 = arith.mulf %26, %25 : vector<32x128xf32>
    %c0_18 = arith.constant 0 : index
    %c0_19 = arith.constant 0 : index
    %28 = vector.load %arg6[%c0_18, %c0_19] : memref<8x128xf32, #tpu.memory_space<vmem>>, vector<8x128xf32>
    %29 = vector.extract_strided_slice %28 {offsets = [0, 0], sizes = [1, 128], strides = [1, 1]} : vector<8x128xf32> to vector<1x128xf32>
    %30 = vector.extract_strided_slice %28 {offsets = [1, 0], sizes = [1, 128], strides = [1, 1]} : vector<8x128xf32> to vector<1x128xf32>
    %31 = vector.extract_strided_slice %28 {offsets = [2, 0], sizes = [1, 128], strides = [1, 1]} : vector<8x128xf32> to vector<1x128xf32>
    %32 = vector.extract_strided_slice %28 {offsets = [3, 0], sizes = [1, 128], strides = [1, 1]} : vector<8x128xf32> to vector<1x128xf32>
    %c32_i32 = arith.constant 32 : i32
    %33 = arith.muli %arg0, %c32_i32 : i32
    %34 = tpu.iota {dimensions = array<i32: 0>} : vector<32x128xi32>
    %35 = vector.broadcast %33 : i32 to vector<32x128xi32>
    %36 = arith.addi %35, %34 : vector<32x128xi32>
    %c3_i32 = arith.constant 3 : i32
    %37 = vector.broadcast %c3_i32 : i32 to vector<32x128xi32>
    %38 = arith.andi %36, %37 : vector<32x128xi32>
    %39 = arith.sitofp %38 : vector<32x128xi32> to vector<32x128xf32>
    %c2_i32 = arith.constant 2 : i32
    %40 = vector.broadcast %c2_i32 : i32 to vector<32x128xi32>
    %41 = arith.shrsi %36, %40 : vector<32x128xi32>
    %c3_i32_20 = arith.constant 3 : i32
    %42 = vector.broadcast %c3_i32_20 : i32 to vector<32x128xi32>
    %43 = arith.andi %41, %42 : vector<32x128xi32>
    %44 = arith.sitofp %43 : vector<32x128xi32> to vector<32x128xf32>
    %cst_21 = arith.constant 5.000000e-01 : f32
    %45 = vector.broadcast %cst_21 : f32 to vector<1x128xf32>
    %46 = arith.cmpf ogt, %31, %45 : vector<1x128xf32>
    %47 = vector.shape_cast %46 : vector<1x128xi1> to vector<1x128xi1>
    %48 = vector.broadcast %47 : vector<1x128xi1> to vector<32x128xi1>
    %49 = arith.select %48, %39, %44 : vector<32x128xi1>, vector<32x128xf32>
    %cst_22 = arith.constant 2.000000e+00 : f32
    %50 = vector.broadcast %cst_22 : f32 to vector<32x128xf32>
    %51 = arith.mulf %50, %27 : vector<32x128xf32>
    %52 = arith.addf %51, %49 : vector<32x128xf32>
    %cst_23 = arith.constant 5.000000e-01 : f32
    %53 = vector.broadcast %cst_23 : f32 to vector<32x128xf32>
    %54 = arith.subf %52, %53 : vector<32x128xf32>
    %cst_24 = arith.constant 1.600000e+01 : f32
    %55 = vector.broadcast %cst_24 : f32 to vector<32x128xf32>
    %56 = arith.mulf %54, %55 : vector<32x128xf32>
    %57 = vector.broadcast %29 : vector<1x128xf32> to vector<32x128xf32>
    %58 = arith.mulf %57, %56 : vector<32x128xf32>
    %59 = arith.mulf %30, %32 : vector<1x128xf32>
    %60 = arith.mulf %27, %27 : vector<32x128xf32>
    %61 = vector.broadcast %59 : vector<1x128xf32> to vector<32x128xf32>
    %62 = arith.mulf %61, %60 : vector<32x128xf32>
    %63 = arith.addf %58, %62 : vector<32x128xf32>
    %cst_25 = arith.constant 1.000000e+00 : f32
    %64 = vector.broadcast %cst_25 : f32 to vector<1x128xf32>
    %65 = arith.subf %64, %29 : vector<1x128xf32>
    %66 = arith.subf %65, %30 : vector<1x128xf32>
    %67 = vector.broadcast %66 : vector<1x128xf32> to vector<32x128xf32>
    %68 = arith.mulf %67, %27 : vector<32x128xf32>
    %69 = arith.addf %63, %68 : vector<32x128xf32>
    %70 = tpu.iota {dimensions = array<i32: 1>} : vector<32x128xi32>
    %c64_i32 = arith.constant 64 : i32
    %71 = vector.broadcast %c64_i32 : i32 to vector<32x128xi32>
    %72 = arith.cmpi slt, %70, %71 : vector<32x128xi32>
    %c64_i32_26 = arith.constant 64 : i32
    %73 = tpu.dynamic_rotate %69 by %c64_i32_26 dim 1 : vector<32x128xf32>, i32 -> vector<32x128xf32>
    %74 = arith.select %72, %20, %73 : vector<32x128xi1>, vector<32x128xf32>
    %c0_27 = arith.constant 0 : index
    %c0_28 = arith.constant 0 : index
    %75 = vector.load %arg8[%c0_27, %c0_28] : memref<32x128xf32, #tpu.memory_space<vmem>>, vector<32x128xf32>
    tpu.vector_store %arg8[%c0_27, %c0_28], %74 {strides = array<i32>} : memref<32x128xf32, #tpu.memory_space<vmem>>, vector<32x128xf32>,
    return
  }
  func.func @transform_0(%arg0: i32) -> (i32, i32) {
    %c0_i32 = arith.constant 0 : i32
    %c0_i32_0 = arith.constant 0 : i32
    return %arg0, %c0_i32 : i32, i32
  }
  func.func @transform_1(%arg0: i32) -> (i32, i32) {
    %c0_i32 = arith.constant 0 : i32
    %c0_i32_0 = arith.constant 0 : i32
    %c0_i32_1 = arith.constant 0 : i32
    return %c0_i32, %c0_i32_0 : i32, i32
  }
  func.func @transform_2(%arg0: i32) -> (i32, i32) {
    %c0_i32 = arith.constant 0 : i32
    %c0_i32_0 = arith.constant 0 : i32
    %c0_i32_1 = arith.constant 0 : i32
    return %c0_i32, %c0_i32_0 : i32, i32
  }
  func.func @transform_3(%arg0: i32) -> (i32, i32) {
    %c0_i32 = arith.constant 0 : i32
    %c0_i32_0 = arith.constant 0 : i32
    %c0_i32_1 = arith.constant 0 : i32
    return %c0_i32, %c0_i32_0 : i32, i32
  }
  func.func @transform_4(%arg0: i32) -> (i32, i32) {
    %c0_i32 = arith.constant 0 : i32
    %c0_i32_0 = arith.constant 0 : i32
    %c0_i32_1 = arith.constant 0 : i32
    return %c0_i32, %c0_i32_0 : i32, i32
  }
  func.func @transform_5(%arg0: i32) -> (i32, i32) {
    %c0_i32 = arith.constant 0 : i32
    %c0_i32_0 = arith.constant 0 : i32
    %c0_i32_1 = arith.constant 0 : i32
    return %c0_i32, %c0_i32_0 : i32, i32
  }
  func.func @transform_6(%arg0: i32) -> (i32, i32) {
    %c0_i32 = arith.constant 0 : i32
    %c0_i32_0 = arith.constant 0 : i32
    return %arg0, %c0_i32 : i32, i32
  }
  func.func @transform_7(%arg0: i32) -> (i32, i32) {
    %c0_i32 = arith.constant 0 : i32
    %c0_i32_0 = arith.constant 0 : i32
    return %arg0, %c0_i32 : i32, i32
  }
}

module attributes {stable_mosaic.version = 11 : i64} {
  func.func @_conv_detect_kernel(%arg0: i32, %arg1: memref<8x288xbf16, #tpu.memory_space<vmem>>, %arg2: memref<288x128xbf16, #tpu.memory_space<vmem>>, %arg3: memref<1x128xf32, #tpu.memory_space<vmem>>, %arg4: memref<128x128xbf16, #tpu.memory_space<vmem>>, %arg5: memref<1x128xf32, #tpu.memory_space<vmem>>, %arg6: memref<8x128xf32, #tpu.memory_space<vmem>>, %arg7: memref<8x128xbf16, #tpu.memory_space<vmem>>, %arg8: memref<8x128xf32, #tpu.memory_space<vmem>>) attributes {dimension_semantics = [#tpu.dimension_semantics<parallel>], iteration_bounds = array<i64: 1>, scalar_prefetch = 0 : i64, scratch_operands = 0 : i64, tpu.core_type = #tpu.core_type<tc>, window_params = [{transform_indices = @transform_0, window_bounds = array<i64: 8, 288>}, {pipeline_mode = #tpu.pipeline_mode<synchronous>, transform_indices = @transform_1, window_bounds = array<i64: 288, 128>}, {pipeline_mode = #tpu.pipeline_mode<synchronous>, transform_indices = @transform_2, window_bounds = array<i64: 1, 128>}, {pipeline_mode = #tpu.pipeline_mode<synchronous>, transform_indices = @transform_3, window_bounds = array<i64: 128, 128>}, {pipeline_mode = #tpu.pipeline_mode<synchronous>, transform_indices = @transform_4, window_bounds = array<i64: 1, 128>}, {pipeline_mode = #tpu.pipeline_mode<synchronous>, transform_indices = @transform_5, window_bounds = array<i64: 8, 128>}, {transform_indices = @transform_6, window_bounds = array<i64: 8, 128>}, {transform_indices = @transform_7, window_bounds = array<i64: 8, 128>}]} {
    %c0 = arith.constant 0 : index
    %c0_0 = arith.constant 0 : index
    %0 = vector.load %arg1[%c0, %c0_0] : memref<8x288xbf16, #tpu.memory_space<vmem>>, vector<8x288xbf16>
    %c0_1 = arith.constant 0 : index
    %c0_2 = arith.constant 0 : index
    %1 = vector.load %arg2[%c0_1, %c0_2] : memref<288x128xbf16, #tpu.memory_space<vmem>>, vector<288x128xbf16>
    %cst = arith.constant dense<0.000000e+00> : vector<8x128xf32>
    %2 = tpu.matmul %0, %1, %cst {dimension_numbers = #tpu.dot_dimension_numbers<[1], [0], [0], [1], [0, 0, 1, 1], [], []>} : vector<8x288xbf16>, vector<288x128xbf16>, vector<8x128xf32> -> vector<8x128xf32>
    %c0_3 = arith.constant 0 : index
    %c0_4 = arith.constant 0 : index
    %3 = vector.load %arg3[%c0_3, %c0_4] : memref<1x128xf32, #tpu.memory_space<vmem>>, vector<1x128xf32>
    %4 = vector.broadcast %3 : vector<1x128xf32> to vector<8x128xf32>
    %5 = arith.addf %2, %4 : vector<8x128xf32>
    %cst_5 = arith.constant 5.000000e-01 : f32
    %6 = vector.broadcast %cst_5 : f32 to vector<8x128xf32>
    %7 = arith.mulf %6, %5 : vector<8x128xf32>
    %8 = math.tanh %7 : vector<8x128xf32>
    %cst_6 = arith.constant 1.000000e+00 : f32
    %9 = vector.broadcast %cst_6 : f32 to vector<8x128xf32>
    %10 = arith.addf %8, %9 : vector<8x128xf32>
    %cst_7 = arith.constant 5.000000e-01 : f32
    %11 = vector.broadcast %cst_7 : f32 to vector<8x128xf32>
    %12 = arith.mulf %11, %10 : vector<8x128xf32>
    %13 = arith.mulf %5, %12 : vector<8x128xf32>
    %14 = arith.truncf %13 : vector<8x128xf32> to vector<8x128xbf16>
    %c0_8 = arith.constant 0 : index
    %c0_9 = arith.constant 0 : index
    %15 = vector.load %arg7[%c0_8, %c0_9] : memref<8x128xbf16, #tpu.memory_space<vmem>>, vector<8x128xbf16>
    tpu.vector_store %arg7[%c0_8, %c0_9], %14 {strides = array<i32>} : memref<8x128xbf16, #tpu.memory_space<vmem>>, vector<8x128xbf16>,
    %c0_10 = arith.constant 0 : index
    %c0_11 = arith.constant 0 : index
    %16 = vector.load %arg4[%c0_10, %c0_11] : memref<128x128xbf16, #tpu.memory_space<vmem>>, vector<128x128xbf16>
    %cst_12 = arith.constant dense<0.000000e+00> : vector<8x128xf32>
    %17 = tpu.matmul %14, %16, %cst_12 {dimension_numbers = #tpu.dot_dimension_numbers<[1], [0], [0], [1], [0, 0, 1, 1], [], []>} : vector<8x128xbf16>, vector<128x128xbf16>, vector<8x128xf32> -> vector<8x128xf32>
    %c0_13 = arith.constant 0 : index
    %c0_14 = arith.constant 0 : index
    %18 = vector.load %arg5[%c0_13, %c0_14] : memref<1x128xf32, #tpu.memory_space<vmem>>, vector<1x128xf32>
    %19 = vector.broadcast %18 : vector<1x128xf32> to vector<8x128xf32>
    %20 = arith.addf %17, %19 : vector<8x128xf32>
    %cst_15 = arith.constant 5.000000e-01 : f32
    %21 = vector.broadcast %cst_15 : f32 to vector<8x128xf32>
    %22 = arith.mulf %21, %20 : vector<8x128xf32>
    %23 = math.tanh %22 : vector<8x128xf32>
    %cst_16 = arith.constant 1.000000e+00 : f32
    %24 = vector.broadcast %cst_16 : f32 to vector<8x128xf32>
    %25 = arith.addf %23, %24 : vector<8x128xf32>
    %cst_17 = arith.constant 5.000000e-01 : f32
    %26 = vector.broadcast %cst_17 : f32 to vector<8x128xf32>
    %27 = arith.mulf %26, %25 : vector<8x128xf32>
    %c0_18 = arith.constant 0 : index
    %c0_19 = arith.constant 0 : index
    %28 = vector.load %arg6[%c0_18, %c0_19] : memref<8x128xf32, #tpu.memory_space<vmem>>, vector<8x128xf32>
    %29 = vector.extract_strided_slice %28 {offsets = [0, 0], sizes = [1, 128], strides = [1, 1]} : vector<8x128xf32> to vector<1x128xf32>
    %30 = vector.extract_strided_slice %28 {offsets = [1, 0], sizes = [1, 128], strides = [1, 1]} : vector<8x128xf32> to vector<1x128xf32>
    %31 = vector.extract_strided_slice %28 {offsets = [2, 0], sizes = [1, 128], strides = [1, 1]} : vector<8x128xf32> to vector<1x128xf32>
    %32 = vector.extract_strided_slice %28 {offsets = [3, 0], sizes = [1, 128], strides = [1, 1]} : vector<8x128xf32> to vector<1x128xf32>
    %c8_i32 = arith.constant 8 : i32
    %33 = arith.muli %arg0, %c8_i32 : i32
    %34 = tpu.iota {dimensions = array<i32: 0>} : vector<8x128xi32>
    %35 = vector.broadcast %33 : i32 to vector<8x128xi32>
    %36 = arith.addi %35, %34 : vector<8x128xi32>
    %c1_i32 = arith.constant 1 : i32
    %37 = vector.broadcast %c1_i32 : i32 to vector<8x128xi32>
    %38 = arith.andi %36, %37 : vector<8x128xi32>
    %39 = arith.sitofp %38 : vector<8x128xi32> to vector<8x128xf32>
    %c1_i32_20 = arith.constant 1 : i32
    %40 = vector.broadcast %c1_i32_20 : i32 to vector<8x128xi32>
    %41 = arith.shrsi %36, %40 : vector<8x128xi32>
    %c1_i32_21 = arith.constant 1 : i32
    %42 = vector.broadcast %c1_i32_21 : i32 to vector<8x128xi32>
    %43 = arith.andi %41, %42 : vector<8x128xi32>
    %44 = arith.sitofp %43 : vector<8x128xi32> to vector<8x128xf32>
    %cst_22 = arith.constant 5.000000e-01 : f32
    %45 = vector.broadcast %cst_22 : f32 to vector<1x128xf32>
    %46 = arith.cmpf ogt, %31, %45 : vector<1x128xf32>
    %47 = vector.shape_cast %46 : vector<1x128xi1> to vector<1x128xi1>
    %48 = vector.broadcast %47 : vector<1x128xi1> to vector<8x128xi1>
    %49 = arith.select %48, %39, %44 : vector<8x128xi1>, vector<8x128xf32>
    %cst_23 = arith.constant 2.000000e+00 : f32
    %50 = vector.broadcast %cst_23 : f32 to vector<8x128xf32>
    %51 = arith.mulf %50, %27 : vector<8x128xf32>
    %52 = arith.addf %51, %49 : vector<8x128xf32>
    %cst_24 = arith.constant 5.000000e-01 : f32
    %53 = vector.broadcast %cst_24 : f32 to vector<8x128xf32>
    %54 = arith.subf %52, %53 : vector<8x128xf32>
    %cst_25 = arith.constant 3.200000e+01 : f32
    %55 = vector.broadcast %cst_25 : f32 to vector<8x128xf32>
    %56 = arith.mulf %54, %55 : vector<8x128xf32>
    %57 = vector.broadcast %29 : vector<1x128xf32> to vector<8x128xf32>
    %58 = arith.mulf %57, %56 : vector<8x128xf32>
    %59 = arith.mulf %30, %32 : vector<1x128xf32>
    %60 = arith.mulf %27, %27 : vector<8x128xf32>
    %61 = vector.broadcast %59 : vector<1x128xf32> to vector<8x128xf32>
    %62 = arith.mulf %61, %60 : vector<8x128xf32>
    %63 = arith.addf %58, %62 : vector<8x128xf32>
    %cst_26 = arith.constant 1.000000e+00 : f32
    %64 = vector.broadcast %cst_26 : f32 to vector<1x128xf32>
    %65 = arith.subf %64, %29 : vector<1x128xf32>
    %66 = arith.subf %65, %30 : vector<1x128xf32>
    %67 = vector.broadcast %66 : vector<1x128xf32> to vector<8x128xf32>
    %68 = arith.mulf %67, %27 : vector<8x128xf32>
    %69 = arith.addf %63, %68 : vector<8x128xf32>
    %70 = tpu.iota {dimensions = array<i32: 1>} : vector<8x128xi32>
    %c64_i32 = arith.constant 64 : i32
    %71 = vector.broadcast %c64_i32 : i32 to vector<8x128xi32>
    %72 = arith.cmpi slt, %70, %71 : vector<8x128xi32>
    %c64_i32_27 = arith.constant 64 : i32
    %73 = tpu.dynamic_rotate %69 by %c64_i32_27 dim 1 : vector<8x128xf32>, i32 -> vector<8x128xf32>
    %74 = arith.select %72, %20, %73 : vector<8x128xi1>, vector<8x128xf32>
    %c0_28 = arith.constant 0 : index
    %c0_29 = arith.constant 0 : index
    %75 = vector.load %arg8[%c0_28, %c0_29] : memref<8x128xf32, #tpu.memory_space<vmem>>, vector<8x128xf32>
    tpu.vector_store %arg8[%c0_28, %c0_29], %74 {strides = array<i32>} : memref<8x128xf32, #tpu.memory_space<vmem>>, vector<8x128xf32>,
    return
  }
  func.func @transform_0(%arg0: i32) -> (i32, i32) {
    %c0_i32 = arith.constant 0 : i32
    %c0_i32_0 = arith.constant 0 : i32
    return %arg0, %c0_i32 : i32, i32
  }
  func.func @transform_1(%arg0: i32) -> (i32, i32) {
    %c0_i32 = arith.constant 0 : i32
    %c0_i32_0 = arith.constant 0 : i32
    %c0_i32_1 = arith.constant 0 : i32
    return %c0_i32, %c0_i32_0 : i32, i32
  }
  func.func @transform_2(%arg0: i32) -> (i32, i32) {
    %c0_i32 = arith.constant 0 : i32
    %c0_i32_0 = arith.constant 0 : i32
    %c0_i32_1 = arith.constant 0 : i32
    return %c0_i32, %c0_i32_0 : i32, i32
  }
  func.func @transform_3(%arg0: i32) -> (i32, i32) {
    %c0_i32 = arith.constant 0 : i32
    %c0_i32_0 = arith.constant 0 : i32
    %c0_i32_1 = arith.constant 0 : i32
    return %c0_i32, %c0_i32_0 : i32, i32
  }
  func.func @transform_4(%arg0: i32) -> (i32, i32) {
    %c0_i32 = arith.constant 0 : i32
    %c0_i32_0 = arith.constant 0 : i32
    %c0_i32_1 = arith.constant 0 : i32
    return %c0_i32, %c0_i32_0 : i32, i32
  }
  func.func @transform_5(%arg0: i32) -> (i32, i32) {
    %c0_i32 = arith.constant 0 : i32
    %c0_i32_0 = arith.constant 0 : i32
    %c0_i32_1 = arith.constant 0 : i32
    return %c0_i32, %c0_i32_0 : i32, i32
  }
  func.func @transform_6(%arg0: i32) -> (i32, i32) {
    %c0_i32 = arith.constant 0 : i32
    %c0_i32_0 = arith.constant 0 : i32
    return %arg0, %c0_i32 : i32, i32
  }
  func.func @transform_7(%arg0: i32) -> (i32, i32) {
    %c0_i32 = arith.constant 0 : i32
    %c0_i32_0 = arith.constant 0 : i32
    return %arg0, %c0_i32 : i32, i32
  }
}

</mosaic_0001>

<bundles_post_ra>
// kernel: detection_model_forward.5
= control target key start
LH: loop header
LB: loop body
LE: loop exit
PB: predicated region body
PF: predicated region fallthrough
CT: control target
= control target key end

     0   :  { %s4071_s12 = smov 0   ;;  %s5221_s0 = inlined_call_operand.vmem [shape: bf16[2048,27], index: 0, kind: input, shape index: {}]   ;;  %s5222_s1 = inlined_call_operand.vmem [shape: bf16[27,128], index: 1, kind: input, shape index: {}]   ;;  %s5223_s2 = inlined_call_operand.vmem [shape: f32[1,128], index: 2, kind: input, shape index: {}]   ;;  %s5224_s3 = inlined_call_operand.vmem [shape: bf16[2048,128], index: 3, kind: output, shape index: {}]  }
   0x1 LB: > { %s2726_s13 = sadd.s32 4294967295, %s4048_s12   ;;  %p2730_p0 = scmp.ge.s32.totalorder %s4048_s12, 1  ;;  %s4048_s12 = sphi %s4071_s12, %s13_s12  }
   0x2   : > { %p138_p1 = scmp.lt.s32.totalorder %s4048_s12, 3 }
   0x4   : > { %p139_p2 = pnand %p2730_p0, %p138_p1 }
   0x5   : > { %s2731_s16 = sshll.u32 (!%p139_p2), %s2726_s13, 7 }
   0x6   : > { %142 = sbr.rel (%p139_p2) target bundleno = 449 (0x1c1), region = 32  ;;  %p163_p3 = scmp.lt.s32.totalorder (!%p139_p2), %s2731_s16, 255 }
   0xb   : > { %v3718_v0 = vld [vmem:[%s5222_s1 + $0x8] sm:$0x3f]   ;;  %vm838_vm0 = vcmask 1044480   ;;  %vm839_vm1 = vcmask 1045504   ;;  %v4050_v1 = vmov 65535   ;;  %v3719_v5 = vld [vmem:[%s5222_s1] sm:$0xff]  }
   0xc   : > { %v840_v2 = vsel %vm838_vm0, 4294967295, %v4050_v1  ;;  %s5226_s16 = smov (!%p163_p3, %s2731_s16), 255  ;;  %vm645_vm2 = vcmask 220160  }
   0xd   : > { %v841_v3 = vsel %vm839_vm1, %v840_v2, 0  ;;  %s2732_s19 = sshll.u32 %s5226_s16, 2 }
   0xe   : > { %v843_v4 = vand.u32 %v3718_v0, %v841_v3  ;;  %s4093_s22 = scalar_lea.vmem %s5221_s0, %s2732_s19  ;;  %s4337_s27 = scalar_lea.vmem %s5224_s3, %s2732_s19 }
   0xf   : > { %v3720_v6 = vld [vmem:[%s4093_s22] sm:$0xff]   ;;  %v3722_v8 = vld [vmem:[%s4093_s22 + $0x8] sm:$0xff]   ;;  %v3724_v10 = vld [vmem:[%s4093_s22 + $0x10] sm:$0xff]  }
  0x10   : > { %3573 = vmatprep.subr.bf16.mxu0 %v843_v4  ;;  %3705 = vmatprep.subr.bf16.mxu1 %v843_v4  ;;  %v3721_v7 = vld [vmem:[%s4093_s22 + $0x100] sm:$0xff]   ;;  %v3723_v9 = vld [vmem:[%s4093_s22 + $0x108] sm:$0xff]   ;;  %v3725_v11 = vld [vmem:[%s4093_s22 + $0x110] sm:$0xff]  }
  0x11   : > { %3574 = vmatpush3.bf16.msra.mxu0 %v843_v4  ;;  %3707 = vmatpush3.bf16.msra.mxu1 %v843_v4  ;;  %v3726_v12 = vld [vmem:[%s4093_s22 + $0x18] sm:$0xff]   ;;  %v3728_v14 = vld [vmem:[%s4093_s22 + $0x20] sm:$0xff]   ;;  %v3730_v16 = vld [vmem:[%s4093_s22 + $0x28] sm:$0xff]  }
  0x12   : > { %3575 = vmatprep.subr.bf16.mxu0 %v3719_v5  ;;  %3706 = vmatprep.subr.bf16.mxu1 %v3719_v5  ;;  %v3727_v13 = vld [vmem:[%s4093_s22 + $0x118] sm:$0xff]   ;;  %v3729_v15 = vld [vmem:[%s4093_s22 + $0x120] sm:$0xff]   ;;  %v3731_v17 = vld [vmem:[%s4093_s22 + $0x128] sm:$0xff]  }
  0x13   : > { %3577 = vmatprep.mubr.msk.bf16.mxu0 %vm645_vm2, %v3720_v6  ;;  %3641 = vmatprep.mubr.msk.bf16.mxu1 %vm645_vm2, %v3721_v7  ;;  %v3732_v18 = vld [vmem:[%s4093_s22 + $0x30] sm:$0xff]   ;;  %v3734_v20 = vld [vmem:[%s4093_s22 + $0x38] sm:$0xff]   ;;  %v3736_v22 = vld [vmem:[%s4093_s22 + $0x40] sm:$0xff]  }
  0x14   : > { %v3733_v19 = vld [vmem:[%s4093_s22 + $0x130] sm:$0xff]   ;;  %v3735_v21 = vld [vmem:[%s4093_s22 + $0x138] sm:$0xff]   ;;  %v3737_v23 = vld [vmem:[%s4093_s22 + $0x140] sm:$0xff]  }
  0x15   : > { %3576 = vmatpush3.bf16.msra.mxu0 %v3719_v5  ;;  %3708 = vmatpush3.bf16.msra.mxu1 %v3719_v5  ;;  %v3738_v24 = vld [vmem:[%s4093_s22 + $0x48] sm:$0xff]   ;;  %v3740_v26 = vld [vmem:[%s4093_s22 + $0x50] sm:$0xff]   ;;  %v3742_v28 = vld [vmem:[%s4093_s22 + $0x58] sm:$0xff]  }
  0x16   : > { %v3739_v25 = vld [vmem:[%s4093_s22 + $0x148] sm:$0xff]   ;;  %v3741_v27 = vld [vmem:[%s4093_s22 + $0x150] sm:$0xff]   ;;  %v3743_v29 = vld [vmem:[%s4093_s22 + $0x158] sm:$0xff]  }
  0x17   : > { %v3744_v30 = vld [vmem:[%s4093_s22 + $0x60] sm:$0xff]   ;;  %v3746_v32 = vld [vmem:[%s4093_s22 + $0x68] sm:$0xff]   ;;  %v3748_v34 = vld [vmem:[%s4093_s22 + $0x70] sm:$0xff]  }
  0x18   : > { %3578 = vmatmul.mubr.msk.bf16.vlgmr.msra.gmra.mxu0 %vm645_vm2, %v3722_v8  ;;  %3642 = vmatmul.mubr.msk.bf16.vlgmr.msra.gmra.mxu1 %vm645_vm2, %v3723_v9  ;;  %v3745_v31 = vld [vmem:[%s4093_s22 + $0x160] sm:$0xff]   ;;  %v3747_v33 = vld [vmem:[%s4093_s22 + $0x168] sm:$0xff]   ;;  %v3749_v35 = vld [vmem:[%s4093_s22 + $0x170] sm:$0xff]  }
  0x19   : > { %3581 = vmatprep.mubr.msk.bf16.mxu0 %vm645_vm2, %v3724_v10  ;;  %3645 = vmatprep.mubr.msk.bf16.mxu1 %vm645_vm2, %v3725_v11  ;;  %v3750_v36 = vld [vmem:[%s4093_s22 + $0x78] sm:$0xff]   ;;  %v3752_v38 = vld [vmem:[%s4093_s22 + $0x80] sm:$0xff]   ;;  %v3754_v40 = vld [vmem:[%s4093_s22 + $0x88] sm:$0xff]  }
  0x1a   : > { %v3751_v37 = vld [vmem:[%s4093_s22 + $0x178] sm:$0xff]   ;;  %v3753_v39 = vld [vmem:[%s4093_s22 + $0x180] sm:$0xff]   ;;  %v3755_v41 = vld [vmem:[%s4093_s22 + $0x188] sm:$0xff]  }
  0x1b   : > { %v3756_v42 = vld [vmem:[%s4093_s22 + $0x90] sm:$0xff]   ;;  %v3758_v44 = vld [vmem:[%s4093_s22 + $0x98] sm:$0xff]   ;;  %v3760_v46 = vld [vmem:[%s4093_s22 + $0xa0] sm:$0xff]  }
  0x1c   : > { %v3757_v43 = vld [vmem:[%s4093_s22 + $0x190] sm:$0xff]   ;;  %v3759_v45 = vld [vmem:[%s4093_s22 + $0x198] sm:$0xff]   ;;  %v3761_v47 = vld [vmem:[%s4093_s22 + $0x1a0] sm:$0xff]  }
  0x1d   : > { %v3762_v48 = vld [vmem:[%s4093_s22 + $0xa8] sm:$0xff]   ;;  %v3764_v50 = vld [vmem:[%s4093_s22 + $0xb0] sm:$0xff]   ;;  %v3766_v52 = vld [vmem:[%s4093_s22 + $0xb8] sm:$0xff]  }
  0x1e   : > { %v3763_v49 = vld [vmem:[%s4093_s22 + $0x1a8] sm:$0xff]   ;;  %v3765_v51 = vld [vmem:[%s4093_s22 + $0x1b0] sm:$0xff]   ;;  %v3767_v53 = vld [vmem:[%s4093_s22 + $0x1b8] sm:$0xff]  }
  0x1f   : > { %v3768_v54 = vld [vmem:[%s4093_s22 + $0xc0] sm:$0xff]   ;;  %v3770_v56 = vld [vmem:[%s4093_s22 + $0xc8] sm:$0xff]   ;;  %v3772_v58 = vld [vmem:[%s4093_s22 + $0xd0] sm:$0xff]  }
  0x20   : > { %3582 = vmatmul.mubr.msk.bf16.gmra.mxu0 %vm645_vm2, %v3726_v12  ;;  %3646 = vmatmul.mubr.msk.bf16.gmra.mxu1 %vm645_vm2, %v3727_v13  ;;  %v3769_v55 = vld [vmem:[%s4093_s22 + $0x1c0] sm:$0xff]   ;;  %v3771_v57 = vld [vmem:[%s4093_s22 + $0x1c8] sm:$0xff]   ;;  %v3773_v59 = vld [vmem:[%s4093_s22 + $0x1d0] sm:$0xff]  }
  0x21   : > { %3585 = vmatprep.mubr.msk.bf16.mxu0 %vm645_vm2, %v3728_v14  ;;  %3649 = vmatprep.mubr.msk.bf16.mxu1 %vm645_vm2, %v3729_v15  ;;  %v3774_v60 = vld [vmem:[%s4093_s22 + $0xd8] sm:$0xff]   ;;  %v3776_v62 = vld [vmem:[%s4093_s22 + $0xe0] sm:$0xff]   ;;  %v3778_v0 = vld [vmem:[%s4093_s22 + $0xe8] sm:$0xff]  }
  0x22   : > { %v3775_v61 = vld [vmem:[%s4093_s22 + $0x1d8] sm:$0xff]   ;;  %v3777_v63 = vld [vmem:[%s4093_s22 + $0x1e0] sm:$0xff]   ;;  %v3779_v1 = vld [vmem:[%s4093_s22 + $0x1e8] sm:$0xff]  }
  0x23   : > { %v3780_v2 = vld [vmem:[%s4093_s22 + $0xf0] sm:$0xff]   ;;  %v3782_v4 = vld [vmem:[%s4093_s22 + $0xf8] sm:$0xff]   ;;  %v4226_v6 = vld [vmem:[%s5223_s2] ss:$0 sm:$0xff] }
  0x24   : > { %v3781_v3 = vld [vmem:[%s4093_s22 + $0x1f0] sm:$0xff]   ;;  %v3783_v5 = vld [vmem:[%s4093_s22 + $0x1f8] sm:$0xff]  }
  0x28   : > { %3586 = vmatmul.mubr.msk.bf16.gmra.mxu0 %vm645_vm2, %v3730_v16  ;;  %3650 = vmatmul.mubr.msk.bf16.gmra.mxu1 %vm645_vm2, %v3731_v17 }
  0x29   : > { %3589 = vmatprep.mubr.msk.bf16.mxu0 %vm645_vm2, %v3732_v18  ;;  %3653 = vmatprep.mubr.msk.bf16.mxu1 %vm645_vm2, %v3733_v19 }
  0x30   : > { %3590 = vmatmul.mubr.msk.bf16.gmra.mxu0 %vm645_vm2, %v3734_v20  ;;  %3654 = vmatmul.mubr.msk.bf16.gmra.mxu1 %vm645_vm2, %v3735_v21 }
  0x31   : > { %3593 = vmatprep.mubr.msk.bf16.mxu0 %vm645_vm2, %v3736_v22  ;;  %3657 = vmatprep.mubr.msk.bf16.mxu1 %vm645_vm2, %v3737_v23 }
  0x38   : > { %3594 = vmatmul.mubr.msk.bf16.gmra.mxu0 %vm645_vm2, %v3738_v24  ;;  %3658 = vmatmul.mubr.msk.bf16.gmra.mxu1 %vm645_vm2, %v3739_v25 }
  0x39   : > { %3597 = vmatprep.mubr.msk.bf16.mxu0 %vm645_vm2, %v3740_v26  ;;  %3661 = vmatprep.mubr.msk.bf16.mxu1 %vm645_vm2, %v3741_v27 }
  0x40   : > { %3598 = vmatmul.mubr.msk.bf16.gmra.mxu0 %vm645_vm2, %v3742_v28  ;;  %3662 = vmatmul.mubr.msk.bf16.gmra.mxu1 %vm645_vm2, %v3743_v29 }
  0x41   : > { %3601 = vmatprep.mubr.msk.bf16.mxu0 %vm645_vm2, %v3744_v30  ;;  %3665 = vmatprep.mubr.msk.bf16.mxu1 %vm645_vm2, %v3745_v31 }
  0x48   : > { %3602 = vmatmul.mubr.msk.bf16.gmra.mxu0 %vm645_vm2, %v3746_v32  ;;  %3666 = vmatmul.mubr.msk.bf16.gmra.mxu1 %vm645_vm2, %v3747_v33 }
  0x49   : > { %3605 = vmatprep.mubr.msk.bf16.mxu0 %vm645_vm2, %v3748_v34  ;;  %3669 = vmatprep.mubr.msk.bf16.mxu1 %vm645_vm2, %v3749_v35 }
  0x50   : > { %3606 = vmatmul.mubr.msk.bf16.gmra.mxu0 %vm645_vm2, %v3750_v36  ;;  %3670 = vmatmul.mubr.msk.bf16.gmra.mxu1 %vm645_vm2, %v3751_v37 }
  0x51   : > { %3609 = vmatprep.mubr.msk.bf16.mxu0 %vm645_vm2, %v3752_v38  ;;  %3673 = vmatprep.mubr.msk.bf16.mxu1 %vm645_vm2, %v3753_v39 }
  0x58   : > { %3610 = vmatmul.mubr.msk.bf16.gmra.mxu0 %vm645_vm2, %v3754_v40  ;;  %3674 = vmatmul.mubr.msk.bf16.gmra.mxu1 %vm645_vm2, %v3755_v41 }
  0x59   : > { %3613 = vmatprep.mubr.msk.bf16.mxu0 %vm645_vm2, %v3756_v42  ;;  %3677 = vmatprep.mubr.msk.bf16.mxu1 %vm645_vm2, %v3757_v43 }
  0x60   : > { %3614 = vmatmul.mubr.msk.bf16.gmra.mxu0 %vm645_vm2, %v3758_v44  ;;  %3678 = vmatmul.mubr.msk.bf16.gmra.mxu1 %vm645_vm2, %v3759_v45 }
  0x61   : > { %3617 = vmatprep.mubr.msk.bf16.mxu0 %vm645_vm2, %v3760_v46  ;;  %3681 = vmatprep.mubr.msk.bf16.mxu1 %vm645_vm2, %v3761_v47 }
  0x68   : > { %3618 = vmatmul.mubr.msk.bf16.gmra.mxu0 %vm645_vm2, %v3762_v48  ;;  %3682 = vmatmul.mubr.msk.bf16.gmra.mxu1 %vm645_vm2, %v3763_v49 }
  0x69   : > { %3621 = vmatprep.mubr.msk.bf16.mxu0 %vm645_vm2, %v3764_v50  ;;  %3685 = vmatprep.mubr.msk.bf16.mxu1 %vm645_vm2, %v3765_v51 }
  0x70   : > { %3622 = vmatmul.mubr.msk.bf16.gmra.mxu0 %vm645_vm2, %v3766_v52  ;;  %3686 = vmatmul.mubr.msk.bf16.gmra.mxu1 %vm645_vm2, %v3767_v53 }
  0x71   : > { %3625 = vmatprep.mubr.msk.bf16.mxu0 %vm645_vm2, %v3768_v54  ;;  %3689 = vmatprep.mubr.msk.bf16.mxu1 %vm645_vm2, %v3769_v55 }
  0x78   : > { %3626 = vmatmul.mubr.msk.bf16.gmra.mxu0 %vm645_vm2, %v3770_v56  ;;  %3690 = vmatmul.mubr.msk.bf16.gmra.mxu1 %vm645_vm2, %v3771_v57 }
  0x79   : > { %3629 = vmatprep.mubr.msk.bf16.mxu0 %vm645_vm2, %v3772_v58  ;;  %3693 = vmatprep.mubr.msk.bf16.mxu1 %vm645_vm2, %v3773_v59 }
  0x80   : > { %3630 = vmatmul.mubr.msk.bf16.gmra.mxu0 %vm645_vm2, %v3774_v60  ;;  %3694 = vmatmul.mubr.msk.bf16.gmra.mxu1 %vm645_vm2, %v3775_v61 }
  0x81   : > { %3633 = vmatprep.mubr.msk.bf16.mxu0 %vm645_vm2, %v3776_v62  ;;  %3697 = vmatprep.mubr.msk.bf16.mxu1 %vm645_vm2, %v3777_v63 }
  0x88   : > { %3634 = vmatmul.mubr.msk.bf16.gmra.mxu0 %vm645_vm2, %v3778_v0  ;;  %3698 = vmatmul.mubr.msk.bf16.gmra.mxu1 %vm645_vm2, %v3779_v1 }
  0x89   : > { %3637 = vmatprep.mubr.msk.bf16.mxu0 %vm645_vm2, %v3780_v2  ;;  %3701 = vmatprep.mubr.msk.bf16.mxu1 %vm645_vm2, %v3781_v3 }
  0x90   : > { %3638 = vmatmul.mubr.msk.bf16.gmra.mxu0 %vm645_vm2, %v3782_v4  ;;  %3702 = vmatmul.mubr.msk.bf16.gmra.mxu1 %vm645_vm2, %v3783_v5 }
  0xd8   : > { %v3579_v7 = vpop.f32.mrf.mxu0  ;;  %v3643_v8 = vpop.f32.mrf.mxu1 }
  0xd9   : > { %v4229_v9 = vadd.f32 %v3579_v7, %v4226_v6  ;;  %v4232_v10 = vadd.f32 %v3643_v8, %v4226_v6 }
  0xda   : > { %v879_v11 = vpop.f32.mrf.mxu0  ;;  %v1135_v12 = vpop.f32.mrf.mxu1 }
  0xdb   : > { %v1392_v13 = vmul.f32 0.5, %v4229_v9  ;;  %v1456_v14 = vmul.f32 0.5, %v4232_v10  ;;  %v4237_v15 = vadd.f32 %v4226_v6, %v879_v11  ;;  %v4240_v16 = vadd.f32 %v4226_v6, %v1135_v12 }
  0xdc   : > { %v3580_v17 = vpop.f32.mrf.mxu0  ;;  %v3644_v18 = vpop.f32.mrf.mxu1 }
  0xdd   : > { %3784 = vtanh.f32 %v1392_v13  ;;  %v1390_v19 = vmul.f32 0.5, %v4237_v15  ;;  %v1454_v20 = vmul.f32 0.5, %v4240_v16  ;;  %v4245_v21 = vadd.f32 %v3580_v17, %v4226_v6 }
  0xde   : > { %3786 = vtanh.f32 %v1456_v14  ;;  %v4248_v22 = vadd.f32 %v3644_v18, %v4226_v6  ;;  %v882_v23 = vpop.f32.mrf.mxu0  ;;  %v1138_v24 = vpop.f32.mrf.mxu1 }
  0xdf   : > { %3788 = vtanh.f32 %v1390_v19  ;;  %v1393_v25 = vmul.f32 0.5, %v4245_v21  ;;  %v4252_v26 = vadd.f32 %v4226_v6, %v882_v23  ;;  %v4255_v27 = vadd.f32 %v4226_v6, %v1138_v24 }
  0xe0   : > { %3790 = vtanh.f32 %v1454_v20  ;;  %v1457_v28 = vmul.f32 0.5, %v4248_v22  ;;  %v3583_v29 = vpop.f32.mrf.mxu0  ;;  %v3647_v30 = vpop.f32.mrf.mxu1 }
  0xe1   : > { %3792 = vtanh.f32 %v1393_v25  ;;  %v1391_v31 = vmul.f32 0.5, %v4252_v26  ;;  %v1455_v32 = vmul.f32 0.5, %v4255_v27  ;;  %v4261_v33 = vadd.f32 %v3583_v29, %v4226_v6 }
  0xe2   : > { %3794 = vtanh.f32 %v1457_v28  ;;  %v4264_v34 = vadd.f32 %v3647_v30, %v4226_v6  ;;  %v895_v35 = vpop.f32.mrf.mxu0  ;;  %v1151_v36 = vpop.f32.mrf.mxu1 }
  0xe3   : > { %3796 = vtanh.f32 %v1391_v31  ;;  %v1396_v37 = vmul.f32 0.5, %v4261_v33  ;;  %v4268_v38 = vadd.f32 %v4226_v6, %v895_v35  ;;  %v4271_v39 = vadd.f32 %v4226_v6, %v1151_v36 }
  0xe4   : > { %3798 = vtanh.f32 %v1455_v32  ;;  %v1460_v40 = vmul.f32 0.5, %v4264_v34  ;;  %v3584_v41 = vpop.f32.mrf.mxu0  ;;  %v3648_v42 = vpop.f32.mrf.mxu1 }
  0xe5   : > { %3800 = vtanh.f32 %v1396_v37  ;;  %v1394_v43 = vmul.f32 0.5, %v4268_v38  ;;  %v1458_v44 = vmul.f32 0.5, %v4271_v39  ;;  %v4277_v45 = vadd.f32 %v3584_v41, %v4226_v6 }
  0xe6   : > { %3802 = vtanh.f32 %v1460_v40  ;;  %v4280_v46 = vadd.f32 %v3648_v42, %v4226_v6  ;;  %v898_v47 = vpop.f32.mrf.mxu0  ;;  %v1154_v48 = vpop.f32.mrf.mxu1 }
  0xe7   : > { %3804 = vtanh.f32 %v1394_v43  ;;  %v1397_v49 = vmul.f32 0.5, %v4277_v45  ;;  %v4284_v50 = vadd.f32 %v4226_v6, %v898_v47  ;;  %v4287_v51 = vadd.f32 %v4226_v6, %v1154_v48 }
  0xe8   : > { %3806 = vtanh.f32 %v1458_v44  ;;  %v1461_v52 = vmul.f32 0.5, %v4280_v46  ;;  %v3587_v53 = vpop.f32.mrf.mxu0  ;;  %v3651_v54 = vpop.f32.mrf.mxu1 }
  0xe9   : > { %3808 = vtanh.f32 %v1397_v49  ;;  %v1395_v55 = vmul.f32 0.5, %v4284_v50  ;;  %v1459_v56 = vmul.f32 0.5, %v4287_v51  ;;  %v4293_v57 = vadd.f32 %v3587_v53, %v4226_v6 }
  0xea   : > { %v3785_v58 = vpop.eup %3784  ;;  %3810 = vtanh.f32 %v1461_v52  ;;  %v4296_v59 = vadd.f32 %v3651_v54, %v4226_v6  ;;  %v911_v60 = vpop.f32.mrf.mxu0 }
  0xeb   : > { %v1167_v61 = vpop.f32.mrf.mxu1  ;;  %v3787_v62 = vpop.eup %3786  ;;  %v1648_v63 = vadd.f32 1.0, %v3785_v58  ;;  %3812 = vtanh.f32 %v1395_v55  ;;  %v1400_v0 = vmul.f32 0.5, %v4293_v57  ;;  %v4300_v1 = vadd.f32 %v4226_v6, %v911_v60 }
  0xec   : > { %v3789_v2 = vpop.eup %3788  ;;  %v1712_v3 = vadd.f32 1.0, %v3787_v62  ;;  %3814 = vtanh.f32 %v1459_v56  ;;  %v1464_v4 = vmul.f32 0.5, %v4296_v59  ;;  %v4304_v5 = vadd.f32 %v4226_v6, %v1167_v61  ;;  %v3588_v7 = vpop.f32.mrf.mxu0 }
  0xed   : > { %v3652_v8 = vpop.f32.mrf.mxu1  ;;  %v3791_v11 = vpop.eup %3790  ;;  %v1776_v12 = vmul.f32 0.5, %v1648_v63  ;;  %v1646_v13 = vadd.f32 1.0, %v3789_v2  ;;  %3816 = vtanh.f32 %v1400_v0  ;;  %v1398_v14 = vmul.f32 0.5, %v4300_v1 }
  0xee   : > { %v3793_v17 = vpop.eup %3792  ;;  %v1840_v18 = vmul.f32 0.5, %v1712_v3  ;;  %v1710_v19 = vadd.f32 1.0, %v3791_v11  ;;  %3818 = vtanh.f32 %v1464_v4  ;;  %v1462_v20 = vmul.f32 0.5, %v4304_v5  ;;  %v4308_v23 = vpop.f32.mrf.mxu0 }
  0xef   : > { %v4310_v24 = vpop.f32.mrf.mxu1  ;;  %v3795_v25 = vpop.eup %3794  ;;  %v1904_v28 = vmul.f32 %v1776_v12, %v4229_v9  ;;  %v1774_v29 = vmul.f32 0.5, %v1646_v13  ;;  %v1649_v30 = vadd.f32 1.0, %v3793_v17  ;;  %3820 = vtanh.f32 %v1398_v14 }
  0xf0   : > { %v3797_v31 = vpop.eup %3796  ;;  %v1968_v32 = vmul.f32 %v1840_v18, %v4232_v10  ;;  %v1838_v35 = vmul.f32 0.5, %v1710_v19  ;;  %v1713_v36 = vadd.f32 1.0, %v3795_v25  ;;  %3822 = vtanh.f32 %v1462_v20  ;;  %v4314_v37 = vpop.f32.mrf.mxu0 }
  0xf1   : > { %v4316_v40 = vpop.f32.mrf.mxu1  ;;  %v3799_v41 = vpop.eup %3798  ;;  %v1902_v42 = vmul.f32 %v1774_v29, %v4237_v15  ;;  %v1777_v43 = vmul.f32 0.5, %v1649_v30  ;;  %v1647_v44 = vadd.f32 1.0, %v3797_v31  ;;  %v4320_v9 = vadd.f32 %v3588_v7, %v4226_v6 }
  0xf2   : > { %v3801_v47 = vpop.eup %3800  ;;  %v1966_v48 = vmul.f32 %v1838_v35, %v4240_v16  ;;  %v1841_v10 = vmul.f32 0.5, %v1713_v36  ;;  %v1711_v49 = vadd.f32 1.0, %v3799_v41  ;;  %v4324_v52 = vadd.f32 %v3652_v8, %v4226_v6  ;;  %v4326_v53 = vpop.f32.mrf.mxu0 }
  0xf3   : > { %v4328_v54 = vpop.f32.mrf.mxu1  ;;  %v3803_v55 = vpop.eup %3802  ;;  %v1905_v15 = vmul.f32 %v1777_v43, %v4245_v21  ;;  %v1775_v56 = vmul.f32 0.5, %v1647_v44  ;;  %v1652_v58 = vadd.f32 1.0, %v3801_v47  ;;  %v1401_v60 = vmul.f32 0.5, %v4320_v9 }
  0xf4   : > { %v3805_v61 = vpop.eup %3804  ;;  %v1969_v16 = vmul.f32 %v1841_v10, %v4248_v22  ;;  %v1839_v62 = vmul.f32 0.5, %v1711_v49  ;;  %v1716_v63 = vadd.f32 1.0, %v3803_v55  ;;  %v1465_v0 = vmul.f32 0.5, %v4324_v52  ;;  %v4341_v2 = vpop.f32.mrf.mxu0 }
  0xf5   : > { %v4343_v21 = vpop.f32.mrf.mxu1  ;;  %v3807_v3 = vpop.eup %3806  ;;  %v3132_v4 = vpack.c.bf16 %v1905_v15, %v1904_v28  ;;  %v1903_v7 = vmul.f32 %v1775_v56, %v4252_v26  ;;  %v1780_v8 = vmul.f32 0.5, %v1652_v58  ;;  %v1650_v11 = vadd.f32 1.0, %v3805_v61 }
  0xf6   : > { %v3809_v12 = vpop.eup %3808  ;;  %v3292_v13 = vpack.c.bf16 %v1969_v16, %v1968_v32  ;;  %v1967_v22 = vmul.f32 %v1839_v62, %v4255_v27  ;;  %v1844_v14 = vmul.f32 0.5, %v1716_v63  ;;  %v1714_v17 = vadd.f32 1.0, %v3807_v3  ;;  %v4347_v18 = vpop.f32.mrf.mxu0 }
  0xf7   : > { %v4349_v19 = vpop.f32.mrf.mxu1  ;;  %v3811_v20 = vpop.eup %3810  ;;  %3444 = vst [vmem:[%s4337_s27 + $0x8] sm:$0xff] %v3132_v4   ;;  %v3127_v25 = vpack.c.bf16 %v1903_v7, %v1902_v42  ;;  %v1908_v28 = vmul.f32 %v1780_v8, %v4261_v33  ;;  %v1778_v26 = vmul.f32 0.5, %v1650_v11  ;;  %v1653_v29 = vadd.f32 1.0, %v3809_v12 }
  0xf8   : > { %v3813_v30 = vpop.eup %3812  ;;  %3476 = vst [vmem:[%s4337_s27 + $0x108] sm:$0xff] %v3292_v13   ;;  %v3287_v31 = vpack.c.bf16 %v1967_v22, %v1966_v48  ;;  %v1972_v27 = vmul.f32 %v1844_v14, %v4264_v34  ;;  %v1842_v32 = vmul.f32 0.5, %v1714_v17  ;;  %v1717_v35 = vadd.f32 1.0, %v3811_v20  ;;  %v4355_v36 = vpop.f32.mrf.mxu0 }
  0xf9   : > { %v4357_v41 = vpop.f32.mrf.mxu1  ;;  %v3815_v43 = vpop.eup %3814  ;;  %3128 = vst [vmem:[%s4337_s27] sm:$0xff] %v3127_v25   ;;  %v1906_v42 = vmul.f32 %v1778_v26, %v4268_v38  ;;  %v1781_v44 = vmul.f32 0.5, %v1653_v29  ;;  %v1651_v33 = vadd.f32 1.0, %v3813_v30  ;;  %3824 = vtanh.f32 %v1401_v60 }
  0xfa   : > { %v3817_v47 = vpop.eup %3816  ;;  %3475 = vst [vmem:[%s4337_s27 + $0x100] sm:$0xff] %v3287_v31   ;;  %v1970_v10 = vmul.f32 %v1842_v32, %v4271_v39  ;;  %v1845_v48 = vmul.f32 0.5, %v1717_v35  ;;  %v1715_v49 = vadd.f32 1.0, %v3815_v43  ;;  %3826 = vtanh.f32 %v1465_v0  ;;  %v4363_v34 = vpop.f32.mrf.mxu0 }
  0xfb   : > { %v4365_v55 = vpop.f32.mrf.mxu1  ;;  %v3819_v15 = vpop.eup %3818  ;;  %v1909_v56 = vmul.f32 %v1781_v44, %v4277_v45  ;;  %v1779_v58 = vmul.f32 0.5, %v1651_v33  ;;  %v1656_v61 = vadd.f32 1.0, %v3817_v47  ;;  %v4370_v38 = vadd.f32 %v4226_v6, %v4308_v23 }
  0xfc   : > { %v3821_v60 = vpop.eup %3820  ;;  %v1973_v16 = vmul.f32 %v1845_v48, %v4280_v46  ;;  %v1843_v39 = vmul.f32 0.5, %v1715_v49  ;;  %v1720_v62 = vadd.f32 1.0, %v3819_v15  ;;  %v4375_v63 = vadd.f32 %v4226_v6, %v4310_v24  ;;  %v4377_v0 = vpop.f32.mrf.mxu0 }
  0xfd   : > { %v4379_v3 = vpop.f32.mrf.mxu1  ;;  %v3823_v45 = vpop.eup %3822  ;;  %v3142_v4 = vpack.c.bf16 %v1909_v56, %v1908_v28  ;;  %v1907_v23 = vmul.f32 %v1779_v58, %v4284_v50  ;;  %v1784_v7 = vmul.f32 0.5, %v1656_v61  ;;  %v1654_v8 = vadd.f32 1.0, %v3821_v60 }
  0xfe   : > { %v3302_v11 = vpack.c.bf16 %v1973_v16, %v1972_v27  ;;  %v1971_v46 = vmul.f32 %v1843_v39, %v4287_v51  ;;  %v1848_v12 = vmul.f32 0.5, %v1720_v62  ;;  %v1718_v13 = vadd.f32 1.0, %v3823_v45  ;;  %v4383_v22 = vpop.f32.mrf.mxu0 }
  0xff   : > { %v4385_v24 = vpop.f32.mrf.mxu1  ;;  %3446 = vst [vmem:[%s4337_s27 + $0x18] sm:$0xff] %v3142_v4   ;;  %v3137_v14 = vpack.c.bf16 %v1907_v23, %v1906_v42  ;;  %v4389_v17 = vmul.f32 %v1784_v7, %v4293_v57  ;;  %v1782_v20 = vmul.f32 0.5, %v1654_v8  ;;  %v1399_v50 = vmul.f32 0.5, %v4370_v38 }
 0x100   : > { %3478 = vst [vmem:[%s4337_s27 + $0x118] sm:$0xff] %v3302_v11   ;;  %v3297_v25 = vpack.c.bf16 %v1971_v46, %v1970_v10  ;;  %v4394_v51 = vmul.f32 %v1848_v12, %v4296_v59  ;;  %v1846_v28 = vmul.f32 0.5, %v1718_v13  ;;  %v1463_v26 = vmul.f32 0.5, %v4375_v63  ;;  %v4397_v29 = vpop.f32.mrf.mxu0 }
 0x101   : > { %v4399_v30 = vpop.f32.mrf.mxu1  ;;  %3445 = vst [vmem:[%s4337_s27 + $0x10] sm:$0xff] %v3137_v14   ;;  %v4403_v31 = vmul.f32 %v1782_v20, %v4300_v1  ;;  %3828 = vtanh.f32 %v1399_v50  ;;  %v4407_v57 = vadd.f32 %v4314_v37, %v4226_v6  ;;  %v4411_v59 = vadd.f32 %v4316_v40, %v4226_v6 }
 0x102   : > { %3477 = vst [vmem:[%s4337_s27 + $0x110] sm:$0xff] %v3297_v25   ;;  %v4415_v27 = vmul.f32 %v1846_v28, %v4304_v5  ;;  %3830 = vtanh.f32 %v1463_v26  ;;  %v4419_v32 = vadd.f32 %v4226_v6, %v4326_v53  ;;  %v4423_v1 = vadd.f32 %v4226_v6, %v4328_v54  ;;  %v4425_v35 = vpop.f32.mrf.mxu0 }
 0x103   : > { %v4427_v37 = vpop.f32.mrf.mxu1  ;;  %v1404_v40 = vmul.f32 0.5, %v4407_v57  ;;  %v1468_v43 = vmul.f32 0.5, %v4411_v59  ;;  %v4433_v5 = vadd.f32 %v4341_v2, %v4226_v6  ;;  %v4437_v53 = vadd.f32 %v4343_v21, %v4226_v6 }
 0x104   : > { %v1402_v42 = vmul.f32 0.5, %v4419_v32  ;;  %v1466_v54 = vmul.f32 0.5, %v4423_v1  ;;  %v4443_v44 = vadd.f32 %v4226_v6, %v4347_v18  ;;  %v4447_v33 = vadd.f32 %v4226_v6, %v4349_v19  ;;  %v4449_v47 = vpop.f32.mrf.mxu0 }
 0x105   : > { %v4451_v2 = vpop.f32.mrf.mxu1  ;;  %3832 = vtanh.f32 %v1404_v40  ;;  %v1405_v21 = vmul.f32 0.5, %v4433_v5  ;;  %v1469_v10 = vmul.f32 0.5, %v4437_v53  ;;  %v4457_v48 = vadd.f32 %v4355_v36, %v4226_v6 }
 0x106   : > { %v3825_v49 = vpop.eup %3824  ;;  %3834 = vtanh.f32 %v1468_v43  ;;  %v1403_v18 = vmul.f32 0.5, %v4443_v44  ;;  %v1467_v19 = vmul.f32 0.5, %v4447_v33  ;;  %v4463_v15 = vadd.f32 %v4357_v41, %v4226_v6  ;;  %v4465_v56 = vpop.f32.mrf.mxu0 }
 0x107   : > { %v4467_v58 = vpop.f32.mrf.mxu1  ;;  %v3827_v61 = vpop.eup %3826  ;;  %v1657_v60 = vadd.f32 1.0, %v3825_v49  ;;  %3836 = vtanh.f32 %v1402_v42  ;;  %v1408_v36 = vmul.f32 0.5, %v4457_v48  ;;  %v4472_v16 = vadd.f32 %v4226_v6, %v4363_v34 }
 0x108   : > { %v1721_v39 = vadd.f32 1.0, %v3827_v61  ;;  %3838 = vtanh.f32 %v1466_v54  ;;  %v1472_v62 = vmul.f32 0.5, %v4463_v15  ;;  %v4477_v41 = vadd.f32 %v4226_v6, %v4365_v55  ;;  %v4479_v45 = vpop.f32.mrf.mxu0 }
 0x109   : > { %v4481_v4 = vpop.f32.mrf.mxu1  ;;  %v1785_v23 = vmul.f32 0.5, %v1657_v60  ;;  %3840 = vtanh.f32 %v1405_v21  ;;  %v1406_v7 = vmul.f32 0.5, %v4472_v16  ;;  %v4486_v34 = vadd.f32 %v4377_v0, %v4226_v6 }
 0x10a   : > { %v1849_v8 = vmul.f32 0.5, %v1721_v39  ;;  %3842 = vtanh.f32 %v1469_v10  ;;  %v1470_v11 = vmul.f32 0.5, %v4477_v41  ;;  %v4491_v55 = vadd.f32 %v4379_v3, %v4226_v6  ;;  %v4493_v46 = vpop.f32.mrf.mxu0 }
 0x10b   : > { %v4495_v12 = vpop.f32.mrf.mxu1  ;;  %v1913_v13 = vmul.f32 %v1785_v23, %v4320_v9  ;;  %3844 = vtanh.f32 %v1403_v18  ;;  %v1409_v14 = vmul.f32 0.5, %v4486_v34  ;;  %v4501_v0 = vadd.f32 %v4226_v6, %v4383_v22 }
 0x10c   : > { %v1977_v20 = vmul.f32 %v1849_v8, %v4324_v52  ;;  %3846 = vtanh.f32 %v1467_v19  ;;  %v1473_v50 = vmul.f32 0.5, %v4491_v55  ;;  %v4507_v3 = vadd.f32 %v4226_v6, %v4385_v24  ;;  %v4509_v25 = vpop.f32.mrf.mxu0 }
 0x10d   : > { %v4511_v9 = vpop.f32.mrf.mxu1  ;;  %v3152_v28 = vpack.c.bf16 %v1913_v13, %v4389_v17  ;;  %3848 = vtanh.f32 %v1408_v36  ;;  %v1407_v22 = vmul.f32 0.5, %v4501_v0  ;;  %v4517_v52 = vadd.f32 %v4397_v29, %v4226_v6 }
 0x10e   : > { %v3829_v26 = vpop.eup %3828  ;;  %v3312_v40 = vpack.c.bf16 %v1977_v20, %v4394_v51  ;;  %3850 = vtanh.f32 %v1472_v62  ;;  %v1471_v24 = vmul.f32 0.5, %v4507_v3  ;;  %v4523_v43 = vadd.f32 %v4399_v30, %v4226_v6  ;;  %v4525_v42 = vpop.f32.mrf.mxu0 }
 0x10f   : > { %v4527_v17 = vpop.f32.mrf.mxu1  ;;  %v3831_v54 = vpop.eup %3830  ;;  %3448 = vst [vmem:[%s4337_s27 + $0x28] sm:$0xff] %v3152_v28   ;;  %v1655_v21 = vadd.f32 1.0, %v3829_v26  ;;  %3852 = vtanh.f32 %v1406_v7  ;;  %v1412_v29 = vmul.f32 0.5, %v4517_v52  ;;  %v4533_v51 = vadd.f32 %v4226_v6, %v4425_v35 }
 0x110   : > { %3480 = vst [vmem:[%s4337_s27 + $0x128] sm:$0xff] %v3312_v40   ;;  %v1719_v10 = vadd.f32 1.0, %v3831_v54  ;;  %3854 = vtanh.f32 %v1470_v11  ;;  %v1476_v30 = vmul.f32 0.5, %v4523_v43  ;;  %v4539_v49 = vadd.f32 %v4226_v6, %v4427_v37  ;;  %v4541_v18 = vpop.f32.mrf.mxu0 }
 0x111   : > { %v4543_v19 = vpop.f32.mrf.mxu1  ;;  %v1783_v61 = vmul.f32 0.5, %v1655_v21  ;;  %3856 = vtanh.f32 %v1409_v14  ;;  %v1410_v60 = vmul.f32 0.5, %v4533_v51  ;;  %v4548_v35 = vadd.f32 %v4449_v47, %v4226_v6 }
 0x112   : > { %v3833_v36 = vpop.eup %3832  ;;  %v1847_v39 = vmul.f32 0.5, %v1719_v10  ;;  %3858 = vtanh.f32 %v1473_v50  ;;  %v1474_v62 = vmul.f32 0.5, %v4539_v49  ;;  %v4553_v37 = vadd.f32 %v4451_v2, %v4226_v6  ;;  %v4555_v23 = vpop.f32.mrf.mxu0 }
 0x113   : > { %v4557_v7 = vpop.f32.mrf.mxu1  ;;  %v3835_v8 = vpop.eup %3834  ;;  %v1911_v11 = vmul.f32 %v1783_v61, %v4370_v38  ;;  %v1660_v13 = vadd.f32 1.0, %v3833_v36  ;;  %3860 = vtanh.f32 %v1407_v22  ;;  %v1413_v47 = vmul.f32 0.5, %v4548_v35 }
 0x114   : > { %v3837_v14 = vpop.eup %3836  ;;  %v1975_v20 = vmul.f32 %v1847_v39, %v4375_v63  ;;  %v1724_v50 = vadd.f32 1.0, %v3835_v8  ;;  %3862 = vtanh.f32 %v1471_v24  ;;  %v1477_v2 = vmul.f32 0.5, %v4553_v37  ;;  %v4563_v28 = vpop.f32.mrf.mxu0 }
 0x115   : > { %v3839_v26 = vpop.eup %3838  ;;  %v3147_v40 = vpack.c.bf16 %v1911_v11, %v4403_v31  ;;  %v1788_v54 = vmul.f32 0.5, %v1660_v13  ;;  %v1658_v38 = vadd.f32 1.0, %v3837_v14  ;;  %3864 = vtanh.f32 %v1412_v29  ;;  %v4566_v22 = vpop.f32.mrf.mxu1 }
 0x116   : > { %v3841_v21 = vpop.eup %3840  ;;  %v3307_v10 = vpack.c.bf16 %v1975_v20, %v4415_v27  ;;  %v1852_v63 = vmul.f32 0.5, %v1724_v50  ;;  %v1722_v61 = vadd.f32 1.0, %v3839_v26  ;;  %3866 = vtanh.f32 %v1476_v30  ;;  %v4573_v14 = vpop.f32.mrf.mxu0 }
 0x117   : > { %v3843_v24 = vpop.eup %3842  ;;  %3447 = vst [vmem:[%s4337_s27 + $0x20] sm:$0xff] %v3147_v40   ;;  %v1916_v36 = vmul.f32 %v1788_v54, %v4407_v57  ;;  %v1786_v39 = vmul.f32 0.5, %v1658_v38  ;;  %v1661_v8 = vadd.f32 1.0, %v3841_v21  ;;  %3868 = vtanh.f32 %v1410_v60  ;;  %v4576_v26 = vpop.f32.mrf.mxu1 }
 0x118   : > { %v3845_v31 = vpop.eup %3844  ;;  %3479 = vst [vmem:[%s4337_s27 + $0x120] sm:$0xff] %v3307_v10   ;;  %v1980_v11 = vmul.f32 %v1852_v63, %v4411_v59  ;;  %v1850_v29 = vmul.f32 0.5, %v1722_v61  ;;  %v1725_v13 = vadd.f32 1.0, %v3843_v24  ;;  %3870 = vtanh.f32 %v1474_v62 }
 0x119   : > { %v3847_v27 = vpop.eup %3846  ;;  %v1914_v20 = vmul.f32 %v1786_v39, %v4419_v32  ;;  %v1789_v30 = vmul.f32 0.5, %v1661_v8  ;;  %v1659_v50 = vadd.f32 1.0, %v3845_v31  ;;  %3872 = vtanh.f32 %v1413_v47  ;;  %v4592_v31 = vpop.f32.mrf.mxu1 }
 0x11a   : > { %v3849_v57 = vpop.eup %3848  ;;  %v1978_v60 = vmul.f32 %v1850_v29, %v4423_v1  ;;  %v1853_v40 = vmul.f32 0.5, %v1725_v13  ;;  %v1723_v54 = vadd.f32 1.0, %v3847_v27  ;;  %3874 = vtanh.f32 %v1477_v2  ;;  %v4589_v2 = vpop.f32.mrf.mxu0 }
 0x11b   : > { %v3851_v59 = vpop.eup %3850  ;;  %v1917_v38 = vmul.f32 %v1789_v30, %v4433_v5  ;;  %v1787_v62 = vmul.f32 0.5, %v1659_v50  ;;  %v1664_v21 = vadd.f32 1.0, %v3849_v57  ;;  %v4582_v10 = vadd.f32 %v4226_v6, %v4465_v56 }
 0x11c   : > { %v3853_v32 = vpop.eup %3852  ;;  %v1981_v47 = vmul.f32 %v1853_v40, %v4437_v53  ;;  %v1851_v63 = vmul.f32 0.5, %v1723_v54  ;;  %v1728_v61 = vadd.f32 1.0, %v3851_v59  ;;  %v4587_v1 = vadd.f32 %v4226_v6, %v4467_v58 }
 0x11d   : > { %v3855_v24 = vpop.eup %3854  ;;  %v3162_v5 = vpack.c.bf16 %v1917_v38, %v1916_v36  ;;  %v1915_v39 = vmul.f32 %v1787_v62, %v4443_v44  ;;  %v1792_v8 = vmul.f32 0.5, %v1664_v21  ;;  %v1662_v56 = vadd.f32 1.0, %v3853_v32  ;;  %v4599_v62 = vpop.f32.mrf.mxu0 }
 0x11e   : > { %v3857_v29 = vpop.eup %3856  ;;  %v3322_v53 = vpack.c.bf16 %v1981_v47, %v1980_v11  ;;  %v1979_v13 = vmul.f32 %v1851_v63, %v4447_v33  ;;  %v1856_v27 = vmul.f32 0.5, %v1728_v61  ;;  %v1726_v30 = vadd.f32 1.0, %v3855_v24  ;;  %v4604_v47 = vpop.f32.mrf.mxu1 }
 0x11f   : > { %v3859_v58 = vpop.eup %3858  ;;  %3450 = vst [vmem:[%s4337_s27 + $0x38] sm:$0xff] %v3162_v5   ;;  %v3157_v50 = vpack.c.bf16 %v1915_v39, %v1914_v20  ;;  %v1920_v57 = vmul.f32 %v1792_v8, %v4457_v48  ;;  %v1790_v36 = vmul.f32 0.5, %v1662_v56  ;;  %v1665_v40 = vadd.f32 1.0, %v3857_v29 }
 0x120   : > { %v3861_v44 = vpop.eup %3860  ;;  %3482 = vst [vmem:[%s4337_s27 + $0x138] sm:$0xff] %v3322_v53   ;;  %v3317_v54 = vpack.c.bf16 %v1979_v13, %v1978_v60  ;;  %v1984_v59 = vmul.f32 %v1856_v27, %v4463_v15  ;;  %v1854_v38 = vmul.f32 0.5, %v1726_v30  ;;  %v1729_v11 = vadd.f32 1.0, %v3859_v58  ;;  %v4611_v27 = vpop.f32.mrf.mxu0 }
 0x121   : > { %v3863_v33 = vpop.eup %3862  ;;  %3449 = vst [vmem:[%s4337_s27 + $0x30] sm:$0xff] %v3157_v50   ;;  %v1918_v21 = vmul.f32 %v1790_v36, %v4472_v16  ;;  %v1793_v32 = vmul.f32 0.5, %v1665_v40  ;;  %v1663_v20 = vadd.f32 1.0, %v3861_v44  ;;  %v1411_v48 = vmul.f32 0.5, %v4582_v10 }
 0x122   : > { %v3865_v63 = vpop.eup %3864  ;;  %3481 = vst [vmem:[%s4337_s27 + $0x130] sm:$0xff] %v3317_v54   ;;  %v1982_v60 = vmul.f32 %v1854_v38, %v4477_v41  ;;  %v1857_v61 = vmul.f32 0.5, %v1729_v11  ;;  %v1727_v15 = vadd.f32 1.0, %v3863_v33  ;;  %v1475_v24 = vmul.f32 0.5, %v4587_v1 }
 0x123   : > { %v3867_v5 = vpop.eup %3866  ;;  %v1921_v39 = vmul.f32 %v1793_v32, %v4486_v34  ;;  %v1791_v8 = vmul.f32 0.5, %v1663_v20  ;;  %v1668_v56 = vadd.f32 1.0, %v3865_v63  ;;  %3876 = vtanh.f32 %v1411_v48  ;;  %v4614_v34 = vpop.f32.mrf.mxu1 }
 0x124   : > { %v3869_v16 = vpop.eup %3868  ;;  %v1985_v29 = vmul.f32 %v1857_v61, %v4491_v55  ;;  %v1855_v53 = vmul.f32 0.5, %v1727_v15  ;;  %v1732_v13 = vadd.f32 1.0, %v3867_v5  ;;  %3878 = vtanh.f32 %v1475_v24 }
 0x125   : > { %v3871_v41 = vpop.eup %3870  ;;  %v3172_v30 = vpack.c.bf16 %v1921_v39, %v1920_v57  ;;  %v1919_v58 = vmul.f32 %v1791_v8, %v4501_v0  ;;  %v1796_v50 = vmul.f32 0.5, %v1668_v56  ;;  %v1666_v36 = vadd.f32 1.0, %v3869_v16 }
 0x126   : > { %v3873_v40 = vpop.eup %3872  ;;  %v3332_v44 = vpack.c.bf16 %v1985_v29, %v1984_v59  ;;  %v1983_v55 = vmul.f32 %v1855_v53, %v4507_v3  ;;  %v1860_v54 = vmul.f32 0.5, %v1732_v13  ;;  %v1730_v38 = vadd.f32 1.0, %v3871_v41  ;;  %v4621_v59 = vpop.f32.mrf.mxu0 }
 0x127   : > { %v3875_v11 = vpop.eup %3874  ;;  %3452 = vst [vmem:[%s4337_s27 + $0x48] sm:$0xff] %v3172_v30   ;;  %v3167_v33 = vpack.c.bf16 %v1919_v58, %v1918_v21  ;;  %v1924_v57 = vmul.f32 %v1796_v50, %v4517_v52  ;;  %v1794_v32 = vmul.f32 0.5, %v1666_v36  ;;  %v1669_v20 = vadd.f32 1.0, %v3873_v40 }
 0x128   : > { %3484 = vst [vmem:[%s4337_s27 + $0x148] sm:$0xff] %v3332_v44   ;;  %v3327_v0 = vpack.c.bf16 %v1983_v55, %v1982_v60  ;;  %v1988_v48 = vmul.f32 %v1860_v54, %v4523_v43  ;;  %v1858_v63 = vmul.f32 0.5, %v1730_v38  ;;  %v1733_v61 = vadd.f32 1.0, %v3875_v11  ;;  %v4635_v60 = vpop.f32.mrf.mxu1 }
 0x129   : > { %3451 = vst [vmem:[%s4337_s27 + $0x40] sm:$0xff] %v3167_v33   ;;  %v4625_v3 = vmul.f32 %v1794_v32, %v4533_v51  ;;  %v1797_v15 = vmul.f32 0.5, %v1669_v20  ;;  %v4629_v21 = vadd.f32 %v4479_v45, %v4226_v6  ;;  %v4633_v52 = vadd.f32 %v4481_v4, %v4226_v6 }
 0x12a   : > { %3483 = vst [vmem:[%s4337_s27 + $0x140] sm:$0xff] %v3327_v0   ;;  %v4639_v43 = vmul.f32 %v1858_v63, %v4539_v49  ;;  %v1861_v24 = vmul.f32 0.5, %v1733_v61  ;;  %v4643_v51 = vadd.f32 %v4226_v6, %v4493_v46  ;;  %v4647_v5 = vadd.f32 %v4226_v6, %v4495_v12 }
 0x12b   : > { %v1925_v45 = vmul.f32 %v1797_v15, %v4548_v35  ;;  %v1416_v4 = vmul.f32 0.5, %v4629_v21  ;;  %v1480_v39 = vmul.f32 0.5, %v4633_v52  ;;  %v4654_v49 = vadd.f32 %v4509_v25, %v4226_v6  ;;  %v4663_v35 = vpop.f32.mrf.mxu0 }
 0x12c   : > { %v1989_v8 = vmul.f32 %v1861_v24, %v4553_v37  ;;  %v1414_v46 = vmul.f32 0.5, %v4643_v51  ;;  %v1478_v56 = vmul.f32 0.5, %v4647_v5  ;;  %v4661_v12 = vadd.f32 %v4511_v9, %v4226_v6  ;;  %v4670_v37 = vpop.f32.mrf.mxu1 }
 0x12d   : > { %v3182_v16 = vpack.c.bf16 %v1925_v45, %v1924_v57  ;;  %3880 = vtanh.f32 %v1416_v4  ;;  %v1417_v29 = vmul.f32 0.5, %v4654_v49  ;;  %v4668_v25 = vadd.f32 %v4226_v6, %v4525_v42  ;;  %v4697_v40 = vpop.f32.mrf.mxu0 }
 0x12e   : > { %v3342_v53 = vpack.c.bf16 %v1989_v8, %v1988_v48  ;;  %3882 = vtanh.f32 %v1480_v39  ;;  %v1481_v13 = vmul.f32 0.5, %v4661_v12  ;;  %v4675_v9 = vadd.f32 %v4226_v6, %v4527_v17  ;;  %v4701_v54 = vpop.f32.mrf.mxu1 }
 0x12f   : > { %3454 = vst [vmem:[%s4337_s27 + $0x58] sm:$0xff] %v3182_v16   ;;  %3884 = vtanh.f32 %v1414_v46  ;;  %v1415_v41 = vmul.f32 0.5, %v4668_v25  ;;  %v4681_v30 = vadd.f32 %v4541_v18, %v4226_v6  ;;  %v4685_v42 = vadd.f32 %v4543_v19, %v4226_v6  ;;  %v4721_v48 = vpop.f32.mrf.mxu0 }
 0x130   : > { %v3877_v58 = vpop.eup %3876  ;;  %3486 = vst [vmem:[%s4337_s27 + $0x158] sm:$0xff] %v3342_v53   ;;  %3886 = vtanh.f32 %v1478_v56  ;;  %v1479_v50 = vmul.f32 0.5, %v4675_v9  ;;  %v4691_v17 = vadd.f32 %v4226_v6, %v4555_v23  ;;  %v4695_v36 = vadd.f32 %v4226_v6, %v4557_v7  ;;  %v4726_v61 = vpop.f32.mrf.mxu1 }
 0x131   : > { %v3879_v18 = vpop.eup %3878  ;;  %v1667_v44 = vadd.f32 1.0, %v3877_v58  ;;  %3888 = vtanh.f32 %v1417_v29  ;;  %v1420_v19 = vmul.f32 0.5, %v4681_v30  ;;  %v1484_v55 = vmul.f32 0.5, %v4685_v42  ;;  %v4749_v39 = vpop.f32.mrf.mxu0 }
 0x132   : > { %v1731_v38 = vadd.f32 1.0, %v3879_v18  ;;  %3890 = vtanh.f32 %v1481_v13  ;;  %v1418_v23 = vmul.f32 0.5, %v4691_v17  ;;  %v1482_v11 = vmul.f32 0.5, %v4695_v36  ;;  %v4763_v8 = vpop.f32.mrf.mxu1 }
 0x133   : > { %v1795_v33 = vmul.f32 0.5, %v1667_v44  ;;  %3892 = vtanh.f32 %v1415_v41  ;;  %v4707_v7 = vadd.f32 %v4563_v28, %v4226_v6  ;;  %v4711_v57 = vadd.f32 %v4566_v22, %v4226_v6 }
 0x134   : > { %v1859_v32 = vmul.f32 0.5, %v1731_v38  ;;  %3894 = vtanh.f32 %v1479_v50  ;;  %v4715_v20 = vadd.f32 %v4226_v6, %v4573_v14  ;;  %v4719_v0 = vadd.f32 %v4226_v6, %v4576_v26  ;;  %v4785_v38 = vpop.f32.mrf.mxu1 }
 0x135   : > { %v1923_v63 = vmul.f32 %v1795_v33, %v4582_v10  ;;  %3896 = vtanh.f32 %v1420_v19  ;;  %v1421_v28 = vmul.f32 0.5, %v4707_v7  ;;  %v1485_v22 = vmul.f32 0.5, %v4711_v57 }
 0x136   : > { %v1987_v15 = vmul.f32 %v1859_v32, %v4587_v1  ;;  %3898 = vtanh.f32 %v1484_v55  ;;  %v1419_v14 = vmul.f32 0.5, %v4715_v20  ;;  %v1483_v26 = vmul.f32 0.5, %v4719_v0 }
 0x137   : > { %v3177_v24 = vpack.c.bf16 %v1923_v63, %v4625_v3  ;;  %3900 = vtanh.f32 %v1418_v23  ;;  %v4734_v10 = vadd.f32 %v4589_v2, %v4226_v6  ;;  %v4738_v45 = vadd.f32 %v4592_v31, %v4226_v6 }
 0x138   : > { %v3337_v4 = vpack.c.bf16 %v1987_v15, %v4639_v43  ;;  %3902 = vtanh.f32 %v1482_v11  ;;  %v4743_v1 = vadd.f32 %v4226_v6, %v4599_v62  ;;  %v4747_v3 = vadd.f32 %v4226_v6, %v4604_v47  ;;  %v4757_v43 = vld [vmem:[%s5223_s2] ss:$0 sm:$0xff] }
 0x139   : > { %3453 = vst [vmem:[%s4337_s27 + $0x50] sm:$0xff] %v3177_v24   ;;  %3904 = vtanh.f32 %v1421_v28  ;;  %v1424_v2 = vmul.f32 0.5, %v4734_v10  ;;  %v1488_v31 = vmul.f32 0.5, %v4738_v45  ;;  %v4761_v62 = vadd.f32 %v4757_v43, %v4611_v27 }
 0x13a   : > { %v3881_v6 = vpop.eup %3880  ;;  %3485 = vst [vmem:[%s4337_s27 + $0x150] sm:$0xff] %v3337_v4   ;;  %3906 = vtanh.f32 %v1485_v22  ;;  %v1422_v47 = vmul.f32 0.5, %v4743_v1  ;;  %v1486_v46 = vmul.f32 0.5, %v4747_v3  ;;  %v4770_v56 = vadd.f32 %v4757_v43, %v4614_v34  ;;  %v4782_v34 = vpop.f32.mrf.mxu0 }
 0x13b   : > { %v3883_v16 = vpop.eup %3882  ;;  %v1672_v29 = vadd.f32 1.0, %v3881_v6  ;;  %3908 = vtanh.f32 %v1419_v14  ;;  %v1425_v53 = vmul.f32 0.5, %v4761_v62  ;;  %v4775_v27 = vadd.f32 %v4757_v43, %v4621_v59 }
 0x13c   : > { %v3885_v13 = vpop.eup %3884  ;;  %v1736_v41 = vadd.f32 1.0, %v3883_v16  ;;  %3910 = vtanh.f32 %v1483_v26  ;;  %v1489_v58 = vmul.f32 0.5, %v4770_v56  ;;  %v4780_v50 = vadd.f32 %v4757_v43, %v4635_v60  ;;  %v4790_v24 = vpop.f32.mrf.mxu0 }
 0x13d   : > { %v3887_v18 = vpop.eup %3886  ;;  %v1800_v44 = vmul.f32 0.5, %v1672_v29  ;;  %v1670_v19 = vadd.f32 1.0, %v3885_v13  ;;  %3912 = vtanh.f32 %v1424_v2  ;;  %v1423_v55 = vmul.f32 0.5, %v4775_v27  ;;  %v4793_v16 = vpop.f32.mrf.mxu1 }
 0x13e   : > { %v3889_v59 = vpop.eup %3888  ;;  %v1864_v23 = vmul.f32 0.5, %v1736_v41  ;;  %v1734_v11 = vadd.f32 1.0, %v3887_v18  ;;  %3914 = vtanh.f32 %v1488_v31  ;;  %v1487_v33 = vmul.f32 0.5, %v4780_v50 }
 0x13f   : > { %v3891_v32 = vpop.eup %3890  ;;  %v1928_v60 = vmul.f32 %v1800_v44, %v4629_v21  ;;  %v1798_v63 = vmul.f32 0.5, %v1670_v19  ;;  %v1673_v28 = vadd.f32 1.0, %v3889_v59  ;;  %3916 = vtanh.f32 %v1422_v47  ;;  %v4798_v59 = vpop.f32.mrf.mxu0 }
 0x140   : > { %v3893_v22 = vpop.eup %3892  ;;  %v1992_v15 = vmul.f32 %v1864_v23, %v4633_v52  ;;  %v1862_v14 = vmul.f32 0.5, %v1734_v11  ;;  %v1737_v26 = vadd.f32 1.0, %v3891_v32  ;;  %3918 = vtanh.f32 %v1486_v46 }
 0x141   : > { %v3895_v4 = vpop.eup %3894  ;;  %v1926_v2 = vmul.f32 %v1798_v63, %v4643_v51  ;;  %v1801_v31 = vmul.f32 0.5, %v1673_v28  ;;  %v1671_v6 = vadd.f32 1.0, %v3893_v22  ;;  %3920 = vtanh.f32 %v1425_v53 }
 0x142   : > { %v3897_v21 = vpop.eup %3896  ;;  %v1990_v29 = vmul.f32 %v1862_v14, %v4647_v5  ;;  %v1865_v47 = vmul.f32 0.5, %v1737_v26  ;;  %v1735_v13 = vadd.f32 1.0, %v3895_v4  ;;  %3922 = vtanh.f32 %v1489_v58 }
 0x143   : > { %v3899_v52 = vpop.eup %3898  ;;  %v1929_v41 = vmul.f32 %v1801_v31, %v4654_v49  ;;  %v1799_v46 = vmul.f32 0.5, %v1671_v6  ;;  %v1676_v18 = vadd.f32 1.0, %v3897_v21  ;;  %3924 = vtanh.f32 %v1423_v55  ;;  %v4801_v49 = vpop.f32.mrf.mxu1 }
 0x144   : > { %v3901_v44 = vpop.eup %3900  ;;  %v1993_v51 = vmul.f32 %v1865_v47, %v4661_v12  ;;  %v1863_v19 = vmul.f32 0.5, %v1735_v13  ;;  %v1740_v53 = vadd.f32 1.0, %v3899_v52  ;;  %3926 = vtanh.f32 %v1487_v33  ;;  %v4808_v47 = vpop.f32.mrf.mxu0 }
 0x145   : > { %v3903_v23 = vpop.eup %3902  ;;  %v3192_v5 = vpack.c.bf16 %v1929_v41, %v1928_v60  ;;  %v1927_v11 = vmul.f32 %v1799_v46, %v4668_v25  ;;  %v1804_v58 = vmul.f32 0.5, %v1676_v18  ;;  %v1674_v32 = vadd.f32 1.0, %v3901_v44  ;;  %v4816_v41 = vpop.f32.mrf.mxu1 }
 0x146   : > { %v3905_v63 = vpop.eup %3904  ;;  %v3352_v55 = vpack.c.bf16 %v1993_v51, %v1992_v15  ;;  %v1991_v28 = vmul.f32 %v1863_v19, %v4675_v9  ;;  %v1868_v12 = vmul.f32 0.5, %v1740_v53  ;;  %v1738_v22 = vadd.f32 1.0, %v3903_v23 }
 0x147   : > { %v3907_v14 = vpop.eup %3906  ;;  %3456 = vst [vmem:[%s4337_s27 + $0x68] sm:$0xff] %v3192_v5   ;;  %v3187_v33 = vpack.c.bf16 %v1927_v11, %v1926_v2  ;;  %v1932_v26 = vmul.f32 %v1804_v58, %v4681_v30  ;;  %v1802_v60 = vmul.f32 0.5, %v1674_v32  ;;  %v1677_v4 = vadd.f32 1.0, %v3905_v63  ;;  %v4828_v32 = vpop.f32.mrf.mxu0 }
 0x148   : > { %v3909_v25 = vpop.eup %3908  ;;  %3488 = vst [vmem:[%s4337_s27 + $0x168] sm:$0xff] %v3352_v55   ;;  %v3347_v31 = vpack.c.bf16 %v1991_v28, %v1990_v29  ;;  %v1996_v6 = vmul.f32 %v1868_v12, %v4685_v42  ;;  %v1866_v21 = vmul.f32 0.5, %v1738_v22  ;;  %v1741_v15 = vadd.f32 1.0, %v3907_v14  ;;  %v4831_v12 = vpop.f32.mrf.mxu1 }
 0x149   : > { %v3911_v9 = vpop.eup %3910  ;;  %3455 = vst [vmem:[%s4337_s27 + $0x60] sm:$0xff] %v3187_v33   ;;  %v1930_v13 = vmul.f32 %v1802_v60, %v4691_v17  ;;  %v1805_v52 = vmul.f32 0.5, %v1677_v4  ;;  %v1675_v2 = vadd.f32 1.0, %v3909_v25  ;;  %v4814_v30 = vadd.f32 %v4757_v43, %v4663_v35 }
 0x14a   : > { %v3913_v46 = vpop.eup %3912  ;;  %3487 = vst [vmem:[%s4337_s27 + $0x160] sm:$0xff] %v3347_v31   ;;  %v1994_v42 = vmul.f32 %v1866_v21, %v4695_v36  ;;  %v1869_v29 = vmul.f32 0.5, %v1741_v15  ;;  %v1739_v18 = vadd.f32 1.0, %v3911_v9  ;;  %v4822_v44 = vadd.f32 %v4757_v43, %v4670_v37 }
 0x14b   : > { %v3915_v51 = vpop.eup %3914  ;;  %v1933_v17 = vmul.f32 %v1805_v52, %v4707_v7  ;;  %v1803_v19 = vmul.f32 0.5, %v1675_v2  ;;  %v1680_v53 = vadd.f32 1.0, %v3913_v46  ;;  %v1428_v35 = vmul.f32 0.5, %v4814_v30  ;;  %v4838_v2 = vpop.f32.mrf.mxu0 }
 0x14c   : > { %v3917_v23 = vpop.eup %3916  ;;  %v1997_v5 = vmul.f32 %v1869_v29, %v4711_v57  ;;  %v1867_v11 = vmul.f32 0.5, %v1739_v18  ;;  %v1744_v58 = vadd.f32 1.0, %v3915_v51  ;;  %v1492_v36 = vmul.f32 0.5, %v4822_v44 }
 0x14d   : > { %v3919_v63 = vpop.eup %3918  ;;  %v3202_v37 = vpack.c.bf16 %v1933_v17, %v1932_v26  ;;  %v1931_v55 = vmul.f32 %v1803_v19, %v4715_v20  ;;  %v1808_v7 = vmul.f32 0.5, %v1680_v53  ;;  %v1678_v28 = vadd.f32 1.0, %v3917_v23  ;;  %v4864_v23 = vpop.f32.mrf.mxu0 }
 0x14e   : > { %v3921_v22 = vpop.eup %3920  ;;  %v3362_v14 = vpack.c.bf16 %v1997_v5, %v1996_v6  ;;  %v1995_v57 = vmul.f32 %v1867_v11, %v4719_v0  ;;  %v1872_v33 = vmul.f32 0.5, %v1744_v58  ;;  %v1742_v60 = vadd.f32 1.0, %v3919_v63 }
 0x14f   : > { %v3923_v4 = vpop.eup %3922  ;;  %3458 = vst [vmem:[%s4337_s27 + $0x78] sm:$0xff] %v3202_v37   ;;  %v3197_v25 = vpack.c.bf16 %v1931_v55, %v1930_v13  ;;  %v1936_v31 = vmul.f32 %v1808_v7, %v4734_v10  ;;  %v1806_v26 = vmul.f32 0.5, %v1678_v28  ;;  %v1681_v20 = vadd.f32 1.0, %v3921_v22  ;;  %v4842_v10 = vpop.f32.mrf.mxu1 }
 0x150   : > { %v3925_v21 = vpop.eup %3924  ;;  %3490 = vst [vmem:[%s4337_s27 + $0x178] sm:$0xff] %v3362_v14   ;;  %v3357_v15 = vpack.c.bf16 %v1995_v57, %v1994_v42  ;;  %v2000_v9 = vmul.f32 %v1872_v33, %v4738_v45  ;;  %v1870_v52 = vmul.f32 0.5, %v1742_v60  ;;  %v1745_v6 = vadd.f32 1.0, %v3923_v4  ;;  %v1058_v28 = vpop.f32.mrf.mxu0 }
 0x151   : > { %v3927_v0 = vpop.eup %3926  ;;  %3457 = vst [vmem:[%s4337_s27 + $0x70] sm:$0xff] %v3197_v25   ;;  %v1934_v46 = vmul.f32 %v1806_v26, %v4743_v1  ;;  %v1809_v29 = vmul.f32 0.5, %v1681_v20  ;;  %v1679_v13 = vadd.f32 1.0, %v3925_v21  ;;  %3928 = vtanh.f32 %v1428_v35 }
 0x152   : > { %3489 = vst [vmem:[%s4337_s27 + $0x170] sm:$0xff] %v3357_v15   ;;  %v1998_v18 = vmul.f32 %v1870_v52, %v4747_v3  ;;  %v1873_v51 = vmul.f32 0.5, %v1745_v6  ;;  %v1743_v42 = vadd.f32 1.0, %v3927_v0  ;;  %3930 = vtanh.f32 %v1492_v36 }
 0x153   : > { %v1937_v45 = vmul.f32 %v1809_v29, %v4761_v62  ;;  %v1807_v17 = vmul.f32 0.5, %v1679_v13  ;;  %v4849_v19 = vadd.f32 %v4757_v43, %v4697_v40  ;;  %v4853_v1 = vadd.f32 %v4757_v43, %v4701_v54 }
 0x154   : > { %v2001_v53 = vmul.f32 %v1873_v51, %v4770_v56  ;;  %v1871_v35 = vmul.f32 0.5, %v1743_v42  ;;  %v4858_v3 = vadd.f32 %v4757_v43, %v4721_v48  ;;  %v4862_v62 = vadd.f32 %v4757_v43, %v4726_v61  ;;  %v4869_v56 = vpop.f32.mrf.mxu1 }
 0x155   : > { %v3212_v40 = vpack.c.bf16 %v1937_v45, %v1936_v31  ;;  %v1935_v5 = vmul.f32 %v1807_v17, %v4775_v27  ;;  %v1426_v54 = vmul.f32 0.5, %v4849_v19  ;;  %v1490_v11 = vmul.f32 0.5, %v4853_v1  ;;  %v3627_v31 = vpop.f32.mrf.mxu0 }
 0x156   : > { %v3372_v58 = vpack.c.bf16 %v2001_v53, %v2000_v9  ;;  %v1999_v48 = vmul.f32 %v1871_v35, %v4780_v50  ;;  %v1429_v36 = vmul.f32 0.5, %v4858_v3  ;;  %v1493_v61 = vmul.f32 0.5, %v4862_v62  ;;  %v1314_v14 = vpop.f32.mrf.mxu1 }
 0x157   : > { %3460 = vst [vmem:[%s4337_s27 + $0x88] sm:$0xff] %v3212_v40   ;;  %v3207_v63 = vpack.c.bf16 %v1935_v5, %v1934_v46  ;;  %3932 = vtanh.f32 %v1426_v54  ;;  %v4877_v27 = vadd.f32 %v4757_v43, %v4749_v39  ;;  %v4881_v37 = vadd.f32 %v4757_v43, %v4763_v8  ;;  %v4946_v13 = vpop.f32.mrf.mxu0 }
 0x158   : > { %3492 = vst [vmem:[%s4337_s27 + $0x188] sm:$0xff] %v3372_v58   ;;  %v3367_v55 = vpack.c.bf16 %v1999_v48, %v1998_v18  ;;  %3934 = vtanh.f32 %v1490_v11  ;;  %v4886_v50 = vadd.f32 %v4757_v43, %v4782_v34  ;;  %v4890_v7 = vadd.f32 %v4757_v43, %v4785_v38  ;;  %v3691_v20 = vpop.f32.mrf.mxu1 }
 0x159   : > { %3459 = vst [vmem:[%s4337_s27 + $0x80] sm:$0xff] %v3207_v63   ;;  %3936 = vtanh.f32 %v1429_v36  ;;  %v1427_v39 = vmul.f32 0.5, %v4877_v27  ;;  %v1491_v22 = vmul.f32 0.5, %v4881_v37  ;;  %v4897_v8 = vadd.f32 %v4757_v43, %v4790_v24  ;;  %v4974_v11 = vpop.f32.mrf.mxu0 }
 0x15a   : > { %3491 = vst [vmem:[%s4337_s27 + $0x180] sm:$0xff] %v3367_v55   ;;  %3938 = vtanh.f32 %v1493_v61  ;;  %v1432_v34 = vmul.f32 0.5, %v4886_v50  ;;  %v1496_v57 = vmul.f32 0.5, %v4890_v7  ;;  %v4904_v38 = vadd.f32 %v4757_v43, %v4793_v16 }
 0x15b   : > { %3940 = vtanh.f32 %v1427_v39  ;;  %v1430_v33 = vmul.f32 0.5, %v4897_v8  ;;  %v4909_v60 = vadd.f32 %v4757_v43, %v4798_v59  ;;  %v4913_v24 = vadd.f32 %v4757_v43, %v4801_v49 }
 0x15c   : > { %3942 = vtanh.f32 %v1491_v22  ;;  %v1494_v4 = vmul.f32 0.5, %v4904_v38  ;;  %v4918_v25 = vadd.f32 %v4757_v43, %v4808_v47  ;;  %v4922_v16 = vadd.f32 %v4757_v43, %v4816_v41 }
 0x15d   : > { %3944 = vtanh.f32 %v1432_v34  ;;  %v1433_v59 = vmul.f32 0.5, %v4909_v60  ;;  %v1497_v26 = vmul.f32 0.5, %v4913_v24  ;;  %v4928_v49 = vadd.f32 %v4757_v43, %v4828_v32 }
 0x15e   : > { %v3929_v21 = vpop.eup %3928  ;;  %3946 = vtanh.f32 %v1496_v57  ;;  %v1431_v47 = vmul.f32 0.5, %v4918_v25  ;;  %v1495_v15 = vmul.f32 0.5, %v4922_v16  ;;  %v4934_v41 = vadd.f32 %v4757_v43, %v4831_v12 }
 0x15f   : > { %v3931_v9 = vpop.eup %3930  ;;  %v1684_v52 = vadd.f32 1.0, %v3929_v21  ;;  %3948 = vtanh.f32 %v1430_v33  ;;  %v1436_v6 = vmul.f32 0.5, %v4928_v49  ;;  %v4939_v32 = vadd.f32 %v4757_v43, %v4838_v2  ;;  %v4953_v2 = vpop.f32.mrf.mxu1 }
 0x160   : > { %v1748_v0 = vadd.f32 1.0, %v3931_v9  ;;  %3950 = vtanh.f32 %v1494_v4  ;;  %v1500_v46 = vmul.f32 0.5, %v4934_v41  ;;  %v4944_v29 = vadd.f32 %v4757_v43, %v4842_v10 }
 0x161   : > { %v1812_v12 = vmul.f32 0.5, %v1684_v52  ;;  %3952 = vtanh.f32 %v1433_v59  ;;  %v1434_v18 = vmul.f32 0.5, %v4939_v32  ;;  %v4951_v51 = vadd.f32 %v4757_v43, %v4864_v23  ;;  %v4980_v36 = vpop.f32.mrf.mxu1 }
 0x162   : > { %v1876_v42 = vmul.f32 0.5, %v1748_v0  ;;  %3954 = vtanh.f32 %v1497_v26  ;;  %v1498_v45 = vmul.f32 0.5, %v4944_v29  ;;  %v4958_v10 = vadd.f32 %v4757_v43, %v4869_v56 }
 0x163   : > { %v4961_v17 = vmul.f32 %v1812_v12, %v4814_v30  ;;  %3956 = vtanh.f32 %v1431_v47  ;;  %v1437_v53 = vmul.f32 0.5, %v4951_v51  ;;  %v4965_v35 = vadd.f32 %v4757_v43, %v1058_v28  ;;  %v4991_v47 = vpop.f32.mrf.mxu1 }
 0x164   : > { %v3933_v23 = vpop.eup %3932  ;;  %v4968_v40 = vmul.f32 %v1876_v42, %v4822_v44  ;;  %3958 = vtanh.f32 %v1495_v15  ;;  %v1501_v5 = vmul.f32 0.5, %v4958_v10  ;;  %v4972_v54 = vadd.f32 %v4757_v43, %v1314_v14 }
 0x165   : > { %v3935_v30 = vpop.eup %3934  ;;  %v1682_v56 = vadd.f32 1.0, %v3933_v23  ;;  %3960 = vtanh.f32 %v1436_v6  ;;  %v1435_v58 = vmul.f32 0.5, %v4965_v35  ;;  %v4978_v48 = vadd.f32 %v4757_v43, %v3627_v31  ;;  %v4988_v31 = vpop.f32.mrf.mxu0 }
 0x166   : > { %v3937_v44 = vpop.eup %3936  ;;  %v1746_v61 = vadd.f32 1.0, %v3935_v30  ;;  %3962 = vtanh.f32 %v1500_v46  ;;  %v1499_v63 = vmul.f32 0.5, %v4972_v54  ;;  %v4984_v55 = vadd.f32 %v4757_v43, %v3691_v20 }
 0x167   : > { %v3939_v28 = vpop.eup %3938  ;;  %v1810_v39 = vmul.f32 0.5, %v1682_v56  ;;  %v1685_v22 = vadd.f32 1.0, %v3937_v44  ;;  %3964 = vtanh.f32 %v1434_v18  ;;  %v1440_v14 = vmul.f32 0.5, %v4978_v48  ;;  %v4996_v23 = vpop.f32.mrf.mxu0 }
 0x168   : > { %v3941_v34 = vpop.eup %3940  ;;  %v1874_v57 = vmul.f32 0.5, %v1746_v61  ;;  %v1749_v33 = vadd.f32 1.0, %v3939_v28  ;;  %3966 = vtanh.f32 %v1498_v45  ;;  %v1504_v4 = vmul.f32 0.5, %v4984_v55  ;;  %v5000_v44 = vpop.f32.mrf.mxu1 }
 0x169   : > { %v3943_v59 = vpop.eup %3942  ;;  %v1938_v26 = vmul.f32 %v1810_v39, %v4849_v19  ;;  %v1813_v21 = vmul.f32 0.5, %v1685_v22  ;;  %v1683_v20 = vadd.f32 1.0, %v3941_v34  ;;  %3968 = vtanh.f32 %v1437_v53 }
 0x16a   : > { %v3945_v15 = vpop.eup %3944  ;;  %v2002_v9 = vmul.f32 %v1874_v57, %v4853_v1  ;;  %v1877_v52 = vmul.f32 0.5, %v1749_v33  ;;  %v1747_v6 = vadd.f32 1.0, %v3943_v59  ;;  %3970 = vtanh.f32 %v1501_v5 }
 0x16b   : > { %v3947_v0 = vpop.eup %3946  ;;  %v1941_v46 = vmul.f32 %v1813_v21, %v4858_v3  ;;  %v1811_v12 = vmul.f32 0.5, %v1683_v20  ;;  %v1688_v18 = vadd.f32 1.0, %v3945_v15  ;;  %3972 = vtanh.f32 %v1435_v58  ;;  %v5008_v20 = vpop.f32.mrf.mxu0 }
 0x16c   : > { %v3949_v42 = vpop.eup %3948  ;;  %v2005_v19 = vmul.f32 %v1877_v52, %v4862_v62  ;;  %v1875_v45 = vmul.f32 0.5, %v1747_v6  ;;  %v1752_v53 = vadd.f32 1.0, %v3947_v0  ;;  %3974 = vtanh.f32 %v1499_v63 }
 0x16d   : > { %v3951_v30 = vpop.eup %3950  ;;  %v3222_v1 = vpack.c.bf16 %v1941_v46, %v4961_v17  ;;  %v1939_v5 = vmul.f32 %v1811_v12, %v4877_v27  ;;  %v1816_v56 = vmul.f32 0.5, %v1688_v18  ;;  %v1686_v3 = vadd.f32 1.0, %v3949_v42 }
 0x16e   : > { %v3953_v58 = vpop.eup %3952  ;;  %v3382_v61 = vpack.c.bf16 %v2005_v19, %v4968_v40  ;;  %v2003_v62 = vmul.f32 %v1875_v45, %v4881_v37  ;;  %v1880_v28 = vmul.f32 0.5, %v1752_v53  ;;  %v1750_v63 = vadd.f32 1.0, %v3951_v30 }
 0x16f   : > { %v3955_v39 = vpop.eup %3954  ;;  %3462 = vst [vmem:[%s4337_s27 + $0x98] sm:$0xff] %v3222_v1   ;;  %v3217_v22 = vpack.c.bf16 %v1939_v5, %v1938_v26  ;;  %v1944_v17 = vmul.f32 %v1816_v56, %v4886_v50  ;;  %v1814_v34 = vmul.f32 0.5, %v1686_v3  ;;  %v1689_v27 = vadd.f32 1.0, %v3953_v58  ;;  %v5012_v50 = vpop.f32.mrf.mxu1 }
 0x170   : > { %v3957_v57 = vpop.eup %3956  ;;  %3494 = vst [vmem:[%s4337_s27 + $0x198] sm:$0xff] %v3382_v61   ;;  %v3377_v33 = vpack.c.bf16 %v2003_v62, %v2002_v9  ;;  %v2008_v59 = vmul.f32 %v1880_v28, %v4890_v7  ;;  %v1878_v21 = vmul.f32 0.5, %v1750_v63  ;;  %v1753_v40 = vadd.f32 1.0, %v3955_v39 }
 0x171   : > { %v3959_v37 = vpop.eup %3958  ;;  %3461 = vst [vmem:[%s4337_s27 + $0x90] sm:$0xff] %v3217_v22   ;;  %v1942_v15 = vmul.f32 %v1814_v34, %v4897_v8  ;;  %v1817_v52 = vmul.f32 0.5, %v1689_v27  ;;  %v1687_v26 = vadd.f32 1.0, %v3957_v57  ;;  %3976 = vtanh.f32 %v1440_v14  ;;  %v5029_v56 = vpop.f32.mrf.mxu1 }
 0x172   : > { %v3961_v6 = vpop.eup %3960  ;;  %3493 = vst [vmem:[%s4337_s27 + $0x190] sm:$0xff] %v3377_v33   ;;  %v2006_v0 = vmul.f32 %v1878_v21, %v4904_v38  ;;  %v1881_v9 = vmul.f32 0.5, %v1753_v40  ;;  %v1751_v46 = vadd.f32 1.0, %v3959_v37  ;;  %3978 = vtanh.f32 %v1504_v4  ;;  %v5026_v4 = vpop.f32.mrf.mxu0 }
 0x173   : > { %v3963_v7 = vpop.eup %3962  ;;  %v1945_v12 = vmul.f32 %v1817_v52, %v4909_v60  ;;  %v1815_v18 = vmul.f32 0.5, %v1687_v26  ;;  %v1692_v42 = vadd.f32 1.0, %v3961_v6  ;;  %v5019_v8 = vadd.f32 %v4757_v43, %v4946_v13  ;;  %v1346_v37 = vpop.f32.mrf.mxu1 }
 0x174   : > { %v3965_v19 = vpop.eup %3964  ;;  %v2009_v14 = vmul.f32 %v1881_v9, %v4913_v24  ;;  %v1879_v45 = vmul.f32 0.5, %v1751_v46  ;;  %v1756_v53 = vadd.f32 1.0, %v3963_v7  ;;  %v5024_v38 = vadd.f32 %v4757_v43, %v4953_v2  ;;  %v5036_v33 = vpop.f32.mrf.mxu0 }
 0x175   : > { %v3967_v30 = vpop.eup %3966  ;;  %v3232_v60 = vpack.c.bf16 %v1945_v12, %v1944_v17  ;;  %v1943_v1 = vmul.f32 %v1815_v18, %v4918_v25  ;;  %v1820_v5 = vmul.f32 0.5, %v1692_v42  ;;  %v1690_v13 = vadd.f32 1.0, %v3965_v19  ;;  %v3699_v42 = vpop.f32.mrf.mxu1 }
 0x176   : > { %v3969_v3 = vpop.eup %3968  ;;  %v3392_v24 = vpack.c.bf16 %v2009_v14, %v2008_v59  ;;  %v2007_v58 = vmul.f32 %v1879_v45, %v4922_v16  ;;  %v1884_v61 = vmul.f32 0.5, %v1756_v53  ;;  %v1754_v62 = vadd.f32 1.0, %v3967_v30  ;;  %v3635_v7 = vpop.f32.mrf.mxu0 }
 0x177   : > { %v3971_v2 = vpop.eup %3970  ;;  %3464 = vst [vmem:[%s4337_s27 + $0xa8] sm:$0xff] %v3232_v60   ;;  %v3227_v28 = vpack.c.bf16 %v1943_v1, %v1942_v15  ;;  %v1948_v63 = vmul.f32 %v1820_v5, %v4928_v49  ;;  %v1818_v39 = vmul.f32 0.5, %v1690_v13  ;;  %v1693_v25 = vadd.f32 1.0, %v3969_v3 }
 0x178   : > { %v3973_v22 = vpop.eup %3972  ;;  %3496 = vst [vmem:[%s4337_s27 + $0x1a8] sm:$0xff] %v3392_v24   ;;  %v3387_v17 = vpack.c.bf16 %v2007_v58, %v2006_v0  ;;  %v2012_v34 = vmul.f32 %v1884_v61, %v4934_v41  ;;  %v1882_v27 = vmul.f32 0.5, %v1754_v62  ;;  %v1757_v57 = vadd.f32 1.0, %v3971_v2  ;;  %v1103_v5 = vpop.f32.mrf.mxu0 }
 0x179   : > { %v3975_v16 = vpop.eup %3974  ;;  %3463 = vst [vmem:[%s4337_s27 + $0xa0] sm:$0xff] %v3227_v28   ;;  %v1946_v59 = vmul.f32 %v1818_v39, %v4939_v32  ;;  %v1821_v21 = vmul.f32 0.5, %v1693_v25  ;;  %v1691_v40 = vadd.f32 1.0, %v3973_v22  ;;  %v1438_v49 = vmul.f32 0.5, %v5019_v8  ;;  %v1359_v24 = vpop.f32.mrf.mxu1 }
 0x17a   : > { %3495 = vst [vmem:[%s4337_s27 + $0x1a0] sm:$0xff] %v3387_v17   ;;  %v2010_v15 = vmul.f32 %v1882_v27, %v4944_v29  ;;  %v1885_v52 = vmul.f32 0.5, %v1757_v57  ;;  %v1755_v26 = vadd.f32 1.0, %v3975_v16  ;;  %v1502_v41 = vmul.f32 0.5, %v5024_v38 }
 0x17b   : > { %v1949_v6 = vmul.f32 %v1821_v21, %v4951_v51  ;;  %v1819_v0 = vmul.f32 0.5, %v1691_v40  ;;  %3980 = vtanh.f32 %v1438_v49  ;;  %v5047_v9 = vadd.f32 %v4757_v43, %v4974_v11 }
 0x17c   : > { %v2013_v32 = vmul.f32 %v1885_v52, %v4958_v10  ;;  %v1883_v46 = vmul.f32 0.5, %v1755_v26  ;;  %3982 = vtanh.f32 %v1502_v41  ;;  %v5052_v29 = vadd.f32 %v4757_v43, %v4980_v36 }
 0x17d   : > { %v3242_v12 = vpack.c.bf16 %v1949_v6, %v1948_v63  ;;  %v1947_v51 = vmul.f32 %v1819_v0, %v4965_v35  ;;  %v1441_v18 = vmul.f32 0.5, %v5047_v9  ;;  %v5058_v11 = vadd.f32 %v4757_v43, %v4988_v31 }
 0x17e   : > { %v3977_v10 = vpop.eup %3976  ;;  %v3402_v19 = vpack.c.bf16 %v2013_v32, %v2012_v34  ;;  %v2011_v14 = vmul.f32 %v1883_v46, %v4972_v54  ;;  %v1505_v36 = vmul.f32 0.5, %v5052_v29  ;;  %v5064_v45 = vadd.f32 %v4757_v43, %v4991_v47 }
 0x17f   : > { %v3979_v53 = vpop.eup %3978  ;;  %3466 = vst [vmem:[%s4337_s27 + $0xb8] sm:$0xff] %v3242_v12   ;;  %v3237_v35 = vpack.c.bf16 %v1947_v51, %v1946_v59  ;;  %v1696_v30 = vadd.f32 1.0, %v3977_v10  ;;  %3984 = vtanh.f32 %v1441_v18  ;;  %v1439_v31 = vmul.f32 0.5, %v5058_v11 }
 0x180   : > { %3498 = vst [vmem:[%s4337_s27 + $0x1b8] sm:$0xff] %v3402_v19   ;;  %v3397_v60 = vpack.c.bf16 %v2011_v14, %v2010_v15  ;;  %v1760_v1 = vadd.f32 1.0, %v3979_v53  ;;  %3986 = vtanh.f32 %v1505_v36  ;;  %v1503_v54 = vmul.f32 0.5, %v5064_v45 }
 0x181   : > { %3465 = vst [vmem:[%s4337_s27 + $0xb0] sm:$0xff] %v3237_v35   ;;  %v1824_v13 = vmul.f32 0.5, %v1696_v30  ;;  %3988 = vtanh.f32 %v1439_v31  ;;  %v5073_v47 = vadd.f32 %v4757_v43, %v4996_v23  ;;  %v5077_v3 = vadd.f32 %v4757_v43, %v5000_v44 }
 0x182   : > { %3497 = vst [vmem:[%s4337_s27 + $0x1b0] sm:$0xff] %v3397_v60   ;;  %v1888_v58 = vmul.f32 0.5, %v1760_v1  ;;  %3990 = vtanh.f32 %v1503_v54  ;;  %v5082_v61 = vadd.f32 %v4757_v43, %v5008_v20  ;;  %v5086_v62 = vadd.f32 %v4757_v43, %v5012_v50 }
 0x183   : > { %v5089_v2 = vmul.f32 %v1824_v13, %v4978_v48  ;;  %v1444_v23 = vmul.f32 0.5, %v5073_v47  ;;  %v1508_v44 = vmul.f32 0.5, %v5077_v3  ;;  %v5095_v28 = vadd.f32 %v4757_v43, %v5026_v4  ;;  %v3636_v48 = vpop.f32.mrf.mxu0 }
 0x184   : > { %v5098_v63 = vmul.f32 %v1888_v58, %v4984_v55  ;;  %v1442_v20 = vmul.f32 0.5, %v5082_v61  ;;  %v1506_v39 = vmul.f32 0.5, %v5086_v62  ;;  %v5104_v50 = vadd.f32 %v4757_v43, %v5029_v56  ;;  %v3700_v55 = vpop.f32.mrf.mxu1 }
 0x185   : > { %3992 = vtanh.f32 %v1444_v23  ;;  %v1445_v25 = vmul.f32 0.5, %v5095_v28  ;;  %v5109_v22 = vadd.f32 %v4757_v43, %v5036_v33  ;;  %v5112_v4 = vadd.f32 %v4757_v43, %v1346_v37  ;;  %v1106_v49 = vpop.f32.mrf.mxu0 }
 0x186   : > { %3994 = vtanh.f32 %v1508_v44  ;;  %v1509_v17 = vmul.f32 0.5, %v5104_v50  ;;  %v5116_v34 = vadd.f32 %v4757_v43, %v3635_v7  ;;  %v5119_v56 = vadd.f32 %v4757_v43, %v3699_v42  ;;  %v1362_v41 = vpop.f32.mrf.mxu1 }
 0x187   : > { %3996 = vtanh.f32 %v1442_v20  ;;  %v1443_v27 = vmul.f32 0.5, %v5109_v22  ;;  %v1507_v57 = vmul.f32 0.5, %v5112_v4  ;;  %v5124_v33 = vadd.f32 %v4757_v43, %v1103_v5  ;;  %v3639_v19 = vpop.f32.mrf.mxu0 }
 0x188   : > { %v3981_v16 = vpop.eup %3980  ;;  %3998 = vtanh.f32 %v1506_v39  ;;  %v1448_v59 = vmul.f32 0.5, %v5116_v34  ;;  %v1512_v21 = vmul.f32 0.5, %v5119_v56  ;;  %v5129_v40 = vadd.f32 %v4757_v43, %v1359_v24  ;;  %v3703_v30 = vpop.f32.mrf.mxu1 }
 0x189   : > { %v3983_v37 = vpop.eup %3982  ;;  %v1694_v15 = vadd.f32 1.0, %v3981_v16  ;;  %4000 = vtanh.f32 %v1445_v25  ;;  %v1446_v52 = vmul.f32 0.5, %v5124_v33  ;;  %v5133_v26 = vadd.f32 %v4757_v43, %v3636_v48 }
 0x18a   : > { %v1758_v6 = vadd.f32 1.0, %v3983_v37  ;;  %4002 = vtanh.f32 %v1509_v17  ;;  %v1510_v0 = vmul.f32 0.5, %v5129_v40  ;;  %v5137_v32 = vadd.f32 %v4757_v43, %v3700_v55  ;;  %v1119_v37 = vpop.f32.mrf.mxu0 }
 0x18b   : > { %v1822_v46 = vmul.f32 0.5, %v1694_v15  ;;  %4004 = vtanh.f32 %v1443_v27  ;;  %v1449_v7 = vmul.f32 0.5, %v5133_v26  ;;  %v5141_v12 = vadd.f32 %v4757_v43, %v1106_v49 }
 0x18c   : > { %v3985_v51 = vpop.eup %3984  ;;  %v1886_v18 = vmul.f32 0.5, %v1758_v6  ;;  %4006 = vtanh.f32 %v1507_v57  ;;  %v1513_v42 = vmul.f32 0.5, %v5137_v32  ;;  %v5145_v10 = vadd.f32 %v4757_v43, %v1362_v41  ;;  %v1375_v6 = vpop.f32.mrf.mxu1 }
 0x18d   : > { %v3987_v14 = vpop.eup %3986  ;;  %v1950_v36 = vmul.f32 %v1822_v46, %v5019_v8  ;;  %v1697_v53 = vadd.f32 1.0, %v3985_v51  ;;  %4008 = vtanh.f32 %v1448_v59  ;;  %v1447_v35 = vmul.f32 0.5, %v5141_v12 }
 0x18e   : > { %v3989_v31 = vpop.eup %3988  ;;  %v2014_v60 = vmul.f32 %v1886_v18, %v5024_v38  ;;  %v1761_v1 = vadd.f32 1.0, %v3987_v14  ;;  %4010 = vtanh.f32 %v1512_v21  ;;  %v1511_v54 = vmul.f32 0.5, %v5145_v10 }
 0x18f   : > { %v3991_v5 = vpop.eup %3990  ;;  %v1825_v13 = vmul.f32 0.5, %v1697_v53  ;;  %v1695_v24 = vadd.f32 1.0, %v3989_v31  ;;  %4012 = vtanh.f32 %v1446_v52  ;;  %v5152_v58 = vadd.f32 %v4757_v43, %v3639_v19  ;;  %v5175_v19 = vld [vmem:[%s5223_s2] ss:$0 sm:$0xff] }
 0x190   : > { %v1889_v8 = vmul.f32 0.5, %v1761_v1  ;;  %v1759_v23 = vadd.f32 1.0, %v3991_v5  ;;  %4014 = vtanh.f32 %v1510_v0  ;;  %v5155_v44 = vadd.f32 %v4757_v43, %v3703_v30 }
 0x191   : > { %v1953_v20 = vmul.f32 %v1825_v13, %v5047_v9  ;;  %v1823_v38 = vmul.f32 0.5, %v1695_v24  ;;  %4016 = vtanh.f32 %v1449_v7  ;;  %v1452_v39 = vmul.f32 0.5, %v5152_v58 }
 0x192   : > { %v3993_v48 = vpop.eup %3992  ;;  %v2017_v25 = vmul.f32 %v1889_v8, %v5052_v29  ;;  %v1887_v55 = vmul.f32 0.5, %v1759_v23  ;;  %4018 = vtanh.f32 %v1513_v42  ;;  %v1516_v17 = vmul.f32 0.5, %v5155_v44 }
 0x193   : > { %v3995_v27 = vpop.eup %3994  ;;  %v3252_v57 = vpack.c.bf16 %v1953_v20, %v5089_v2  ;;  %v1951_v16 = vmul.f32 %v1823_v38, %v5058_v11  ;;  %v1700_v59 = vadd.f32 1.0, %v3993_v48  ;;  %4020 = vtanh.f32 %v1447_v35 }
 0x194   : > { %v3997_v9 = vpop.eup %3996  ;;  %v3412_v21 = vpack.c.bf16 %v2017_v25, %v5098_v63  ;;  %v2015_v49 = vmul.f32 %v1887_v55, %v5064_v45  ;;  %v1764_v29 = vadd.f32 1.0, %v3995_v27  ;;  %4022 = vtanh.f32 %v1511_v54 }
 0x195   : > { %v3999_v15 = vpop.eup %3998  ;;  %3468 = vst [vmem:[%s4337_s27 + $0xc8] sm:$0xff] %v3252_v57   ;;  %v3247_v52 = vpack.c.bf16 %v1951_v16, %v1950_v36  ;;  %v1828_v41 = vmul.f32 0.5, %v1700_v59  ;;  %v1698_v2 = vadd.f32 1.0, %v3997_v9  ;;  %4024 = vtanh.f32 %v1452_v39 }
 0x196   : > { %v4001_v11 = vpop.eup %4000  ;;  %3500 = vst [vmem:[%s4337_s27 + $0x1c8] sm:$0xff] %v3412_v21   ;;  %v3407_v0 = vpack.c.bf16 %v2015_v49, %v2014_v60  ;;  %v1892_v46 = vmul.f32 0.5, %v1764_v29  ;;  %v1762_v7 = vadd.f32 1.0, %v3999_v15  ;;  %v5169_v45 = vadd.f32 %v4757_v43, %v1119_v37  ;;  %v3640_v21 = vpop.f32.mrf.mxu0 }
 0x197   : > { %v4003_v51 = vpop.eup %4002  ;;  %3467 = vst [vmem:[%s4337_s27 + $0xc0] sm:$0xff] %v3247_v52   ;;  %v1701_v63 = vadd.f32 1.0, %v4001_v11  ;;  %4026 = vtanh.f32 %v1516_v17  ;;  %v5178_v14 = vadd.f32 %v5175_v19, %v1375_v6  ;;  %v1956_v53 = vmul.f32 %v1828_v41, %v5073_v47  ;;  %v3704_v15 = vpop.f32.mrf.mxu1 }
 0x198   : > { %v4005_v18 = vpop.eup %4004  ;;  %3499 = vst [vmem:[%s4337_s27 + $0x1c0] sm:$0xff] %v3407_v0   ;;  %v1765_v42 = vadd.f32 1.0, %v4003_v51  ;;  %v1826_v35 = vmul.f32 0.5, %v1698_v2  ;;  %v2020_v60 = vmul.f32 %v1892_v46, %v5077_v3  ;;  %v1890_v1 = vmul.f32 0.5, %v1762_v7 }
 0x199   : > { %v4007_v36 = vpop.eup %4006  ;;  %v1829_v30 = vmul.f32 0.5, %v1701_v63  ;;  %v1699_v31 = vadd.f32 1.0, %v4005_v18  ;;  %v1450_v20 = vmul.f32 0.5, %v5169_v45  ;;  %v1514_v25 = vmul.f32 0.5, %v5178_v14 }
 0x19a   : > { %v4009_v43 = vpop.eup %4008  ;;  %v1893_v54 = vmul.f32 0.5, %v1765_v42  ;;  %v1763_v5 = vadd.f32 1.0, %v4007_v36  ;;  %v1954_v3 = vmul.f32 %v1826_v35, %v5082_v61  ;;  %v2018_v16 = vmul.f32 %v1890_v1, %v5086_v62  ;;  %v1122_v1 = vpop.f32.mrf.mxu0 }
 0x19b   : > { %v4011_v13 = vpop.eup %4010  ;;  %v1957_v24 = vmul.f32 %v1829_v30, %v5095_v28  ;;  %v1827_v8 = vmul.f32 0.5, %v1699_v31  ;;  %v1704_v23 = vadd.f32 1.0, %v4009_v43  ;;  %4028 = vtanh.f32 %v1450_v20 }
 0x19c   : > { %v4013_v38 = vpop.eup %4012  ;;  %v2021_v39 = vmul.f32 %v1893_v54, %v5104_v50  ;;  %v1891_v47 = vmul.f32 0.5, %v1763_v5  ;;  %v1768_v48 = vadd.f32 1.0, %v4011_v13  ;;  %4030 = vtanh.f32 %v1514_v25  ;;  %v1378_v54 = vpop.f32.mrf.mxu1 }
 0x19d   : > { %v4015_v55 = vpop.eup %4014  ;;  %v3262_v17 = vpack.c.bf16 %v1957_v24, %v1956_v53  ;;  %v1955_v27 = vmul.f32 %v1827_v8, %v5109_v22  ;;  %v1702_v28 = vadd.f32 1.0, %v4013_v38  ;;  %v1832_v37 = vmul.f32 0.5, %v1704_v23 }
 0x19e   : > { %v4017_v57 = vpop.eup %4016  ;;  %v3422_v59 = vpack.c.bf16 %v2021_v39, %v2020_v60  ;;  %v2019_v9 = vmul.f32 %v1891_v47, %v5112_v4  ;;  %v1766_v50 = vadd.f32 1.0, %v4015_v55  ;;  %v1896_v41 = vmul.f32 0.5, %v1768_v48 }
 0x19f   : > { %v4019_v49 = vpop.eup %4018  ;;  %3470 = vst [vmem:[%s4337_s27 + $0xd8] sm:$0xff] %v3262_v17   ;;  %v3257_v29 = vpack.c.bf16 %v1955_v27, %v1954_v3  ;;  %v1705_v61 = vadd.f32 1.0, %v4017_v57  ;;  %v1830_v4 = vmul.f32 0.5, %v1702_v28  ;;  %v1131_v0 = vadd.f32 %v5175_v19, %v3640_v21 }
 0x1a0   : > { %v4021_v22 = vpop.eup %4020  ;;  %3502 = vst [vmem:[%s4337_s27 + $0x1d8] sm:$0xff] %v3422_v59   ;;  %v3417_v52 = vpack.c.bf16 %v2019_v9, %v2018_v16  ;;  %v1769_v2 = vadd.f32 1.0, %v4019_v49  ;;  %v1894_v46 = vmul.f32 0.5, %v1766_v50  ;;  %v1387_v63 = vadd.f32 %v5175_v19, %v3704_v15 }
 0x1a1   : > { %v4023_v62 = vpop.eup %4022  ;;  %3469 = vst [vmem:[%s4337_s27 + $0xd0] sm:$0xff] %v3257_v29   ;;  %v1833_v6 = vmul.f32 0.5, %v1705_v61  ;;  %v1703_v11 = vadd.f32 1.0, %v4021_v22  ;;  %v1960_v18 = vmul.f32 %v1832_v37, %v5116_v34  ;;  %v1453_v53 = vmul.f32 0.5, %v1131_v0 }
 0x1a2   : > { %3501 = vst [vmem:[%s4337_s27 + $0x1d0] sm:$0xff] %v3417_v52   ;;  %v1897_v7 = vmul.f32 0.5, %v1769_v2  ;;  %v1767_v51 = vadd.f32 1.0, %v4023_v62  ;;  %v4025_v35 = vpop.eup %4024  ;;  %v2024_v30 = vmul.f32 %v1896_v41, %v5119_v56  ;;  %v1517_v60 = vmul.f32 0.5, %v1387_v63 }
 0x1a3   : > { %v1961_v42 = vmul.f32 %v1833_v6, %v5133_v26  ;;  %v1831_v36 = vmul.f32 0.5, %v1703_v11  ;;  %v1958_v13 = vmul.f32 %v1830_v4, %v5124_v33  ;;  %4032 = vtanh.f32 %v1453_v53 }
 0x1a4   : > { %v2025_v31 = vmul.f32 %v1897_v7, %v5137_v32  ;;  %v1895_v43 = vmul.f32 0.5, %v1767_v51  ;;  %v4027_v5 = vpop.eup %4026  ;;  %v2022_v24 = vmul.f32 %v1894_v46, %v5129_v40  ;;  %4034 = vtanh.f32 %v1517_v60 }
 0x1a5   : > { %v3272_v34 = vpack.c.bf16 %v1961_v42, %v1960_v18  ;;  %v1959_v26 = vmul.f32 %v1831_v36, %v5141_v12  ;;  %v1123_v23 = vadd.f32 %v5175_v19, %v1122_v1  ;;  %v1379_v20 = vadd.f32 %v5175_v19, %v1378_v54 }
 0x1a6   : > { %v3432_v8 = vpack.c.bf16 %v2025_v31, %v2024_v30  ;;  %v2023_v56 = vmul.f32 %v1895_v43, %v5145_v10  ;;  %v1708_v47 = vadd.f32 1.0, %v4025_v35  ;;  %v1772_v48 = vadd.f32 1.0, %v4027_v5 }
 0x1a7   : > { %3472 = vst [vmem:[%s4337_s27 + $0xe8] sm:$0xff] %v3272_v34   ;;  %v3267_v32 = vpack.c.bf16 %v1959_v26, %v1958_v13  ;;  %v1451_v33 = vmul.f32 0.5, %v1123_v23  ;;  %v1515_v39 = vmul.f32 0.5, %v1379_v20 }
 0x1a8   : > { %3504 = vst [vmem:[%s4337_s27 + $0x1e8] sm:$0xff] %v3432_v8   ;;  %v3427_v38 = vpack.c.bf16 %v2023_v56, %v2022_v24  ;;  %v4029_v12 = vpop.eup %4028  ;;  %v1836_v55 = vmul.f32 0.5, %v1708_v47  ;;  %v1900_v17 = vmul.f32 0.5, %v1772_v48 }
 0x1a9   : > { %3471 = vst [vmem:[%s4337_s27 + $0xe0] sm:$0xff] %v3267_v32   ;;  %4036 = vtanh.f32 %v1451_v33  ;;  %v4031_v40 = vpop.eup %4030  ;;  %v1706_v28 = vadd.f32 1.0, %v4029_v12 }
 0x1aa   : > { %3503 = vst [vmem:[%s4337_s27 + $0x1e0] sm:$0xff] %v3427_v38   ;;  %4038 = vtanh.f32 %v1515_v39  ;;  %v1770_v57 = vadd.f32 1.0, %v4031_v40  ;;  %v1964_v59 = vmul.f32 %v1836_v55, %v5152_v58  ;;  %v2028_v21 = vmul.f32 %v1900_v17, %v5155_v44 }
 0x1ab   : > { %v1834_v37 = vmul.f32 0.5, %v1706_v28 }
 0x1ac   : > { %v1898_v22 = vmul.f32 0.5, %v1770_v57 }
 0x1ad   : > { %v1962_v58 = vmul.f32 %v1834_v37, %v5169_v45 }
 0x1ae   : > { %v2026_v6 = vmul.f32 %v1898_v22, %v5178_v14 }
 0x1b0   : > { %v4033_v10 = vpop.eup %4032 }
 0x1b1   : > { %v4035_v25 = vpop.eup %4034  ;;  %v1709_v3 = vadd.f32 1.0, %v4033_v10 }
 0x1b2   : > { %v1773_v27 = vadd.f32 1.0, %v4035_v25 }
 0x1b3   : > { %v1837_v19 = vmul.f32 0.5, %v1709_v3 }
 0x1b4   : > { %v1901_v16 = vmul.f32 0.5, %v1773_v27 }
 0x1b5   : > { %v1965_v9 = vmul.f32 %v1837_v19, %v1131_v0 }
 0x1b6   : > { %v4037_v50 = vpop.eup %4036  ;;  %v2029_v49 = vmul.f32 %v1901_v16, %v1387_v63 }
 0x1b7   : > { %v4039_v29 = vpop.eup %4038  ;;  %v3282_v61 = vpack.c.bf16 %v1965_v9, %v1964_v59  ;;  %v1707_v15 = vadd.f32 1.0, %v4037_v50 }
 0x1b8   : > { %v3442_v52 = vpack.c.bf16 %v2029_v49, %v2028_v21  ;;  %v1771_v41 = vadd.f32 1.0, %v4039_v29 }
 0x1b9   : > { %3474 = vst [vmem:[%s4337_s27 + $0xf8] sm:$0xff] %v3282_v61   ;;  %v1835_v2 = vmul.f32 0.5, %v1707_v15 }
 0x1ba   : > { %3506 = vst [vmem:[%s4337_s27 + $0x1f8] sm:$0xff] %v3442_v52   ;;  %v1899_v62 = vmul.f32 0.5, %v1771_v41 }
 0x1bb   : > { %v1963_v4 = vmul.f32 %v1835_v2, %v1123_v23 }
 0x1bc   : > { %v2027_v44 = vmul.f32 %v1899_v62, %v1379_v20 }
 0x1bd   : > { %v3277_v11 = vpack.c.bf16 %v1963_v4, %v1962_v58 }
 0x1be   : > { %v3437_v0 = vpack.c.bf16 %v2027_v44, %v2026_v6 }
 0x1bf   : > { %3473 = vst [vmem:[%s4337_s27 + $0xf0] sm:$0xff] %v3277_v11  }
 0x1c0   : > { %3505 = vst [vmem:[%s4337_s27 + $0x1f0] sm:$0xff] %v3437_v0  }
 0x1c1 PF: > { %s13_s12 = sadd.s32 1, %s4048_s12  }
 0x1c2   : > { %p10_p4 = scmp.ge.s32.totalorder %s13_s12, 4  }
 0x1c4   :  { %12 = sbr.rel (!%p10_p4) target bundleno = 1 (0x1), region = 62 }

// kernel: detection_model_forward.6
= control target key start
LH: loop header
LB: loop body
LE: loop exit
PB: predicated region body
PF: predicated region fallthrough
CT: control target
= control target key end

     0   :  { %vm379_vm0 = vcmask 1043456   ;;  %vm282_vm1 = vcmask 588800   ;;  %s2655_s1 = inlined_call_operand.vmem [shape: bf16[72,128], index: 1, kind: input, shape index: {}]   ;;  %s2656_s0 = inlined_call_operand.vmem [shape: bf16[512,72], index: 0, kind: input, shape index: {}]   ;;  %s2657_s2 = inlined_call_operand.vmem [shape: f32[1,128], index: 2, kind: input, shape index: {}]   ;;  %s2658_s3 = inlined_call_operand.vmem [shape: bf16[512,128], index: 3, kind: output, shape index: {}]  }
   0x1   :  { %v1828_v0 = vld [vmem:[%s2655_s1 + $0x20] ss:$0 sps:$4 sm:$0xff]   ;;  %v1829_v1 = vld [vmem:[%s2655_s1 + $0x18] sm:$0xff]   ;;  %v1830_v3 = vld [vmem:[%s2655_s1 + $0x10] sm:$0xff]  }
   0x2   :  { %1826 = vmatprep.subr.msk.bf16.mxu0 %vm379_vm0, %v1828_v0  ;;  %1827 = vmatprep.subr.msk.bf16.mxu1 %vm379_vm0, %v1828_v0  ;;  %v381_v2 = vsel %vm379_vm0, %v1828_v0, 0  ;;  %v1833_v4 = vld [vmem:[%s2656_s0] sm:$0xff]   ;;  %v1831_v6 = vld [vmem:[%s2655_s1 + $0x8] sm:$0xff]   ;;  %v1837_v10 = vld [vmem:[%s2656_s0 + $0x10] sm:$0xff]  }
   0x3   :  { %1743 = vmatpush3.bf16.msra.mxu0 %v381_v2  ;;  %1821 = vmatpush3.bf16.msra.mxu1 %v381_v2  ;;  %v1834_v5 = vld [vmem:[%s2656_s0 + $0x80] sm:$0xff]   ;;  %v1835_v8 = vld [vmem:[%s2656_s0 + $0x8] sm:$0xff]   ;;  %v1838_v11 = vld [vmem:[%s2656_s0 + $0x90] sm:$0xff]  }
   0x4   :  { %1744 = vmatprep.subr.bf16.mxu0 %v1829_v1  ;;  %1817 = vmatprep.subr.bf16.mxu1 %v1829_v1  ;;  %v1832_v7 = vld [vmem:[%s2655_s1] sm:$0xff]   ;;  %v1836_v9 = vld [vmem:[%s2656_s0 + $0x88] sm:$0xff]   ;;  %v1839_v12 = vld [vmem:[%s2656_s0 + $0x18] sm:$0xff]  }
   0x5   :  { %1752 = vmatprep.mubr.msk.bf16.mxu0 %vm282_vm1, %v1833_v4  ;;  %1784 = vmatprep.mubr.msk.bf16.mxu1 %vm282_vm1, %v1834_v5  ;;  %v1840_v13 = vld [vmem:[%s2656_s0 + $0x98] sm:$0xff]   ;;  %v1841_v14 = vld [vmem:[%s2656_s0 + $0x20] sm:$0xff]   ;;  %v1843_v16 = vld [vmem:[%s2656_s0 + $0x28] sm:$0xff]  }
   0x6   :  { %v1842_v15 = vld [vmem:[%s2656_s0 + $0xa0] sm:$0xff]   ;;  %v1844_v17 = vld [vmem:[%s2656_s0 + $0xa8] sm:$0xff]   ;;  %v1845_v18 = vld [vmem:[%s2656_s0 + $0x30] sm:$0xff]  }
   0x7   :  { %1745 = vmatpush3.bf16.msra.mxu0 %v1829_v1  ;;  %1822 = vmatpush3.bf16.msra.mxu1 %v1829_v1  ;;  %v1846_v19 = vld [vmem:[%s2656_s0 + $0xb0] sm:$0xff]   ;;  %v1847_v20 = vld [vmem:[%s2656_s0 + $0x38] sm:$0xff]   ;;  %v1849_v22 = vld [vmem:[%s2656_s0 + $0x40] sm:$0xff]  }
   0x8   :  { %1746 = vmatprep.subr.bf16.mxu0 %v1830_v3  ;;  %1818 = vmatprep.subr.bf16.mxu1 %v1830_v3  ;;  %v1848_v21 = vld [vmem:[%s2656_s0 + $0xb8] sm:$0xff]   ;;  %v1850_v23 = vld [vmem:[%s2656_s0 + $0xc0] sm:$0xff]   ;;  %v1851_v24 = vld [vmem:[%s2656_s0 + $0x48] sm:$0xff]  }
   0x9   :  { %v1852_v25 = vld [vmem:[%s2656_s0 + $0xc8] sm:$0xff]   ;;  %v1853_v26 = vld [vmem:[%s2656_s0 + $0x50] sm:$0xff]   ;;  %v1855_v28 = vld [vmem:[%s2656_s0 + $0x58] sm:$0xff]  }
   0xa   :  { %v1854_v27 = vld [vmem:[%s2656_s0 + $0xd0] sm:$0xff]   ;;  %v1856_v29 = vld [vmem:[%s2656_s0 + $0xd8] sm:$0xff]   ;;  %v1857_v30 = vld [vmem:[%s2656_s0 + $0x60] sm:$0xff]  }
   0xb   :  { %1747 = vmatpush3.bf16.msra.mxu0 %v1830_v3  ;;  %1823 = vmatpush3.bf16.msra.mxu1 %v1830_v3  ;;  %v1858_v31 = vld [vmem:[%s2656_s0 + $0xe0] sm:$0xff]   ;;  %v1859_v32 = vld [vmem:[%s2656_s0 + $0x68] sm:$0xff]   ;;  %v1861_v34 = vld [vmem:[%s2656_s0 + $0x70] sm:$0xff]  }
   0xc   :  { %1748 = vmatprep.subr.bf16.mxu0 %v1831_v6  ;;  %1819 = vmatprep.subr.bf16.mxu1 %v1831_v6  ;;  %v1860_v33 = vld [vmem:[%s2656_s0 + $0xe8] sm:$0xff]   ;;  %v1862_v35 = vld [vmem:[%s2656_s0 + $0xf0] sm:$0xff]   ;;  %v1863_v36 = vld [vmem:[%s2656_s0 + $0x78] sm:$0xff]  }
   0xd   :  { %v1864_v37 = vld [vmem:[%s2656_s0 + $0xf8] sm:$0xff]   ;;  %v2159_v38 = vld [vmem:[%s2657_s2] ss:$0 sm:$0xff] }
   0xf   :  { %1749 = vmatpush3.bf16.msra.mxu0 %v1831_v6  ;;  %1824 = vmatpush3.bf16.msra.mxu1 %v1831_v6 }
  0x10   :  { %1750 = vmatprep.subr.bf16.mxu0 %v1832_v7  ;;  %1820 = vmatprep.subr.bf16.mxu1 %v1832_v7 }
  0x13   :  { %1751 = vmatpush3.bf16.msra.mxu0 %v1832_v7  ;;  %1825 = vmatpush3.bf16.msra.mxu1 %v1832_v7 }
  0x16   :  { %1753 = vmatmul.mubr.msk.bf16.vlgmr.msra.gmra.mxu0 %vm282_vm1, %v1835_v8  ;;  %1785 = vmatmul.mubr.msk.bf16.vlgmr.msra.gmra.mxu1 %vm282_vm1, %v1836_v9 }
  0x17   :  { %1756 = vmatprep.mubr.msk.bf16.mxu0 %vm282_vm1, %v1837_v10  ;;  %1788 = vmatprep.mubr.msk.bf16.mxu1 %vm282_vm1, %v1838_v11 }
  0x1e   :  { %1757 = vmatmul.mubr.msk.bf16.gmra.mxu0 %vm282_vm1, %v1839_v12  ;;  %1789 = vmatmul.mubr.msk.bf16.gmra.mxu1 %vm282_vm1, %v1840_v13 }
  0x1f   :  { %1760 = vmatprep.mubr.msk.bf16.mxu0 %vm282_vm1, %v1841_v14  ;;  %1792 = vmatprep.mubr.msk.bf16.mxu1 %vm282_vm1, %v1842_v15 }
  0x26   :  { %1761 = vmatmul.mubr.msk.bf16.gmra.mxu0 %vm282_vm1, %v1843_v16  ;;  %1793 = vmatmul.mubr.msk.bf16.gmra.mxu1 %vm282_vm1, %v1844_v17 }
  0x27   :  { %1764 = vmatprep.mubr.msk.bf16.mxu0 %vm282_vm1, %v1845_v18  ;;  %1796 = vmatprep.mubr.msk.bf16.mxu1 %vm282_vm1, %v1846_v19 }
  0x2e   :  { %1765 = vmatmul.mubr.msk.bf16.gmra.mxu0 %vm282_vm1, %v1847_v20  ;;  %1797 = vmatmul.mubr.msk.bf16.gmra.mxu1 %vm282_vm1, %v1848_v21 }
  0x2f   :  { %1768 = vmatprep.mubr.msk.bf16.mxu0 %vm282_vm1, %v1849_v22  ;;  %1800 = vmatprep.mubr.msk.bf16.mxu1 %vm282_vm1, %v1850_v23 }
  0x36   :  { %1769 = vmatmul.mubr.msk.bf16.gmra.mxu0 %vm282_vm1, %v1851_v24  ;;  %1801 = vmatmul.mubr.msk.bf16.gmra.mxu1 %vm282_vm1, %v1852_v25 }
  0x37   :  { %1772 = vmatprep.mubr.msk.bf16.mxu0 %vm282_vm1, %v1853_v26  ;;  %1804 = vmatprep.mubr.msk.bf16.mxu1 %vm282_vm1, %v1854_v27 }
  0x3e   :  { %1773 = vmatmul.mubr.msk.bf16.gmra.mxu0 %vm282_vm1, %v1855_v28  ;;  %1805 = vmatmul.mubr.msk.bf16.gmra.mxu1 %vm282_vm1, %v1856_v29 }
  0x3f   :  { %1776 = vmatprep.mubr.msk.bf16.mxu0 %vm282_vm1, %v1857_v30  ;;  %1808 = vmatprep.mubr.msk.bf16.mxu1 %vm282_vm1, %v1858_v31 }
  0x46   :  { %1777 = vmatmul.mubr.msk.bf16.gmra.mxu0 %vm282_vm1, %v1859_v32  ;;  %1809 = vmatmul.mubr.msk.bf16.gmra.mxu1 %vm282_vm1, %v1860_v33 }
  0x47   :  { %1780 = vmatprep.mubr.msk.bf16.mxu0 %vm282_vm1, %v1861_v34  ;;  %1812 = vmatprep.mubr.msk.bf16.mxu1 %vm282_vm1, %v1862_v35 }
  0x4e   :  { %1781 = vmatmul.mubr.msk.bf16.gmra.mxu0 %vm282_vm1, %v1863_v36  ;;  %1813 = vmatmul.mubr.msk.bf16.gmra.mxu1 %vm282_vm1, %v1864_v37 }
  0xd6   :  { %v1754_v39 = vpop.f32.mrf.mxu0  ;;  %v1786_v40 = vpop.f32.mrf.mxu1 }
  0xd7   :  { %v2162_v41 = vadd.f32 %v1754_v39, %v2159_v38  ;;  %v2165_v42 = vadd.f32 %v1786_v40, %v2159_v38 }
  0xd8   :  { %v417_v43 = vpop.f32.mrf.mxu0  ;;  %v545_v44 = vpop.f32.mrf.mxu1 }
  0xd9   :  { %v674_v45 = vmul.f32 0.5, %v2162_v41  ;;  %v706_v46 = vmul.f32 0.5, %v2165_v42  ;;  %v2170_v47 = vadd.f32 %v2159_v38, %v417_v43  ;;  %v2173_v48 = vadd.f32 %v2159_v38, %v545_v44 }
  0xda   :  { %v1755_v49 = vpop.f32.mrf.mxu0  ;;  %v1787_v50 = vpop.f32.mrf.mxu1 }
  0xdb   :  { %1865 = vtanh.f32 %v674_v45  ;;  %v672_v51 = vmul.f32 0.5, %v2170_v47  ;;  %v704_v52 = vmul.f32 0.5, %v2173_v48  ;;  %v2178_v53 = vadd.f32 %v1755_v49, %v2159_v38 }
  0xdc   :  { %1867 = vtanh.f32 %v706_v46  ;;  %v2181_v54 = vadd.f32 %v1787_v50, %v2159_v38  ;;  %v420_v55 = vpop.f32.mrf.mxu0  ;;  %v548_v56 = vpop.f32.mrf.mxu1 }
  0xdd   :  { %1869 = vtanh.f32 %v672_v51  ;;  %v675_v57 = vmul.f32 0.5, %v2178_v53  ;;  %v2185_v58 = vadd.f32 %v2159_v38, %v420_v55  ;;  %v2188_v59 = vadd.f32 %v2159_v38, %v548_v56 }
  0xde   :  { %1871 = vtanh.f32 %v704_v52  ;;  %v707_v60 = vmul.f32 0.5, %v2181_v54  ;;  %v1758_v61 = vpop.f32.mrf.mxu0  ;;  %v1790_v62 = vpop.f32.mrf.mxu1 }
  0xdf   :  { %1873 = vtanh.f32 %v675_v57  ;;  %v673_v63 = vmul.f32 0.5, %v2185_v58  ;;  %v705_v0 = vmul.f32 0.5, %v2188_v59  ;;  %v2194_v1 = vadd.f32 %v1758_v61, %v2159_v38 }
  0xe0   :  { %1875 = vtanh.f32 %v707_v60  ;;  %v2197_v2 = vadd.f32 %v1790_v62, %v2159_v38  ;;  %v433_v3 = vpop.f32.mrf.mxu0  ;;  %v561_v4 = vpop.f32.mrf.mxu1 }
  0xe1   :  { %1877 = vtanh.f32 %v673_v63  ;;  %v678_v5 = vmul.f32 0.5, %v2194_v1  ;;  %v2201_v6 = vadd.f32 %v2159_v38, %v433_v3  ;;  %v2204_v7 = vadd.f32 %v2159_v38, %v561_v4 }
  0xe2   :  { %1879 = vtanh.f32 %v705_v0  ;;  %v710_v8 = vmul.f32 0.5, %v2197_v2  ;;  %v1759_v9 = vpop.f32.mrf.mxu0  ;;  %v1791_v10 = vpop.f32.mrf.mxu1 }
  0xe3   :  { %1881 = vtanh.f32 %v678_v5  ;;  %v676_v11 = vmul.f32 0.5, %v2201_v6  ;;  %v708_v12 = vmul.f32 0.5, %v2204_v7  ;;  %v2210_v13 = vadd.f32 %v1759_v9, %v2159_v38 }
  0xe4   :  { %1883 = vtanh.f32 %v710_v8  ;;  %v2213_v14 = vadd.f32 %v1791_v10, %v2159_v38  ;;  %v436_v15 = vpop.f32.mrf.mxu0  ;;  %v564_v16 = vpop.f32.mrf.mxu1 }
  0xe5   :  { %1885 = vtanh.f32 %v676_v11  ;;  %v679_v17 = vmul.f32 0.5, %v2210_v13  ;;  %v2217_v18 = vadd.f32 %v2159_v38, %v436_v15  ;;  %v2220_v19 = vadd.f32 %v2159_v38, %v564_v16 }
  0xe6   :  { %1887 = vtanh.f32 %v708_v12  ;;  %v711_v20 = vmul.f32 0.5, %v2213_v14  ;;  %v1762_v21 = vpop.f32.mrf.mxu0  ;;  %v1794_v22 = vpop.f32.mrf.mxu1 }
  0xe7   :  { %1889 = vtanh.f32 %v679_v17  ;;  %v677_v23 = vmul.f32 0.5, %v2217_v18  ;;  %v709_v24 = vmul.f32 0.5, %v2220_v19  ;;  %v2226_v25 = vadd.f32 %v1762_v21, %v2159_v38 }
  0xe8   :  { %v1866_v26 = vpop.eup %1865  ;;  %1891 = vtanh.f32 %v711_v20  ;;  %v2229_v27 = vadd.f32 %v1794_v22, %v2159_v38  ;;  %v449_v28 = vpop.f32.mrf.mxu0 }
  0xe9   :  { %v577_v29 = vpop.f32.mrf.mxu1  ;;  %v1868_v30 = vpop.eup %1867  ;;  %v802_v31 = vadd.f32 1.0, %v1866_v26  ;;  %1893 = vtanh.f32 %v677_v23  ;;  %v682_v32 = vmul.f32 0.5, %v2226_v25  ;;  %v2233_v33 = vadd.f32 %v2159_v38, %v449_v28 }
  0xea   :  { %v1870_v34 = vpop.eup %1869  ;;  %v834_v35 = vadd.f32 1.0, %v1868_v30  ;;  %1895 = vtanh.f32 %v709_v24  ;;  %v714_v36 = vmul.f32 0.5, %v2229_v27  ;;  %v2237_v37 = vadd.f32 %v2159_v38, %v577_v29  ;;  %v1763_v39 = vpop.f32.mrf.mxu0 }
  0xeb   :  { %v1795_v40 = vpop.f32.mrf.mxu1  ;;  %v1872_v43 = vpop.eup %1871  ;;  %v866_v44 = vmul.f32 0.5, %v802_v31  ;;  %v800_v45 = vadd.f32 1.0, %v1870_v34  ;;  %1897 = vtanh.f32 %v682_v32  ;;  %v680_v46 = vmul.f32 0.5, %v2233_v33 }
  0xec   :  { %v1874_v49 = vpop.eup %1873  ;;  %v898_v50 = vmul.f32 0.5, %v834_v35  ;;  %v832_v51 = vadd.f32 1.0, %v1872_v43  ;;  %1899 = vtanh.f32 %v714_v36  ;;  %v712_v52 = vmul.f32 0.5, %v2237_v37  ;;  %v2241_v55 = vpop.f32.mrf.mxu0 }
  0xed   :  { %v2243_v56 = vpop.f32.mrf.mxu1  ;;  %v1876_v57 = vpop.eup %1875  ;;  %v930_v60 = vmul.f32 %v866_v44, %v2162_v41  ;;  %v864_v61 = vmul.f32 0.5, %v800_v45  ;;  %v803_v62 = vadd.f32 1.0, %v1874_v49  ;;  %1901 = vtanh.f32 %v680_v46 }
  0xee   :  { %v1878_v63 = vpop.eup %1877  ;;  %v962_v0 = vmul.f32 %v898_v50, %v2165_v42  ;;  %v896_v3 = vmul.f32 0.5, %v832_v51  ;;  %v835_v4 = vadd.f32 1.0, %v1876_v57  ;;  %1903 = vtanh.f32 %v712_v52  ;;  %v2247_v5 = vpop.f32.mrf.mxu0 }
  0xef   :  { %v2249_v8 = vpop.f32.mrf.mxu1  ;;  %v1880_v9 = vpop.eup %1879  ;;  %v928_v10 = vmul.f32 %v864_v61, %v2170_v47  ;;  %v867_v11 = vmul.f32 0.5, %v803_v62  ;;  %v801_v12 = vadd.f32 1.0, %v1878_v63  ;;  %v2253_v41 = vadd.f32 %v1763_v39, %v2159_v38 }
  0xf0   :  { %v1882_v15 = vpop.eup %1881  ;;  %v960_v16 = vmul.f32 %v896_v3, %v2173_v48  ;;  %v899_v17 = vmul.f32 0.5, %v835_v4  ;;  %v833_v42 = vadd.f32 1.0, %v1880_v9  ;;  %v2257_v20 = vadd.f32 %v1795_v40, %v2159_v38  ;;  %v2259_v21 = vpop.f32.mrf.mxu0 }
  0xf1   :  { %v2261_v22 = vpop.f32.mrf.mxu1  ;;  %v1884_v23 = vpop.eup %1883  ;;  %v931_v47 = vmul.f32 %v867_v11, %v2178_v53  ;;  %v865_v24 = vmul.f32 0.5, %v801_v12  ;;  %v806_v26 = vadd.f32 1.0, %v1882_v15  ;;  %v683_v28 = vmul.f32 0.5, %v2253_v41 }
  0xf2   :  { %v1886_v29 = vpop.eup %1885  ;;  %v963_v30 = vmul.f32 %v899_v17, %v2181_v54  ;;  %v897_v48 = vmul.f32 0.5, %v833_v42  ;;  %v838_v31 = vadd.f32 1.0, %v1884_v23  ;;  %v715_v32 = vmul.f32 0.5, %v2257_v20  ;;  %v2267_v34 = vpop.f32.mrf.mxu0 }
  0xf3   :  { %v2269_v35 = vpop.f32.mrf.mxu1  ;;  %v1888_v36 = vpop.eup %1887  ;;  %v1522_v39 = vpack.c.bf16 %v931_v47, %v930_v60  ;;  %v929_v40 = vmul.f32 %v865_v24, %v2185_v58  ;;  %v870_v53 = vmul.f32 0.5, %v806_v26  ;;  %v804_v43 = vadd.f32 1.0, %v1886_v29 }
  0xf4   :  { %v1890_v44 = vpop.eup %1889  ;;  %v1602_v45 = vpack.c.bf16 %v963_v30, %v962_v0  ;;  %v961_v46 = vmul.f32 %v897_v48, %v2188_v59  ;;  %v902_v49 = vmul.f32 0.5, %v838_v31  ;;  %v836_v54 = vadd.f32 1.0, %v1888_v36  ;;  %v2273_v50 = vpop.f32.mrf.mxu0 }
  0xf5   :  { %v2275_v51 = vpop.f32.mrf.mxu1  ;;  %v1892_v52 = vpop.eup %1891  ;;  %1674 = vst [vmem:[%s2658_s3 + $0x8] sm:$0xff] %v1522_v39   ;;  %v1517_v57 = vpack.c.bf16 %v929_v40, %v928_v10  ;;  %v934_v58 = vmul.f32 %v870_v53, %v2194_v1  ;;  %v868_v60 = vmul.f32 0.5, %v804_v43  ;;  %v807_v61 = vadd.f32 1.0, %v1890_v44 }
  0xf6   :  { %v1894_v62 = vpop.eup %1893  ;;  %1690 = vst [vmem:[%s2658_s3 + $0x88] sm:$0xff] %v1602_v45   ;;  %v1597_v59 = vpack.c.bf16 %v961_v46, %v960_v16  ;;  %v966_v63 = vmul.f32 %v902_v49, %v2197_v2  ;;  %v900_v0 = vmul.f32 0.5, %v836_v54  ;;  %v839_v3 = vadd.f32 1.0, %v1892_v52  ;;  %v2285_v4 = vpop.f32.mrf.mxu0 }
  0xf7   :  { %v2287_v9 = vpop.f32.mrf.mxu1  ;;  %v1896_v11 = vpop.eup %1895  ;;  %1518 = vst [vmem:[%s2658_s3] sm:$0xff] %v1517_v57   ;;  %v932_v1 = vmul.f32 %v868_v60, %v2201_v6  ;;  %v871_v10 = vmul.f32 0.5, %v807_v61  ;;  %v805_v12 = vadd.f32 1.0, %v1894_v62  ;;  %1905 = vtanh.f32 %v683_v28 }
  0xf8   :  { %v1898_v15 = vpop.eup %1897  ;;  %1689 = vst [vmem:[%s2658_s3 + $0x80] sm:$0xff] %v1597_v59   ;;  %v964_v2 = vmul.f32 %v900_v0, %v2204_v7  ;;  %v903_v16 = vmul.f32 0.5, %v839_v3  ;;  %v837_v17 = vadd.f32 1.0, %v1896_v11  ;;  %1907 = vtanh.f32 %v715_v32  ;;  %v2297_v42 = vpop.f32.mrf.mxu0 }
  0xf9   :  { %v2299_v23 = vpop.f32.mrf.mxu1  ;;  %v1900_v47 = vpop.eup %1899  ;;  %v935_v6 = vmul.f32 %v871_v10, %v2210_v13  ;;  %v869_v24 = vmul.f32 0.5, %v805_v12  ;;  %v810_v26 = vadd.f32 1.0, %v1898_v15  ;;  %v2304_v28 = vadd.f32 %v2159_v38, %v2241_v55 }
  0xfa   :  { %v1902_v29 = vpop.eup %1901  ;;  %v967_v30 = vmul.f32 %v903_v16, %v2213_v14  ;;  %v901_v7 = vmul.f32 0.5, %v837_v17  ;;  %v842_v48 = vadd.f32 1.0, %v1900_v47  ;;  %v2309_v31 = vadd.f32 %v2159_v38, %v2243_v56  ;;  %v1771_v53 = vpop.f32.mrf.mxu0 }
  0xfb   :  { %v1904_v32 = vpop.eup %1903  ;;  %v1532_v36 = vpack.c.bf16 %v935_v6, %v934_v58  ;;  %v933_v39 = vmul.f32 %v869_v24, %v2217_v18  ;;  %v874_v13 = vmul.f32 0.5, %v810_v26  ;;  %v808_v40 = vadd.f32 1.0, %v1902_v29  ;;  %v2312_v43 = vpop.f32.mrf.mxu1 }
  0xfc   :  { %v1612_v55 = vpack.c.bf16 %v967_v30, %v966_v63  ;;  %v965_v44 = vmul.f32 %v901_v7, %v2220_v19  ;;  %v906_v45 = vmul.f32 0.5, %v842_v48  ;;  %v840_v14 = vadd.f32 1.0, %v1904_v32 }
  0xfd   :  { %1676 = vst [vmem:[%s2658_s3 + $0x18] sm:$0xff] %v1532_v36   ;;  %v1527_v56 = vpack.c.bf16 %v933_v39, %v932_v1  ;;  %v2319_v46 = vmul.f32 %v874_v13, %v2226_v25  ;;  %v872_v49 = vmul.f32 0.5, %v808_v40  ;;  %v681_v18 = vmul.f32 0.5, %v2304_v28  ;;  %v612_v61 = vpop.f32.mrf.mxu1 }
  0xfe   :  { %1692 = vst [vmem:[%s2658_s3 + $0x98] sm:$0xff] %v1612_v55   ;;  %v1607_v54 = vpack.c.bf16 %v965_v44, %v964_v2  ;;  %v2326_v19 = vmul.f32 %v906_v45, %v2229_v27  ;;  %v904_v52 = vmul.f32 0.5, %v840_v14  ;;  %v713_v57 = vmul.f32 0.5, %v2309_v31  ;;  %v484_v27 = vpop.f32.mrf.mxu0 }
  0xff   :  { %1675 = vst [vmem:[%s2658_s3 + $0x10] sm:$0xff] %v1527_v56   ;;  %v2333_v25 = vmul.f32 %v872_v49, %v2233_v33  ;;  %1909 = vtanh.f32 %v681_v18  ;;  %v2337_v58 = vadd.f32 %v2247_v5, %v2159_v38  ;;  %v2341_v60 = vadd.f32 %v2249_v8, %v2159_v38  ;;  %v1806_v10 = vpop.f32.mrf.mxu1 }
 0x100   :  { %1691 = vst [vmem:[%s2658_s3 + $0x90] sm:$0xff] %v1607_v54   ;;  %v2347_v62 = vmul.f32 %v904_v52, %v2237_v37  ;;  %1911 = vtanh.f32 %v713_v57  ;;  %v2351_v33 = vadd.f32 %v2159_v38, %v2259_v21  ;;  %v2355_v5 = vadd.f32 %v2159_v38, %v2261_v22  ;;  %v1774_v1 = vpop.f32.mrf.mxu0 }
 0x101   :  { %v686_v8 = vmul.f32 0.5, %v2337_v58  ;;  %v718_v59 = vmul.f32 0.5, %v2341_v60  ;;  %v2361_v63 = vadd.f32 %v2267_v34, %v2159_v38  ;;  %v2365_v37 = vadd.f32 %v2269_v35, %v2159_v38  ;;  %v625_v7 = vpop.f32.mrf.mxu1 }
 0x102   :  { %v684_v0 = vmul.f32 0.5, %v2351_v33  ;;  %v716_v21 = vmul.f32 0.5, %v2355_v5  ;;  %v2371_v22 = vadd.f32 %v2159_v38, %v2273_v50  ;;  %v2375_v3 = vadd.f32 %v2159_v38, %v2275_v51  ;;  %v497_v30 = vpop.f32.mrf.mxu0 }
 0x103   :  { %1913 = vtanh.f32 %v686_v8  ;;  %v687_v34 = vmul.f32 0.5, %v2361_v63  ;;  %v719_v11 = vmul.f32 0.5, %v2365_v37  ;;  %v2381_v35 = vadd.f32 %v2285_v4, %v2159_v38  ;;  %v1807_v45 = vpop.f32.mrf.mxu1 }
 0x104   :  { %v1906_v12 = vpop.eup %1905  ;;  %1915 = vtanh.f32 %v718_v59  ;;  %v685_v50 = vmul.f32 0.5, %v2371_v22  ;;  %v717_v15 = vmul.f32 0.5, %v2375_v3  ;;  %v2387_v51 = vadd.f32 %v2287_v9, %v2159_v38  ;;  %v1775_v44 = vpop.f32.mrf.mxu0 }
 0x105   :  { %v1908_v2 = vpop.eup %1907  ;;  %v811_v16 = vadd.f32 1.0, %v1906_v12  ;;  %1917 = vtanh.f32 %v684_v0  ;;  %v690_v17 = vmul.f32 0.5, %v2381_v35  ;;  %v2392_v4 = vadd.f32 %v2159_v38, %v2297_v42 }
 0x106   :  { %v843_v47 = vadd.f32 1.0, %v1908_v2  ;;  %1919 = vtanh.f32 %v716_v21  ;;  %v722_v6 = vmul.f32 0.5, %v2387_v51  ;;  %v2397_v24 = vadd.f32 %v2159_v38, %v2299_v23  ;;  %v500_v0 = vpop.f32.mrf.mxu0  ;;  %v628_v21 = vpop.f32.mrf.mxu1 }
 0x107   :  { %v875_v26 = vmul.f32 0.5, %v811_v16  ;;  %1921 = vtanh.f32 %v687_v34  ;;  %v688_v9 = vmul.f32 0.5, %v2392_v4  ;;  %v2401_v29 = vadd.f32 %v1771_v53, %v2159_v38 }
 0x108   :  { %v907_v48 = vmul.f32 0.5, %v843_v47  ;;  %1923 = vtanh.f32 %v719_v11  ;;  %v720_v42 = vmul.f32 0.5, %v2397_v24  ;;  %v2406_v32 = vadd.f32 %v2312_v43, %v2159_v38 }
 0x109   :  { %v939_v23 = vmul.f32 %v875_v26, %v2253_v41  ;;  %1925 = vtanh.f32 %v685_v50  ;;  %v691_v36 = vmul.f32 0.5, %v2401_v29  ;;  %v2411_v39 = vadd.f32 %v2159_v38, %v484_v27 }
 0x10a   :  { %v971_v13 = vmul.f32 %v907_v48, %v2257_v20  ;;  %1927 = vtanh.f32 %v717_v15  ;;  %v723_v40 = vmul.f32 0.5, %v2406_v32  ;;  %v2416_v53 = vadd.f32 %v2159_v38, %v612_v61  ;;  %v2455_v48 = vpop.f32.mrf.mxu0 }
 0x10b   :  { %v1542_v55 = vpack.c.bf16 %v939_v23, %v2319_v46  ;;  %1929 = vtanh.f32 %v690_v17  ;;  %v689_v43 = vmul.f32 0.5, %v2411_v39  ;;  %v2421_v41 = vadd.f32 %v1774_v1, %v2159_v38 }
 0x10c   :  { %v1910_v14 = vpop.eup %1909  ;;  %v1622_v56 = vpack.c.bf16 %v971_v13, %v2326_v19  ;;  %1931 = vtanh.f32 %v722_v6  ;;  %v721_v20 = vmul.f32 0.5, %v2416_v53  ;;  %v2426_v49 = vadd.f32 %v1806_v10, %v2159_v38 }
 0x10d   :  { %v1912_v18 = vpop.eup %1911  ;;  %1678 = vst [vmem:[%s2658_s3 + $0x28] sm:$0xff] %v1542_v55   ;;  %v809_v46 = vadd.f32 1.0, %v1910_v14  ;;  %1933 = vtanh.f32 %v688_v9  ;;  %v694_v54 = vmul.f32 0.5, %v2421_v41  ;;  %v2433_v52 = vadd.f32 %v2159_v38, %v497_v30 }
 0x10e   :  { %1694 = vst [vmem:[%s2658_s3 + $0xa8] sm:$0xff] %v1622_v56   ;;  %v841_v19 = vadd.f32 1.0, %v1912_v18  ;;  %1935 = vtanh.f32 %v720_v42  ;;  %v726_v57 = vmul.f32 0.5, %v2426_v49  ;;  %v2440_v27 = vadd.f32 %v2159_v38, %v625_v7 }
 0x10f   :  { %v873_v61 = vmul.f32 0.5, %v809_v46  ;;  %1937 = vtanh.f32 %v691_v36  ;;  %v692_v8 = vmul.f32 0.5, %v2433_v52  ;;  %v2444_v59 = vadd.f32 %v1775_v44, %v2159_v38 }
 0x110   :  { %v1914_v34 = vpop.eup %1913  ;;  %v905_v11 = vmul.f32 0.5, %v841_v19  ;;  %1939 = vtanh.f32 %v723_v40  ;;  %v724_v1 = vmul.f32 0.5, %v2440_v27  ;;  %v2448_v10 = vadd.f32 %v1807_v45, %v2159_v38 }
 0x111   :  { %v1916_v12 = vpop.eup %1915  ;;  %v937_v50 = vmul.f32 %v873_v61, %v2304_v28  ;;  %v814_v15 = vadd.f32 1.0, %v1914_v34  ;;  %1941 = vtanh.f32 %v689_v43  ;;  %v695_v2 = vmul.f32 0.5, %v2444_v59  ;;  %v2457_v28 = vpop.f32.mrf.mxu1 }
 0x112   :  { %v1918_v16 = vpop.eup %1917  ;;  %v969_v17 = vmul.f32 %v905_v11, %v2309_v31  ;;  %v846_v47 = vadd.f32 1.0, %v1916_v12  ;;  %1943 = vtanh.f32 %v721_v20  ;;  %v727_v6 = vmul.f32 0.5, %v2448_v10 }
 0x113   :  { %v1920_v26 = vpop.eup %1919  ;;  %v1537_v9 = vpack.c.bf16 %v937_v50, %v2333_v25  ;;  %v878_v30 = vmul.f32 0.5, %v814_v15  ;;  %v812_v7 = vadd.f32 1.0, %v1918_v16  ;;  %1945 = vtanh.f32 %v694_v54  ;;  %v2471_v46 = vpop.f32.mrf.mxu1 }
 0x114   :  { %v1922_v42 = vpop.eup %1921  ;;  %v1617_v23 = vpack.c.bf16 %v969_v17, %v2347_v62  ;;  %v910_v36 = vmul.f32 0.5, %v846_v47  ;;  %v844_v13 = vadd.f32 1.0, %v1920_v26  ;;  %1947 = vtanh.f32 %v726_v57 }
 0x115   :  { %v1924_v31 = vpop.eup %1923  ;;  %1677 = vst [vmem:[%s2658_s3 + $0x20] sm:$0xff] %v1537_v9   ;;  %v942_v25 = vmul.f32 %v878_v30, %v2337_v58  ;;  %v876_v40 = vmul.f32 0.5, %v812_v7  ;;  %v815_v55 = vadd.f32 1.0, %v1922_v42  ;;  %1949 = vtanh.f32 %v692_v8  ;;  %v2469_v58 = vpop.f32.mrf.mxu0 }
 0x116   :  { %v1926_v43 = vpop.eup %1925  ;;  %1693 = vst [vmem:[%s2658_s3 + $0xa0] sm:$0xff] %v1617_v23   ;;  %v974_v62 = vmul.f32 %v910_v36, %v2341_v60  ;;  %v908_v44 = vmul.f32 0.5, %v844_v13  ;;  %v847_v45 = vadd.f32 1.0, %v1924_v31  ;;  %1951 = vtanh.f32 %v724_v1  ;;  %v2485_v26 = vpop.f32.mrf.mxu1 }
 0x117   :  { %v1928_v14 = vpop.eup %1927  ;;  %v940_v56 = vmul.f32 %v876_v40, %v2351_v33  ;;  %v879_v20 = vmul.f32 0.5, %v815_v55  ;;  %v813_v18 = vadd.f32 1.0, %v1926_v43  ;;  %1953 = vtanh.f32 %v695_v2 }
 0x118   :  { %v1930_v54 = vpop.eup %1929  ;;  %v972_v19 = vmul.f32 %v908_v44, %v2355_v5  ;;  %v911_v57 = vmul.f32 0.5, %v847_v45  ;;  %v845_v61 = vadd.f32 1.0, %v1928_v14  ;;  %1955 = vtanh.f32 %v727_v6  ;;  %v2501_v14 = vpop.f32.mrf.mxu1 }
 0x119   :  { %v1932_v60 = vpop.eup %1931  ;;  %v943_v8 = vmul.f32 %v879_v20, %v2361_v63  ;;  %v877_v34 = vmul.f32 0.5, %v813_v18  ;;  %v818_v11 = vadd.f32 1.0, %v1930_v54  ;;  %v2476_v33 = vadd.f32 %v2159_v38, %v500_v0  ;;  %v2483_v63 = vpop.f32.mrf.mxu0 }
 0x11a   :  { %v1934_v1 = vpop.eup %1933  ;;  %v975_v12 = vmul.f32 %v911_v57, %v2365_v37  ;;  %v909_v50 = vmul.f32 0.5, %v845_v61  ;;  %v850_v15 = vadd.f32 1.0, %v1932_v60  ;;  %v2480_v2 = vadd.f32 %v2159_v38, %v628_v21 }
 0x11b   :  { %v1936_v5 = vpop.eup %1935  ;;  %v1552_v16 = vpack.c.bf16 %v943_v8, %v942_v25  ;;  %v941_v17 = vmul.f32 %v877_v34, %v2371_v22  ;;  %v882_v47 = vmul.f32 0.5, %v818_v11  ;;  %v816_v6 = vadd.f32 1.0, %v1934_v1  ;;  %v516_v45 = vpop.f32.mrf.mxu0 }
 0x11c   :  { %v1938_v0 = vpop.eup %1937  ;;  %v1632_v9 = vpack.c.bf16 %v975_v12, %v974_v62  ;;  %v973_v30 = vmul.f32 %v909_v50, %v2375_v3  ;;  %v914_v37 = vmul.f32 0.5, %v850_v15  ;;  %v848_v7 = vadd.f32 1.0, %v1936_v5 }
 0x11d   :  { %v1940_v42 = vpop.eup %1939  ;;  %1680 = vst [vmem:[%s2658_s3 + $0x38] sm:$0xff] %v1552_v16   ;;  %v1547_v21 = vpack.c.bf16 %v941_v17, %v940_v56  ;;  %v946_v22 = vmul.f32 %v882_v47, %v2381_v35  ;;  %v880_v23 = vmul.f32 0.5, %v816_v6  ;;  %v819_v36 = vadd.f32 1.0, %v1938_v0  ;;  %v1782_v5 = vpop.f32.mrf.mxu0 }
 0x11e   :  { %v1942_v13 = vpop.eup %1941  ;;  %1696 = vst [vmem:[%s2658_s3 + $0xb8] sm:$0xff] %v1632_v9   ;;  %v1627_v31 = vpack.c.bf16 %v973_v30, %v972_v19  ;;  %v978_v3 = vmul.f32 %v914_v37, %v2387_v51  ;;  %v912_v25 = vmul.f32 0.5, %v848_v7  ;;  %v851_v40 = vadd.f32 1.0, %v1940_v42  ;;  %v1814_v16 = vpop.f32.mrf.mxu1 }
 0x11f   :  { %v1944_v55 = vpop.eup %1943  ;;  %1679 = vst [vmem:[%s2658_s3 + $0x30] sm:$0xff] %v1547_v21   ;;  %v944_v43 = vmul.f32 %v880_v23, %v2392_v4  ;;  %v883_v35 = vmul.f32 0.5, %v819_v36  ;;  %v817_v62 = vadd.f32 1.0, %v1942_v13  ;;  %v693_v44 = vmul.f32 0.5, %v2476_v33  ;;  %v529_v36 = vpop.f32.mrf.mxu0 }
 0x120   :  { %v1946_v56 = vpop.eup %1945  ;;  %1695 = vst [vmem:[%s2658_s3 + $0xb0] sm:$0xff] %v1627_v31   ;;  %v976_v51 = vmul.f32 %v912_v25, %v2397_v24  ;;  %v915_v20 = vmul.f32 0.5, %v851_v40  ;;  %v849_v18 = vadd.f32 1.0, %v1944_v55  ;;  %v725_v54 = vmul.f32 0.5, %v2480_v2  ;;  %v657_v13 = vpop.f32.mrf.mxu1 }
 0x121   :  { %v1948_v19 = vpop.eup %1947  ;;  %v947_v4 = vmul.f32 %v883_v35, %v2401_v29  ;;  %v881_v57 = vmul.f32 0.5, %v817_v62  ;;  %v822_v61 = vadd.f32 1.0, %v1946_v56  ;;  %1957 = vtanh.f32 %v693_v44  ;;  %v1783_v44 = vpop.f32.mrf.mxu0 }
 0x122   :  { %v1950_v60 = vpop.eup %1949  ;;  %v979_v8 = vmul.f32 %v915_v20, %v2406_v32  ;;  %v913_v34 = vmul.f32 0.5, %v849_v18  ;;  %v854_v11 = vadd.f32 1.0, %v1948_v19  ;;  %1959 = vtanh.f32 %v725_v54 }
 0x123   :  { %v1952_v1 = vpop.eup %1951  ;;  %v1562_v12 = vpack.c.bf16 %v947_v4, %v946_v22  ;;  %v945_v24 = vmul.f32 %v881_v57, %v2411_v39  ;;  %v886_v50 = vmul.f32 0.5, %v822_v61  ;;  %v820_v15 = vadd.f32 1.0, %v1950_v60 }
 0x124   :  { %v1954_v17 = vpop.eup %1953  ;;  %v1642_v47 = vpack.c.bf16 %v979_v8, %v978_v3  ;;  %v977_v29 = vmul.f32 %v913_v34, %v2416_v53  ;;  %v918_v6 = vmul.f32 0.5, %v854_v11  ;;  %v852_v0 = vadd.f32 1.0, %v1952_v1  ;;  %v532_v8 = vpop.f32.mrf.mxu0 }
 0x125   :  { %v1956_v9 = vpop.eup %1955  ;;  %1682 = vst [vmem:[%s2658_s3 + $0x48] sm:$0xff] %v1562_v12   ;;  %v1557_v32 = vpack.c.bf16 %v945_v24, %v944_v43  ;;  %v823_v30 = vadd.f32 1.0, %v1954_v17  ;;  %v950_v37 = vmul.f32 %v886_v50, %v2421_v41  ;;  %v884_v7 = vmul.f32 0.5, %v820_v15 }
 0x126   :  { %1698 = vst [vmem:[%s2658_s3 + $0xc8] sm:$0xff] %v1642_v47   ;;  %v1637_v39 = vpack.c.bf16 %v977_v29, %v976_v51  ;;  %v855_v42 = vadd.f32 1.0, %v1956_v9  ;;  %v982_v53 = vmul.f32 %v918_v6, %v2426_v49  ;;  %v2525_v22 = vadd.f32 %v2455_v48, %v2159_v38 }
 0x127   :  { %1681 = vst [vmem:[%s2658_s3 + $0x40] sm:$0xff] %v1557_v32   ;;  %v887_v21 = vmul.f32 0.5, %v823_v30  ;;  %v2529_v23 = vadd.f32 %v2457_v28, %v2159_v38  ;;  %v916_v41 = vmul.f32 0.5, %v852_v0  ;;  %v2536_v49 = vadd.f32 %v2159_v38, %v2469_v58 }
 0x128   :  { %1697 = vst [vmem:[%s2658_s3 + $0xc0] sm:$0xff] %v1637_v39   ;;  %v919_v31 = vmul.f32 0.5, %v855_v42  ;;  %v2540_v48 = vadd.f32 %v2159_v38, %v2471_v46  ;;  %v698_v28 = vmul.f32 0.5, %v2525_v22  ;;  %v2547_v40 = vadd.f32 %v2483_v63, %v2159_v38  ;;  %v1815_v63 = vpop.f32.mrf.mxu1 }
 0x129   :  { %v951_v3 = vmul.f32 %v887_v21, %v2444_v59  ;;  %v730_v25 = vmul.f32 0.5, %v2529_v23  ;;  %v696_v43 = vmul.f32 0.5, %v2536_v49  ;;  %v2554_v46 = vadd.f32 %v2485_v26, %v2159_v38 }
 0x12a   :  { %v983_v55 = vmul.f32 %v919_v31, %v2448_v10  ;;  %v728_v58 = vmul.f32 0.5, %v2540_v48  ;;  %1961 = vtanh.f32 %v698_v28  ;;  %v699_v59 = vmul.f32 0.5, %v2547_v40  ;;  %v660_v34 = vpop.f32.mrf.mxu1 }
 0x12b   :  { %v1572_v35 = vpack.c.bf16 %v951_v3, %v950_v37  ;;  %v2558_v62 = vadd.f32 %v2159_v38, %v516_v45  ;;  %1963 = vtanh.f32 %v730_v25  ;;  %v731_v10 = vmul.f32 0.5, %v2554_v46 }
 0x12c   :  { %v1652_v56 = vpack.c.bf16 %v983_v55, %v982_v53  ;;  %v2563_v51 = vadd.f32 %v2159_v38, %v2501_v14  ;;  %1965 = vtanh.f32 %v696_v43  ;;  %v2570_v45 = vadd.f32 %v1782_v5, %v2159_v38 }
 0x12d   :  { %1684 = vst [vmem:[%s2658_s3 + $0x58] sm:$0xff] %v1572_v35   ;;  %v697_v26 = vmul.f32 0.5, %v2558_v62  ;;  %v2573_v20 = vadd.f32 %v1814_v16, %v2159_v38  ;;  %1967 = vtanh.f32 %v728_v58  ;;  %v2580_v54 = vadd.f32 %v2159_v38, %v529_v36 }
 0x12e   :  { %v1958_v18 = vpop.eup %1957  ;;  %1700 = vst [vmem:[%s2658_s3 + $0xd8] sm:$0xff] %v1652_v56   ;;  %v729_v14 = vmul.f32 0.5, %v2563_v51  ;;  %v2583_v19 = vadd.f32 %v2159_v38, %v657_v13  ;;  %1969 = vtanh.f32 %v699_v59  ;;  %v702_v61 = vmul.f32 0.5, %v2570_v45 }
 0x12f   :  { %v1960_v4 = vpop.eup %1959  ;;  %v821_v57 = vadd.f32 1.0, %v1958_v18  ;;  %v734_v60 = vmul.f32 0.5, %v2573_v20  ;;  %1971 = vtanh.f32 %v731_v10  ;;  %v700_v1 = vmul.f32 0.5, %v2580_v54 }
 0x130   :  { %v853_v11 = vadd.f32 1.0, %v1960_v4  ;;  %v732_v12 = vmul.f32 0.5, %v2583_v19  ;;  %1973 = vtanh.f32 %v697_v26  ;;  %v2590_v50 = vadd.f32 %v1783_v44, %v2159_v38 }
 0x131   :  { %v885_v24 = vmul.f32 0.5, %v821_v57  ;;  %v2593_v15 = vadd.f32 %v1815_v63, %v2159_v38  ;;  %1975 = vtanh.f32 %v729_v14  ;;  %v2596_v16 = vadd.f32 %v2159_v38, %v532_v8 }
 0x132   :  { %v917_v5 = vmul.f32 0.5, %v853_v11  ;;  %v2599_v17 = vadd.f32 %v2159_v38, %v660_v34  ;;  %v948_v47 = vmul.f32 %v884_v7, %v2433_v52  ;;  %1977 = vtanh.f32 %v702_v61 }
 0x133   :  { %v949_v29 = vmul.f32 %v885_v24, %v2476_v33  ;;  %v703_v6 = vmul.f32 0.5, %v2590_v50  ;;  %v980_v0 = vmul.f32 %v916_v41, %v2440_v27  ;;  %1979 = vtanh.f32 %v734_v60 }
 0x134   :  { %v981_v9 = vmul.f32 %v917_v5, %v2480_v2  ;;  %v735_v32 = vmul.f32 0.5, %v2593_v15  ;;  %1981 = vtanh.f32 %v700_v1  ;;  %v701_v39 = vmul.f32 0.5, %v2596_v16 }
 0x135   :  { %v1567_v30 = vpack.c.bf16 %v949_v29, %v948_v47  ;;  %1983 = vtanh.f32 %v732_v12  ;;  %v733_v52 = vmul.f32 0.5, %v2599_v17 }
 0x136   :  { %v1647_v38 = vpack.c.bf16 %v981_v9, %v980_v0  ;;  %1985 = vtanh.f32 %v703_v6 }
 0x137   :  { %1683 = vst [vmem:[%s2658_s3 + $0x50] sm:$0xff] %v1567_v30   ;;  %v1962_v33 = vpop.eup %1961  ;;  %1987 = vtanh.f32 %v735_v32 }
 0x138   :  { %1699 = vst [vmem:[%s2658_s3 + $0xd0] sm:$0xff] %v1647_v38   ;;  %v1964_v27 = vpop.eup %1963  ;;  %v826_v2 = vadd.f32 1.0, %v1962_v33  ;;  %1989 = vtanh.f32 %v701_v39 }
 0x139   :  { %v1966_v37 = vpop.eup %1965  ;;  %v858_v7 = vadd.f32 1.0, %v1964_v27  ;;  %1991 = vtanh.f32 %v733_v52 }
 0x13a   :  { %v1968_v42 = vpop.eup %1967  ;;  %v824_v53 = vadd.f32 1.0, %v1966_v37  ;;  %v890_v41 = vmul.f32 0.5, %v826_v2 }
 0x13b   :  { %v1970_v21 = vpop.eup %1969  ;;  %v856_v36 = vadd.f32 1.0, %v1968_v42  ;;  %v922_v28 = vmul.f32 0.5, %v858_v7 }
 0x13c   :  { %v1972_v13 = vpop.eup %1971  ;;  %v827_v31 = vadd.f32 1.0, %v1970_v21  ;;  %v888_v43 = vmul.f32 0.5, %v824_v53  ;;  %v954_v26 = vmul.f32 %v890_v41, %v2525_v22 }
 0x13d   :  { %v1974_v3 = vpop.eup %1973  ;;  %v859_v25 = vadd.f32 1.0, %v1972_v13  ;;  %v920_v44 = vmul.f32 0.5, %v856_v36  ;;  %v986_v61 = vmul.f32 %v922_v28, %v2529_v23 }
 0x13e   :  { %v1976_v55 = vpop.eup %1975  ;;  %v891_v58 = vmul.f32 0.5, %v827_v31  ;;  %v825_v35 = vadd.f32 1.0, %v1974_v3  ;;  %v952_v1 = vmul.f32 %v888_v43, %v2536_v49 }
 0x13f   :  { %v1978_v59 = vpop.eup %1977  ;;  %v923_v63 = vmul.f32 0.5, %v859_v25  ;;  %v857_v56 = vadd.f32 1.0, %v1976_v55  ;;  %v984_v22 = vmul.f32 %v920_v44, %v2540_v48 }
 0x140   :  { %v1980_v10 = vpop.eup %1979  ;;  %v955_v18 = vmul.f32 %v891_v58, %v2547_v40  ;;  %v889_v14 = vmul.f32 0.5, %v825_v35  ;;  %v830_v4 = vadd.f32 1.0, %v1978_v59 }
 0x141   :  { %v1982_v57 = vpop.eup %1981  ;;  %v987_v60 = vmul.f32 %v923_v63, %v2554_v46  ;;  %v921_v8 = vmul.f32 0.5, %v857_v56  ;;  %v862_v34 = vadd.f32 1.0, %v1980_v10 }
 0x142   :  { %v1984_v11 = vpop.eup %1983  ;;  %v1582_v12 = vpack.c.bf16 %v955_v18, %v954_v26  ;;  %v953_v24 = vmul.f32 %v889_v14, %v2558_v62  ;;  %v828_v5 = vadd.f32 1.0, %v1982_v57  ;;  %v894_v46 = vmul.f32 0.5, %v830_v4 }
 0x143   :  { %v1986_v47 = vpop.eup %1985  ;;  %v1662_v40 = vpack.c.bf16 %v987_v60, %v986_v61  ;;  %v985_v29 = vmul.f32 %v921_v8, %v2563_v51  ;;  %v860_v6 = vadd.f32 1.0, %v1984_v11  ;;  %v926_v32 = vmul.f32 0.5, %v862_v34 }
 0x144   :  { %v1988_v0 = vpop.eup %1987  ;;  %1686 = vst [vmem:[%s2658_s3 + $0x68] sm:$0xff] %v1582_v12   ;;  %v1577_v23 = vpack.c.bf16 %v953_v24, %v952_v1  ;;  %v831_v9 = vadd.f32 1.0, %v1986_v47  ;;  %v892_v51 = vmul.f32 0.5, %v828_v5  ;;  %v958_v2 = vmul.f32 %v894_v46, %v2570_v45 }
 0x145   :  { %v1990_v49 = vpop.eup %1989  ;;  %1702 = vst [vmem:[%s2658_s3 + $0xe8] sm:$0xff] %v1662_v40   ;;  %v1657_v62 = vpack.c.bf16 %v985_v29, %v984_v22  ;;  %v863_v48 = vadd.f32 1.0, %v1988_v0  ;;  %v924_v52 = vmul.f32 0.5, %v860_v6  ;;  %v990_v42 = vmul.f32 %v926_v32, %v2573_v20 }
 0x146   :  { %v1992_v30 = vpop.eup %1991  ;;  %1685 = vst [vmem:[%s2658_s3 + $0x60] sm:$0xff] %v1577_v23   ;;  %v895_v39 = vmul.f32 0.5, %v831_v9  ;;  %v829_v38 = vadd.f32 1.0, %v1990_v49  ;;  %v956_v36 = vmul.f32 %v892_v51, %v2580_v54 }
 0x147   :  { %1701 = vst [vmem:[%s2658_s3 + $0xe0] sm:$0xff] %v1657_v62   ;;  %v927_v33 = vmul.f32 0.5, %v863_v48  ;;  %v861_v27 = vadd.f32 1.0, %v1992_v30  ;;  %v988_v31 = vmul.f32 %v924_v52, %v2583_v19 }
 0x148   :  { %v959_v37 = vmul.f32 %v895_v39, %v2590_v50  ;;  %v893_v7 = vmul.f32 0.5, %v829_v38 }
 0x149   :  { %v991_v53 = vmul.f32 %v927_v33, %v2593_v15  ;;  %v925_v21 = vmul.f32 0.5, %v861_v27 }
 0x14a   :  { %v1592_v13 = vpack.c.bf16 %v959_v37, %v958_v2  ;;  %v957_v41 = vmul.f32 %v893_v7, %v2596_v16 }
 0x14b   :  { %v1672_v3 = vpack.c.bf16 %v991_v53, %v990_v42  ;;  %v989_v28 = vmul.f32 %v925_v21, %v2599_v17 }
 0x14c   :  { %1688 = vst [vmem:[%s2658_s3 + $0x78] sm:$0xff] %v1592_v13   ;;  %v1587_v45 = vpack.c.bf16 %v957_v41, %v956_v36 }
 0x14d   :  { %1704 = vst [vmem:[%s2658_s3 + $0xf8] sm:$0xff] %v1672_v3   ;;  %v1667_v20 = vpack.c.bf16 %v989_v28, %v988_v31 }
 0x14e   :  { %1687 = vst [vmem:[%s2658_s3 + $0x70] sm:$0xff] %v1587_v45  }
 0x14f   :  { %1703 = vst [vmem:[%s2658_s3 + $0xf0] sm:$0xff] %v1667_v20  }

// kernel: detection_model_forward.7
= control target key start
LH: loop header
LB: loop body
LE: loop exit
PB: predicated region body
PF: predicated region fallthrough
CT: control target
= control target key end

     0   :  { %v1394_v0 = vmov 0   ;;  %vm193_vm0 = vcmask 130048   ;;  %s1994_s1 = inlined_call_operand.vmem [shape: bf16[144,128], index: 1, kind: input, shape index: {}]   ;;  %s1995_s0 = inlined_call_operand.vmem [shape: bf16[128,144], index: 0, kind: input, shape index: {}]   ;;  %s1996_s3 = inlined_call_operand.vmem [shape: bf16[128,128], index: 3, kind: input, shape index: {}]   ;;  %s1997_s2 = inlined_call_operand.vmem [shape: f32[1,128], index: 2, kind: input, shape index: {}]   ;;  %s1998_s6 = inlined_call_operand.vmem [shape: bf16[128,128], index: 6, kind: output, shape index: {0}]   ;;  %s1999_s5 = inlined_call_operand.vmem [shape: f32[8,128], index: 5, kind: input, shape index: {}]   ;;  %s2000_s4 = inlined_call_operand.vmem [shape: f32[1,128], index: 4, kind: input, shape index: {}]   ;;  %s2001_s7 = inlined_call_operand.vmem [shape: f32[128,128], index: 7, kind: output, shape index: {1}]  }
   0x1   :  { %218 = vmatprep.subr.bf16.mxu0 %v1394_v0  ;;  %v1289_v1 = vld [vmem:[%s1994_s1 + $0x38] sm:$0xff]   ;;  %v1290_v2 = vld [vmem:[%s1994_s1 + $0x30] sm:$0xff]   ;;  %v1291_v3 = vld [vmem:[%s1994_s1 + $0x28] sm:$0xff]  }
   0x2   :  { %219 = vmatpush1.bf16.msra.mxu0 %v1289_v1  ;;  %v1292_v4 = vld [vmem:[%s1994_s1 + $0x20] sm:$0xff]   ;;  %v1293_v6 = vld [vmem:[%s1994_s1 + $0x18] sm:$0xff]   ;;  %v1294_v7 = vld [vmem:[%s1994_s1 + $0x10] sm:$0xff]  }
   0x3   :  { %220 = vmatprep.subr.bf16.mxu0 %v1394_v0  ;;  %v1300_v5 = vld [vmem:[%s1995_s0 + $0x4] ss:$8 sps:$4 sm:$0xff]   ;;  %v1298_v11 = vld [vmem:[%s1995_s0] ss:$8 sps:$4 sm:$0xff]   ;;  %v1301_v12 = vld [vmem:[%s1995_s0 + $0x14] ss:$8 sps:$4 sm:$0xff]  }
   0x4   :  { %1127 = vmatprep.mubr.msk.bf16.mxu0 %vm193_vm0, %v1300_v5  ;;  %v1295_v8 = vld [vmem:[%s1994_s1 + $0x8] sm:$0xff]   ;;  %v1296_v9 = vld [vmem:[%s1994_s1] sm:$0xff]   ;;  %v1303_v13 = vld [vmem:[%s1995_s0 + $0x10] ss:$8 sps:$4 sm:$0xff]  }
   0x5   :  { %v1297_v10 = vld [vmem:[%s1994_s1 + $0x40] sm:$0xff]   ;;  %v1307_v16 = vld [vmem:[%s1995_s0 + $0x34] ss:$8 sps:$4 sm:$0xff]   ;;  %v1309_v17 = vld [vmem:[%s1995_s0 + $0x30] ss:$8 sps:$4 sm:$0xff]  }
   0x6   :  { %221 = vmatpush1.bf16.msra.mxu0 %v1290_v2  ;;  %v1304_v14 = vld [vmem:[%s1995_s0 + $0x24] ss:$8 sps:$4 sm:$0xff]   ;;  %v1306_v15 = vld [vmem:[%s1995_s0 + $0x20] ss:$8 sps:$4 sm:$0xff]   ;;  %v1313_v20 = vld [vmem:[%s1995_s0 + $0x54] ss:$8 sps:$4 sm:$0xff]  }
   0x7   :  { %222 = vmatprep.subr.bf16.mxu0 %v1394_v0  ;;  %v1310_v18 = vld [vmem:[%s1995_s0 + $0x44] ss:$8 sps:$4 sm:$0xff]   ;;  %v1312_v19 = vld [vmem:[%s1995_s0 + $0x40] ss:$8 sps:$4 sm:$0xff]   ;;  %v1315_v21 = vld [vmem:[%s1995_s0 + $0x50] ss:$8 sps:$4 sm:$0xff]  }
   0x8   :  { %v1316_v22 = vld [vmem:[%s1995_s0 + $0x64] ss:$8 sps:$4 sm:$0xff]   ;;  %v1318_v23 = vld [vmem:[%s1995_s0 + $0x60] ss:$8 sps:$4 sm:$0xff]   ;;  %v1319_v24 = vld [vmem:[%s1995_s0 + $0x74] ss:$8 sps:$4 sm:$0xff]  }
   0x9   :  { %v1321_v25 = vld [vmem:[%s1995_s0 + $0x70] ss:$8 sps:$4 sm:$0xff]   ;;  %v1324_v28 = vld [vmem:[%s1996_s3 + $0x28] sm:$0xff]   ;;  %v1325_v29 = vld [vmem:[%s1996_s3 + $0x20] sm:$0xff]  }
   0xa   :  { %223 = vmatpush1.bf16.msra.mxu0 %v1291_v3  ;;  %v1322_v26 = vld [vmem:[%s1996_s3 + $0x38] sm:$0xff]   ;;  %v1323_v27 = vld [vmem:[%s1996_s3 + $0x30] sm:$0xff]   ;;  %v1328_v32 = vld [vmem:[%s1996_s3 + $0x8] sm:$0xff]  }
   0xb   :  { %224 = vmatprep.subr.bf16.mxu0 %v1394_v0  ;;  %1255 = vmatprep.subr.bf16.mxu1 %v1322_v26  ;;  %v1326_v30 = vld [vmem:[%s1996_s3 + $0x18] sm:$0xff]   ;;  %v1327_v31 = vld [vmem:[%s1996_s3 + $0x10] sm:$0xff]   ;;  %v1329_v33 = vld [vmem:[%s1996_s3] sm:$0xff]  }
   0xc   :  { %1256 = vmatpush3.bf16.msra.mxu1 %v1322_v26  ;;  %v1555_v34 = vld [vmem:[%s1997_s2] ss:$0 sm:$0xff] }
   0xd   :  { %1257 = vmatprep.subr.bf16.mxu1 %v1323_v27 }
   0xe   :  { %225 = vmatpush1.bf16.msra.mxu0 %v1292_v4 }
   0xf   :  { %226 = vmatprep.subr.bf16.mxu0 %v1394_v0 }
  0x10   :  { %1258 = vmatpush3.bf16.msra.mxu1 %v1323_v27 }
  0x11   :  { %1259 = vmatprep.subr.bf16.mxu1 %v1324_v28 }
  0x12   :  { %227 = vmatpush1.bf16.msra.mxu0 %v1293_v6 }
  0x13   :  { %228 = vmatprep.subr.bf16.mxu0 %v1394_v0 }
  0x14   :  { %1260 = vmatpush3.bf16.msra.mxu1 %v1324_v28 }
  0x15   :  { %1261 = vmatprep.subr.bf16.mxu1 %v1325_v29 }
  0x16   :  { %229 = vmatpush1.bf16.msra.mxu0 %v1294_v7 }
  0x17   :  { %230 = vmatprep.subr.bf16.mxu0 %v1394_v0 }
  0x18   :  { %1262 = vmatpush3.bf16.msra.mxu1 %v1325_v29 }
  0x19   :  { %1263 = vmatprep.subr.bf16.mxu1 %v1326_v30 }
  0x1a   :  { %231 = vmatpush1.bf16.msra.mxu0 %v1295_v8 }
  0x1b   :  { %232 = vmatprep.subr.bf16.mxu0 %v1394_v0 }
  0x1c   :  { %1264 = vmatpush3.bf16.msra.mxu1 %v1326_v30 }
  0x1d   :  { %1265 = vmatprep.subr.bf16.mxu1 %v1327_v31 }
  0x1e   :  { %233 = vmatpush1.bf16.msra.mxu0 %v1296_v9 }
  0x1f   :  { %248 = vmatprep.subr.bf16.mxu0 %v1394_v0 }
  0x20   :  { %1266 = vmatpush3.bf16.msra.mxu1 %v1327_v31 }
  0x21   :  { %1267 = vmatprep.subr.bf16.mxu1 %v1328_v32 }
  0x22   :  { %249 = vmatpush2.bf16.msra.mxu0 %v1297_v10 }
  0x24   :  { %1268 = vmatpush3.bf16.msra.mxu1 %v1328_v32 }
  0x25   :  { %251 = vmatmul.mubr.bf16.vlgmr.msra.gmra.mxu0 %v1298_v11  ;;  %1269 = vmatprep.subr.bf16.mxu1 %v1329_v33 }
  0x26   :  { %1128 = vmatprep.mubr.msk.bf16.mxu0 %vm193_vm0, %v1301_v12 }
  0x28   :  { %1270 = vmatpush3.bf16.msra.mxu1 %v1329_v33 }
  0x2d   :  { %259 = vmatmul.mubr.bf16.gmra.mxu0 %v1303_v13 }
  0x2e   :  { %1129 = vmatprep.mubr.msk.bf16.mxu0 %vm193_vm0, %v1304_v14 }
  0x35   :  { %267 = vmatmul.mubr.bf16.gmra.mxu0 %v1306_v15 }
  0x36   :  { %1130 = vmatprep.mubr.msk.bf16.mxu0 %vm193_vm0, %v1307_v16 }
  0x3d   :  { %275 = vmatmul.mubr.bf16.gmra.mxu0 %v1309_v17 }
  0x3e   :  { %1131 = vmatprep.mubr.msk.bf16.mxu0 %vm193_vm0, %v1310_v18 }
  0x45   :  { %283 = vmatmul.mubr.bf16.gmra.mxu0 %v1312_v19 }
  0x46   :  { %1132 = vmatprep.mubr.msk.bf16.mxu0 %vm193_vm0, %v1313_v20 }
  0x4d   :  { %291 = vmatmul.mubr.bf16.gmra.mxu0 %v1315_v21 }
  0x4e   :  { %1133 = vmatprep.mubr.msk.bf16.mxu0 %vm193_vm0, %v1316_v22 }
  0x55   :  { %299 = vmatmul.mubr.bf16.gmra.mxu0 %v1318_v23 }
  0x56   :  { %1134 = vmatprep.mubr.msk.bf16.mxu0 %vm193_vm0, %v1319_v24 }
  0x5d   :  { %307 = vmatmul.mubr.bf16.gmra.mxu0 %v1321_v25 }
  0xe5   :  { %v252_v35 = vpop.f32.mrf.mxu0 }
  0xe6   :  { %v253_v36 = vadd.f32 %v1555_v34, %v252_v35 }
  0xe7   :  { %v254_v37 = vpop.f32.mrf.mxu0 }
  0xe8   :  { %v315_v38 = vmul.f32 0.5, %v253_v36 }
  0xe9   :  { %v255_v39 = vpop.f32.mrf.mxu0 }
  0xea   :  { %1330 = vtanh.f32 %v315_v38  ;;  %v256_v40 = vadd.f32 %v1555_v34, %v255_v39 }
  0xeb   :  { %v257_v41 = vpop.f32.mrf.mxu0 }
  0xec   :  { %v316_v42 = vmul.f32 0.5, %v256_v40 }
  0xed   :  { %v260_v43 = vpop.f32.mrf.mxu0 }
  0xee   :  { %1332 = vtanh.f32 %v316_v42  ;;  %v261_v44 = vadd.f32 %v1555_v34, %v260_v43 }
  0xef   :  { %v262_v45 = vpop.f32.mrf.mxu0 }
  0xf0   :  { %v317_v46 = vmul.f32 0.5, %v261_v44 }
  0xf1   :  { %v263_v47 = vpop.f32.mrf.mxu0 }
  0xf2   :  { %1334 = vtanh.f32 %v317_v46  ;;  %v264_v48 = vadd.f32 %v1555_v34, %v263_v47 }
  0xf3   :  { %v265_v49 = vpop.f32.mrf.mxu0 }
  0xf4   :  { %v318_v50 = vmul.f32 0.5, %v264_v48 }
  0xf5   :  { %v268_v51 = vpop.f32.mrf.mxu0 }
  0xf6   :  { %1336 = vtanh.f32 %v318_v50  ;;  %v269_v52 = vadd.f32 %v1555_v34, %v268_v51 }
  0xf7   :  { %v1331_v53 = vpop.eup %1330  ;;  %v270_v54 = vpop.f32.mrf.mxu0 }
  0xf8   :  { %v347_v55 = vadd.f32 1.0, %v1331_v53  ;;  %v319_v56 = vmul.f32 0.5, %v269_v52 }
  0xf9   :  { %v271_v57 = vpop.f32.mrf.mxu0 }
  0xfa   :  { %1338 = vtanh.f32 %v319_v56  ;;  %v272_v58 = vadd.f32 %v1555_v34, %v271_v57  ;;  %v363_v61 = vmul.f32 0.5, %v347_v55 }
  0xfb   :  { %v1333_v59 = vpop.eup %1332  ;;  %v273_v60 = vpop.f32.mrf.mxu0 }
  0xfc   :  { %v348_v62 = vadd.f32 1.0, %v1333_v59  ;;  %v320_v63 = vmul.f32 0.5, %v272_v58  ;;  %v379_v6 = vmul.f32 %v363_v61, %v253_v36 }
  0xfd   :  { %v276_v1 = vpop.f32.mrf.mxu0 }
  0xfe   :  { %v364_v2 = vmul.f32 0.5, %v348_v62  ;;  %1340 = vtanh.f32 %v320_v63  ;;  %v1564_v3 = vadd.f32 %v1555_v34, %v276_v1 }
  0xff   :  { %v1335_v4 = vpop.eup %1334  ;;  %v278_v5 = vpop.f32.mrf.mxu0 }
 0x100   :  { %v380_v7 = vmul.f32 %v364_v2, %v256_v40  ;;  %v349_v8 = vadd.f32 1.0, %v1335_v4  ;;  %v321_v9 = vmul.f32 0.5, %v1564_v3 }
 0x101   :  { %v279_v10 = vpop.f32.mrf.mxu0 }
 0x102   :  { %1342 = vtanh.f32 %v321_v9  ;;  %v280_v11 = vadd.f32 %v1555_v34, %v279_v10  ;;  %v395_v12 = vpack.c.bf16 %v380_v7, %v379_v6  ;;  %v365_v15 = vmul.f32 0.5, %v349_v8 }
 0x103   :  { %v1337_v13 = vpop.eup %1336  ;;  %v281_v14 = vpop.f32.mrf.mxu0 }
 0x104   :  { %v350_v16 = vadd.f32 1.0, %v1337_v13  ;;  %v322_v17 = vmul.f32 0.5, %v280_v11  ;;  %1196 = vst [vmem:[%s1998_s6] sm:$0xff] %v395_v12   ;;  %1271 = vmatprep.mubr.bf16.mxu1 %v395_v12  ;;  %v381_v23 = vmul.f32 %v365_v15, %v261_v44 }
 0x105   :  { %v284_v18 = vpop.f32.mrf.mxu0 }
 0x106   :  { %v366_v19 = vmul.f32 0.5, %v350_v16  ;;  %1344 = vtanh.f32 %v322_v17  ;;  %v1572_v20 = vadd.f32 %v1555_v34, %v284_v18 }
 0x107   :  { %v1339_v21 = vpop.eup %1338  ;;  %v286_v22 = vpop.f32.mrf.mxu0 }
 0x108   :  { %v382_v24 = vmul.f32 %v366_v19, %v264_v48  ;;  %v351_v25 = vadd.f32 1.0, %v1339_v21  ;;  %v323_v26 = vmul.f32 0.5, %v1572_v20 }
 0x109   :  { %v287_v27 = vpop.f32.mrf.mxu0 }
 0x10a   :  { %1346 = vtanh.f32 %v323_v26  ;;  %v288_v28 = vadd.f32 %v1555_v34, %v287_v27  ;;  %v396_v29 = vpack.c.bf16 %v382_v24, %v381_v23  ;;  %v367_v32 = vmul.f32 0.5, %v351_v25 }
 0x10b   :  { %v1341_v30 = vpop.eup %1340  ;;  %v289_v31 = vpop.f32.mrf.mxu0 }
 0x10c   :  { %v352_v33 = vadd.f32 1.0, %v1341_v30  ;;  %v324_v35 = vmul.f32 0.5, %v288_v28  ;;  %1232 = vst [vmem:[%s1998_s6 + $0x8] sm:$0xff] %v396_v29   ;;  %1272 = vmatmul.mubr.bf16.vlgmr.msra.gmra.mxu1 %v396_v29  ;;  %v383_v41 = vmul.f32 %v367_v32, %v269_v52 }
 0x10d   :  { %v292_v36 = vpop.f32.mrf.mxu0 }
 0x10e   :  { %v368_v37 = vmul.f32 0.5, %v352_v33  ;;  %1348 = vtanh.f32 %v324_v35  ;;  %v1580_v38 = vadd.f32 %v1555_v34, %v292_v36 }
 0x10f   :  { %v1343_v39 = vpop.eup %1342  ;;  %v294_v40 = vpop.f32.mrf.mxu0 }
 0x110   :  { %v384_v42 = vmul.f32 %v368_v37, %v272_v58  ;;  %v353_v43 = vadd.f32 1.0, %v1343_v39  ;;  %v325_v44 = vmul.f32 0.5, %v1580_v38 }
 0x111   :  { %v295_v45 = vpop.f32.mrf.mxu0 }
 0x112   :  { %1350 = vtanh.f32 %v325_v44  ;;  %v296_v46 = vadd.f32 %v1555_v34, %v295_v45  ;;  %v397_v47 = vpack.c.bf16 %v384_v42, %v383_v41  ;;  %v369_v50 = vmul.f32 0.5, %v353_v43 }
 0x113   :  { %v1345_v48 = vpop.eup %1344  ;;  %v297_v49 = vpop.f32.mrf.mxu0 }
 0x114   :  { %v354_v51 = vadd.f32 1.0, %v1345_v48  ;;  %v326_v53 = vmul.f32 0.5, %v296_v46  ;;  %1233 = vst [vmem:[%s1998_s6 + $0x10] sm:$0xff] %v397_v47   ;;  %1275 = vmatprep.mubr.bf16.mxu1 %v397_v47  ;;  %v385_v58 = vmul.f32 %v369_v50, %v1564_v3  ;;  %v707_v49 = vld [vmem:[%s1999_s5] sm:$0xff] }
 0x115   :  { %v300_v52 = vpop.f32.mrf.mxu0  ;;  %vm823_vm1 = vcmp.gt.f32.partialorder %v707_v49, 0.5 }
 0x116   :  { %v370_v54 = vmul.f32 0.5, %v354_v51  ;;  %1352 = vtanh.f32 %v326_v53  ;;  %v301_v55 = vadd.f32 %v1555_v34, %v300_v52  ;;  %v824_v53 = vsel %vm823_vm1, 1, %v1394_v0 }
 0x117   :  { %v1347_v56 = vpop.eup %1346  ;;  %v302_v57 = vpop.f32.mrf.mxu0  ;;  %v931_v52 = vrot.slane %v707_v49, 2 }
 0x118   :  { %v386_v59 = vmul.f32 %v370_v54, %v280_v11  ;;  %v355_v60 = vadd.f32 1.0, %v1347_v56  ;;  %v327_v61 = vmul.f32 0.5, %v301_v55  ;;  %v986_v54 = vsub.f32 1.0, %v707_v49 }
 0x119   :  { %v303_v62 = vpop.f32.mrf.mxu0 }
 0x11a   :  { %1354 = vtanh.f32 %v327_v61  ;;  %v304_v63 = vadd.f32 %v1555_v34, %v303_v62  ;;  %v398_v1 = vpack.c.bf16 %v386_v59, %v385_v58  ;;  %v371_v5 = vmul.f32 0.5, %v355_v60 }
 0x11b   :  { %v1349_v2 = vpop.eup %1348  ;;  %v305_v4 = vpop.f32.mrf.mxu0 }
 0x11c   :  { %v356_v6 = vadd.f32 1.0, %v1349_v2  ;;  %v328_v7 = vmul.f32 0.5, %v304_v63  ;;  %1234 = vst [vmem:[%s1998_s6 + $0x18] sm:$0xff] %v398_v1   ;;  %1276 = vmatmul.mubr.bf16.gmra.mxu1 %v398_v1  ;;  %v387_v12 = vmul.f32 %v371_v5, %v1572_v20 }
 0x11d   :  { %v308_v8 = vpop.f32.mrf.mxu0 }
 0x11e   :  { %v372_v3 = vmul.f32 0.5, %v356_v6  ;;  %1356 = vtanh.f32 %v328_v7  ;;  %v309_v9 = vadd.f32 %v1555_v34, %v308_v8  ;;  %v1630_v7 = vld [vmem:[%s2000_s4] ss:$0 sm:$0xff]  ;;  %s1395_s4 = smov 64  }
 0x11f   :  { %v1351_v10 = vpop.eup %1350  ;;  %v310_v11 = vpop.f32.mrf.mxu0 }
 0x120   :  { %v388_v13 = vmul.f32 %v372_v3, %v288_v28  ;;  %v357_v14 = vadd.f32 1.0, %v1351_v10  ;;  %v329_v15 = vmul.f32 0.5, %v309_v9 }
 0x121   :  { %v311_v16 = vpop.f32.mrf.mxu0 }
 0x122   :  { %1358 = vtanh.f32 %v329_v15  ;;  %v312_v17 = vadd.f32 %v1555_v34, %v311_v16  ;;  %v399_v18 = vpack.c.bf16 %v388_v13, %v387_v12  ;;  %v373_v22 = vmul.f32 0.5, %v357_v14 }
 0x123   :  { %v1353_v19 = vpop.eup %1352  ;;  %v313_v21 = vpop.f32.mrf.mxu0 }
 0x124   :  { %v358_v23 = vadd.f32 1.0, %v1353_v19  ;;  %v330_v24 = vmul.f32 0.5, %v312_v17  ;;  %1235 = vst [vmem:[%s1998_s6 + $0x20] sm:$0xff] %v399_v18   ;;  %1279 = vmatprep.mubr.bf16.mxu1 %v399_v18  ;;  %v389_v26 = vmul.f32 %v373_v22, %v1580_v38 }
 0x126   :  { %v374_v25 = vmul.f32 0.5, %v358_v23  ;;  %1360 = vtanh.f32 %v330_v24 }
 0x127   :  { %v1355_v20 = vpop.eup %1354 }
 0x128   :  { %v390_v27 = vmul.f32 %v374_v25, %v296_v46  ;;  %v359_v28 = vadd.f32 1.0, %v1355_v20  ;;  %v709_v46 = vlaneseq }
 0x12a   :  { %v400_v29 = vpack.c.bf16 %v390_v27, %v389_v26  ;;  %v375_v30 = vmul.f32 0.5, %v359_v28  ;;  %v1610_v47 = vshrl.u32 %v709_v46, 7 }
 0x12b   :  { %v1357_v34 = vpop.eup %1356 }
 0x12c   :  { %v360_v31 = vadd.f32 1.0, %v1357_v34  ;;  %1236 = vst [vmem:[%s1998_s6 + $0x28] sm:$0xff] %v400_v29   ;;  %1280 = vmatmul.mubr.bf16.gmra.mxu1 %v400_v29  ;;  %v391_v35 = vmul.f32 %v375_v30, %v301_v55  ;;  %v712_v48 = vadd.s32 16, %v1610_v47  ;;  %v827_v51 = vsub.s32 2, %v1610_v47 }
 0x12d   :  { %v987_v55 = vrot.slane %v707_v49, 1  ;;  %v713_v56 = vadd.s32 24, %v1610_v47  ;;  %v775_v60 = vshra.s32 %v1610_v47, 3  ;;  %v912_v61 = vsub.s32 0, %v1610_v47 }
 0x12e   :  { %v376_v32 = vmul.f32 0.5, %v360_v31  ;;  %v777_v50 = vshra.s32 %v712_v48, 3  ;;  %v745_v57 = vand.u32 7, %v712_v48  ;;  %v1619_v59 = vrot.slane %v824_v53, %v827_v51 }
 0x12f   :  { %v1359_v33 = vpop.eup %1358  ;;  %v711_v62 = vadd.s32 8, %v1610_v47  ;;  %v952_v1 = vsub.s32 1, %v1610_v47  ;;  %v989_v2 = vsub.f32 %v986_v54, %v987_v55  ;;  %v778_v0 = vshra.s32 %v713_v56, 3 }
 0x130   :  { %v392_v36 = vmul.f32 %v376_v32, %v304_v63  ;;  %v361_v37 = vadd.f32 1.0, %v1359_v33  ;;  %v793_v58 = vand.u32 7, %v777_v50  ;;  %v933_v63 = vmul.f32 %v931_v52, %v707_v49 }
 0x131   :  { %v761_v4 = vcvt.s32.f32 %v745_v57  ;;  %v743_v6 = vand.u32 7, %v1610_v47  ;;  %vm829_vm2 = vcmp.eq.s32.totalorder %v1619_v59, 1  ;;  %v1632_v8 = vand.u32 7, %v775_v60 }
 0x132   :  { %v401_v39 = vpack.c.bf16 %v392_v36, %v391_v35  ;;  %v377_v41 = vmul.f32 0.5, %v361_v37  ;;  %v809_v5 = vcvt.s32.f32 %v793_v58  ;;  %v746_v3 = vand.u32 7, %v713_v56 }
 0x133   :  { %v1361_v40 = vpop.eup %1360  ;;  %v1635_v10 = vrot.slane %v707_v49, %v912_v61  ;;  %v776_v11 = vshra.s32 %v711_v62, 3  ;;  %v1637_v12 = vrot.slane %v933_v63, %v952_v1  ;;  %v1639_v13 = vrot.slane %v989_v2, %v912_v61 }
 0x134   :  { %v362_v38 = vadd.f32 1.0, %v1361_v40  ;;  %1237 = vst [vmem:[%s1998_s6 + $0x30] sm:$0xff] %v401_v39   ;;  %1283 = vmatprep.mubr.bf16.mxu1 %v401_v39  ;;  %v393_v43 = vmul.f32 %v377_v41, %v309_v9  ;;  %v716_v9 = vadd.s32 48, %v1610_v47  ;;  %v1641_v15 = vand.u32 7, %v778_v0 }
 0x135   :  { %v714_v16 = vadd.s32 32, %v1610_v47  ;;  %v1649_v18 = vsel %vm829_vm2, %v761_v4, %v809_v5  ;;  %v759_v19 = vcvt.s32.f32 %v743_v6  ;;  %v717_v21 = vadd.s32 56, %v1610_v47 }
 0x136   :  { %v378_v42 = vmul.f32 0.5, %v362_v38  ;;  %v807_v23 = vcvt.s32.f32 %v1632_v8  ;;  %v762_v24 = vcvt.s32.f32 %v746_v3  ;;  %v744_v25 = vand.u32 7, %v711_v62 }
 0x137   :  { %v781_v20 = vshra.s32 %v716_v9, 3  ;;  %v792_v28 = vand.u32 7, %v776_v11  ;;  %v715_v29 = vadd.s32 40, %v1610_v47  ;;  %v810_v30 = vcvt.s32.f32 %v1641_v15 }
 0x138   :  { %v394_v44 = vmul.f32 %v378_v42, %v312_v17  ;;  %v779_v31 = vshra.s32 %v714_v16, 3  ;;  %v720_v32 = vadd.s32 80, %v1610_v47  ;;  %v718_v33 = vadd.s32 64, %v1610_v47 }
 0x139   :  { %v782_v37 = vshra.s32 %v717_v21, 3  ;;  %v760_v40 = vcvt.s32.f32 %v744_v25  ;;  %v749_v41 = vand.u32 7, %v716_v9  ;;  %v797_v38 = vand.u32 7, %v781_v20 }
 0x13a   :  { %v402_v45 = vpack.c.bf16 %v394_v44, %v393_v43  ;;  %v721_v42 = vadd.s32 88, %v1610_v47  ;;  %v747_v48 = vand.u32 7, %v714_v16  ;;  %v795_v49 = vand.u32 7, %v779_v31 }
 0x13b   :  { %v785_v50 = vshra.s32 %v720_v32, 3  ;;  %v783_v51 = vshra.s32 %v718_v33, 3  ;;  %v750_v52 = vand.u32 7, %v717_v21  ;;  %v798_v54 = vand.u32 7, %v782_v37 }
 0x13c   :  { %1238 = vst [vmem:[%s1998_s6 + $0x38] sm:$0xff] %v402_v45   ;;  %1284 = vmatmul.mubr.bf16.gmra.mxu1 %v402_v45  ;;  %v780_v45 = vshra.s32 %v715_v29, 3  ;;  %v808_v55 = vcvt.s32.f32 %v792_v28  ;;  %v765_v56 = vcvt.s32.f32 %v749_v41  ;;  %v786_v57 = vshra.s32 %v721_v42, 3 }
 0x13d   :  { %v719_v58 = vadd.s32 72, %v1610_v47  ;;  %v813_v60 = vcvt.s32.f32 %v797_v38  ;;  %v748_v61 = vand.u32 7, %v715_v29  ;;  %v753_v63 = vand.u32 7, %v720_v32 }
 0x13e   :  { %v796_v62 = vand.u32 7, %v780_v45  ;;  %v801_v1 = vand.u32 7, %v785_v50  ;;  %v751_v2 = vand.u32 7, %v718_v33  ;;  %v799_v0 = vand.u32 7, %v783_v51 }
 0x13f   :  { %v766_v4 = vcvt.s32.f32 %v750_v52  ;;  %v814_v5 = vcvt.s32.f32 %v798_v54  ;;  %v763_v6 = vcvt.s32.f32 %v747_v48  ;;  %v811_v8 = vcvt.s32.f32 %v795_v49 }
 0x140   :  { %v1674_v3 = vsel %vm829_vm2, %v759_v19, %v807_v23  ;;  %v754_v9 = vand.u32 7, %v721_v42  ;;  %v802_v11 = vand.u32 7, %v786_v57  ;;  %v1678_v15 = vsel %vm829_vm2, %v762_v24, %v810_v30 }
 0x141   :  { %v1682_v16 = vsel %vm829_vm2, %v760_v40, %v808_v55  ;;  %v764_v21 = vcvt.s32.f32 %v748_v61  ;;  %v769_v20 = vcvt.s32.f32 %v753_v63  ;;  %v767_v28 = vcvt.s32.f32 %v751_v2 }
 0x142   :  { %v815_v29 = vcvt.s32.f32 %v799_v0  ;;  %v1689_v23 = vsel %vm829_vm2, %v765_v56, %v813_v60  ;;  %v1693_v24 = vsel %vm829_vm2, %v766_v4, %v814_v5  ;;  %v770_v32 = vcvt.s32.f32 %v754_v9 }
 0x143   :  { %v818_v33 = vcvt.s32.f32 %v802_v11  ;;  %v1718_v49 = vadd.s32 96, %v1610_v47  ;;  %v1721_v50 = vadd.s32 112, %v1610_v47 }
 0x144   :  { %v1715_v48 = vsel %vm829_vm2, %v767_v28, %v815_v29 }
 0x145   :  { %v1729_v57 = vsel %vm829_vm2, %v770_v32, %v818_v33  ;;  %v787_v4 = vshra.s32 %v1718_v49, 3  ;;  %v789_v5 = vshra.s32 %v1721_v50, 3 }
 0x1cc   :  { %v1273_v14 = vpop.f32.mrf.mxu1 }
 0x1cd   :  { %v1645_v17 = vadd.f32 %v1273_v14, %v1630_v7  ;;  %v784_v14 = vshra.s32 %v719_v58, 3 }
 0x1ce   :  { %v580_v22 = vpop.f32.mrf.mxu1 }
 0x1cf   :  { %v645_v26 = vmul.f32 0.5, %v1645_v17  ;;  %v1655_v27 = vadd.f32 %v1630_v7, %v580_v22  ;;  %v812_v22 = vcvt.s32.f32 %v796_v62  ;;  %v1699_v37 = vand.u32 7, %v784_v14 }
 0x1d0   :  { %v1274_v34 = vpop.f32.mrf.mxu1 }
 0x1d1   :  { %1362 = vtanh.f32 %v645_v26  ;;  %v643_v35 = vmul.f32 0.5, %v1655_v27  ;;  %v1663_v36 = vadd.f32 %v1274_v34, %v1630_v7  ;;  %v817_v26 = vcvt.s32.f32 %v801_v1 }
 0x1d2   :  { %v583_v39 = vpop.f32.mrf.mxu1  ;;  %v1697_v34 = vsel %vm829_vm2, %v763_v6, %v811_v8  ;;  %v1707_v38 = vsel %vm829_vm2, %v764_v21, %v812_v22  ;;  %v816_v60 = vcvt.s32.f32 %v1699_v37  ;;  %v757_v22 = vand.u32 7, %v1721_v50 }
 0x1d3   :  { %1364 = vtanh.f32 %v643_v35  ;;  %v646_v43 = vmul.f32 0.5, %v1663_v36  ;;  %v1668_v44 = vadd.f32 %v1630_v7, %v583_v39  ;;  %v752_v35 = vand.u32 7, %v719_v58 }
 0x1d4   :  { %v1711_v45 = vsel %vm829_vm2, %v769_v20, %v817_v26 }
 0x1d5   :  { %1366 = vtanh.f32 %v646_v43  ;;  %v644_v53 = vmul.f32 0.5, %v1668_v44  ;;  %v1731_v58 = vcvt.s32.f32 %v752_v35 }
 0x1d7   :  { %1368 = vtanh.f32 %v644_v53 }
 0x1dc   :  { %v1277_v25 = vpop.f32.mrf.mxu1 }
 0x1dd   :  { %v1685_v19 = vadd.f32 %v1277_v25, %v1630_v7 }
 0x1de   :  { %v1363_v30 = vpop.eup %1362  ;;  %v596_v31 = vpop.f32.mrf.mxu1 }
 0x1df   :  { %v677_v39 = vadd.f32 1.0, %v1363_v30  ;;  %v649_v40 = vmul.f32 0.5, %v1685_v19  ;;  %v1703_v41 = vadd.f32 %v1630_v7, %v596_v31  ;;  %v1744_v30 = vand.u32 7, %v789_v5 }
 0x1e0   :  { %v1365_v42 = vpop.eup %1364  ;;  %v1278_v43 = vpop.f32.mrf.mxu1  ;;  %v1747_v31 = vadd.s32 120, %v1610_v47 }
 0x1e1   :  { %v693_v51 = vmul.f32 0.5, %v677_v39  ;;  %v675_v53 = vadd.f32 1.0, %v1365_v42  ;;  %1370 = vtanh.f32 %v649_v40  ;;  %v647_v52 = vmul.f32 0.5, %v1703_v41 }
 0x1e2   :  { %v1367_v54 = vpop.eup %1366  ;;  %v1725_v55 = vadd.f32 %v1278_v43, %v1630_v7  ;;  %v599_v56 = vpop.f32.mrf.mxu1  ;;  %v1752_v43 = vand.u32 7, %v787_v4 }
 0x1e3   :  { %v691_v61 = vmul.f32 0.5, %v675_v53  ;;  %v678_v62 = vadd.f32 1.0, %v1367_v54  ;;  %1372 = vtanh.f32 %v647_v52  ;;  %v1735_v63 = vadd.f32 %v1630_v7, %v599_v56 }
 0x1e4   :  { %v1369_v1 = vpop.eup %1368  ;;  %v650_v2 = vmul.f32 0.5, %v1725_v55  ;;  %v848_v0 = vmul.f32 2.0, %v693_v51  ;;  %v936_v21 = vmul.f32 %v693_v51, %v693_v51  ;;  %v996_v40 = vmul.f32 %v1639_v13, %v693_v51 }
 0x1e5   :  { %v694_v6 = vmul.f32 0.5, %v678_v62  ;;  %v676_v8 = vadd.f32 1.0, %v1369_v1  ;;  %v648_v9 = vmul.f32 0.5, %v1735_v63  ;;  %v846_v11 = vmul.f32 2.0, %v691_v61 }
 0x1e6   :  { %1374 = vtanh.f32 %v650_v2  ;;  %v864_v14 = vadd.f32 %v848_v0, %v1649_v18  ;;  %v934_v29 = vmul.f32 %v691_v61, %v691_v61  ;;  %v755_v18 = vand.u32 7, %v1718_v49 }
 0x1e7   :  { %v849_v25 = vmul.f32 2.0, %v694_v6  ;;  %v692_v20 = vmul.f32 0.5, %v676_v8  ;;  %1376 = vtanh.f32 %v648_v9  ;;  %v862_v26 = vadd.f32 %v846_v11, %v1674_v3 }
 0x1e8   :  { %v1162_v28 = vadd.f32 -0.5, %v864_v14  ;;  %v937_v42 = vmul.f32 %v694_v6, %v694_v6  ;;  %v956_v3 = vmul.f32 %v1637_v12, %v936_v21  ;;  %v954_v1 = vmul.f32 %v1637_v12, %v934_v29 }
 0x1e9   :  { %v847_v32 = vmul.f32 2.0, %v692_v20  ;;  %v1160_v33 = vadd.f32 -0.5, %v862_v26  ;;  %v865_v35 = vadd.f32 %v849_v25, %v1678_v15  ;;  %v994_v15 = vmul.f32 %v1639_v13, %v691_v61 }
 0x1ea   :  { %v896_v39 = vmul.f32 8.0, %v1162_v28  ;;  %v935_v2 = vmul.f32 %v692_v20, %v692_v20  ;;  %v997_v14 = vmul.f32 %v1639_v13, %v694_v6  ;;  %v995_v21 = vmul.f32 %v1639_v13, %v692_v20 }
 0x1eb   :  { %v894_v53 = vmul.f32 8.0, %v1160_v33  ;;  %v1163_v52 = vadd.f32 -0.5, %v865_v35  ;;  %v863_v54 = vadd.f32 %v847_v32, %v1682_v16  ;;  %v957_v16 = vmul.f32 %v1637_v12, %v937_v42 }
 0x1ec   :  { %v1281_v56 = vpop.f32.mrf.mxu1  ;;  %v916_v62 = vmul.f32 %v1635_v10, %v896_v39  ;;  %v819_v50 = vcvt.s32.f32 %v1752_v43 }
 0x1ed   :  { %v1760_v0 = vadd.f32 %v1281_v56, %v1630_v7  ;;  %v914_v51 = vmul.f32 %v1635_v10, %v894_v53  ;;  %v897_v4 = vmul.f32 8.0, %v1163_v52  ;;  %v1161_v5 = vadd.f32 -0.5, %v863_v54 }
 0x1ee   :  { %v1371_v8 = vpop.eup %1370  ;;  %v612_v9 = vpop.f32.mrf.mxu1  ;;  %v972_v11 = vadd.f32 %v956_v3, %v916_v62  ;;  %v955_v3 = vmul.f32 %v1637_v12, %v935_v2 }
 0x1ef   :  { %v681_v25 = vadd.f32 1.0, %v1371_v8  ;;  %v653_v61 = vmul.f32 0.5, %v1760_v0  ;;  %v1768_v26 = vadd.f32 %v1630_v7, %v612_v9  ;;  %v970_v28 = vadd.f32 %v954_v1, %v914_v51 }
 0x1f0   :  { %v1373_v29 = vpop.eup %1372  ;;  %v1282_v32 = vpop.f32.mrf.mxu1  ;;  %v1012_v33 = vadd.f32 %v996_v40, %v972_v11  ;;  %v917_v35 = vmul.f32 %v1635_v10, %v897_v4  ;;  %v895_v39 = vmul.f32 8.0, %v1161_v5 }
 0x1f1   :  { %v697_v42 = vmul.f32 0.5, %v681_v25  ;;  %v679_v53 = vadd.f32 1.0, %v1373_v29  ;;  %1378 = vtanh.f32 %v653_v61  ;;  %v651_v6 = vmul.f32 0.5, %v1768_v26 }
 0x1f2   :  { %v1774_v20 = vadd.f32 %v1282_v32, %v1630_v7  ;;  %1033 = vrot.lane.b32.xlu1 %v1012_v33, %s1395_s4  ;;  %v615_v52 = vpop.f32.mrf.mxu1  ;;  %v1010_v54 = vadd.f32 %v994_v15, %v970_v28  ;;  %v973_v56 = vadd.f32 %v957_v16, %v917_v35  ;;  %v915_v40 = vmul.f32 %v1635_v10, %v895_v39 }
 0x1f3   :  { %v1375_v62 = vpop.eup %1374  ;;  %v852_v1 = vmul.f32 2.0, %v697_v42  ;;  %v695_v51 = vmul.f32 0.5, %v679_v53  ;;  %1380 = vtanh.f32 %v651_v6  ;;  %v1779_v2 = vadd.f32 %v1630_v7, %v615_v52 }
 0x1f4   :  { %v1377_v4 = vpop.eup %1376  ;;  %v682_v5 = vadd.f32 1.0, %v1375_v62  ;;  %v654_v8 = vmul.f32 0.5, %v1774_v20  ;;  %1029 = vrot.lane.b32.xlu0 %v1010_v54, %s1395_s4  ;;  %v1013_v9 = vadd.f32 %v997_v14, %v973_v56  ;;  %v971_v11 = vadd.f32 %v955_v3, %v915_v40 }
 0x1f5   :  { %v850_v25 = vmul.f32 2.0, %v695_v51  ;;  %v680_v15 = vadd.f32 1.0, %v1377_v4  ;;  %v652_v16 = vmul.f32 0.5, %v1779_v2  ;;  %v868_v61 = vadd.f32 %v852_v1, %v1689_v23 }
 0x1f6   :  { %v698_v28 = vmul.f32 0.5, %v682_v5  ;;  %1382 = vtanh.f32 %v654_v8  ;;  %1035 = vrot.lane.b32.xlu1 %v1013_v9, %s1395_s4  ;;  %v1011_v29 = vadd.f32 %v995_v21, %v971_v11  ;;  %v1787_v32 = vadd.s32 104, %v1610_v47 }
 0x1f7   :  { %v1789_v33 = vmul.f32 0.5, %v680_v15  ;;  %1384 = vtanh.f32 %v652_v16  ;;  %v1166_v35 = vadd.f32 -0.5, %v868_v61  ;;  %v940_v14 = vmul.f32 %v697_v42, %v697_v42 }
 0x1f8   :  { %v853_v39 = vmul.f32 2.0, %v698_v28  ;;  %1031 = vrot.lane.b32.xlu0 %v1011_v29, %s1395_s4  ;;  %v1794_v3 = vcvt.s32.f32 %v757_v22  ;;  %v821_v23 = vcvt.s32.f32 %v1744_v30  ;;  %v790_v53 = vshra.s32 %v1747_v31, 3 }
 0x1f9   :  { %v851_v21 = vmul.f32 2.0, %v1789_v33  ;;  %v900_v47 = vmul.f32 8.0, %v1166_v35  ;;  %v866_v6 = vadd.f32 %v850_v25, %v1697_v34  ;;  %v1802_v52 = vcvt.s32.f32 %v755_v18 }
 0x1fa   :  { %v869_v54 = vadd.f32 %v853_v39, %v1693_v24  ;;  %v941_v56 = vmul.f32 %v698_v28, %v698_v28  ;;  %v938_v40 = vmul.f32 %v695_v51, %v695_v51  ;;  %v960_v62 = vmul.f32 %v1637_v12, %v940_v14 }
 0x1fb   :  { %v920_v22 = vmul.f32 %v1635_v10, %v900_v47  ;;  %v1164_v1 = vadd.f32 -0.5, %v866_v6  ;;  %v867_v4 = vadd.f32 %v851_v21, %v1707_v38  ;;  %v1000_v34 = vmul.f32 %v1639_v13, %v697_v42 }
 0x1fc   :  { %v1285_v5 = vpop.f32.mrf.mxu1  ;;  %v1167_v8 = vadd.f32 -0.5, %v869_v54  ;;  %v1001_v49 = vmul.f32 %v1639_v13, %v698_v28  ;;  %v939_v24 = vmul.f32 %v1789_v33, %v1789_v33  ;;  %v961_v38 = vmul.f32 %v1637_v12, %v941_v56 }
 0x1fd   :  { %v1814_v18 = vadd.f32 %v1285_v5, %v1630_v7  ;;  %v976_v9 = vadd.f32 %v960_v62, %v920_v22  ;;  %v898_v11 = vmul.f32 8.0, %v1164_v1  ;;  %v1165_v25 = vadd.f32 -0.5, %v867_v4 }
 0x1fe   :  { %v1379_v15 = vpop.eup %1378  ;;  %v628_v16 = vpop.f32.mrf.mxu1  ;;  %v901_v61 = vmul.f32 8.0, %v1167_v8  ;;  %v958_v29 = vmul.f32 %v1637_v12, %v938_v40  ;;  %v998_v42 = vmul.f32 %v1639_v13, %v695_v51  ;;  %v959_v56 = vmul.f32 %v1637_v12, %v939_v24 }
 0x1ff   :  { %v685_v35 = vadd.f32 1.0, %v1379_v15  ;;  %v657_v28 = vmul.f32 0.5, %v1814_v18  ;;  %v1821_v14 = vadd.f32 %v1630_v7, %v628_v16  ;;  %v1016_v39 = vadd.f32 %v1000_v34, %v976_v9 }
 0x200   :  { %v1381_v21 = vpop.eup %1380  ;;  %v1286_v47 = vpop.f32.mrf.mxu1  ;;  %v921_v6 = vmul.f32 %v1635_v10, %v901_v61  ;;  %v918_v54 = vmul.f32 %v1635_v10, %v898_v11  ;;  %v899_v22 = vmul.f32 8.0, %v1165_v25  ;;  %v844_v37 = vsel %vm829_vm2, %v1794_v3, %v821_v23 }
 0x201   :  { %v701_v62 = vmul.f32 0.5, %v685_v35  ;;  %v683_v40 = vadd.f32 1.0, %v1381_v21  ;;  %1386 = vtanh.f32 %v657_v28  ;;  %v655_v51 = vmul.f32 0.5, %v1821_v14  ;;  %1041 = vrot.lane.b32.xlu0 %v1016_v39, %s1395_s4 }
 0x202   :  { %v1829_v1 = vadd.f32 %v1286_v47, %v1630_v7  ;;  %v631_v4 = vpop.f32.mrf.mxu1  ;;  %v977_v5 = vadd.f32 %v961_v38, %v921_v6  ;;  %v974_v34 = vadd.f32 %v958_v29, %v918_v54  ;;  %v919_v8 = vmul.f32 %v1635_v10, %v899_v22 }
 0x203   :  { %v1383_v9 = vpop.eup %1382  ;;  %v856_v11 = vmul.f32 2.0, %v701_v62  ;;  %v1832_v25 = vmul.f32 0.5, %v683_v40  ;;  %1388 = vtanh.f32 %v655_v51  ;;  %v1835_v24 = vadd.f32 %v1630_v7, %v631_v4 }
 0x204   :  { %v1385_v15 = vpop.eup %1384  ;;  %v686_v16 = vadd.f32 1.0, %v1383_v9  ;;  %v658_v61 = vmul.f32 0.5, %v1829_v1  ;;  %v1017_v35 = vadd.f32 %v1001_v49, %v977_v5  ;;  %v1014_v28 = vadd.f32 %v998_v42, %v974_v34 }
 0x205   :  { %v854_v39 = vmul.f32 2.0, %v1832_v25  ;;  %v684_v38 = vadd.f32 1.0, %v1385_v15  ;;  %v656_v29 = vmul.f32 0.5, %v1835_v24  ;;  %v975_v21 = vadd.f32 %v959_v56, %v919_v8 }
 0x206   :  { %v702_v47 = vmul.f32 0.5, %v686_v16  ;;  %1390 = vtanh.f32 %v658_v61  ;;  %1043 = vrot.lane.b32.xlu1 %v1017_v35, %s1395_s4  ;;  %1037 = vrot.lane.b32.xlu0 %v1014_v28, %s1395_s4  ;;  %v999_v7 = vmul.f32 %v1639_v13, %v1789_v33  ;;  %v872_v6 = vadd.f32 %v856_v11, %v1711_v45 }
 0x207   :  { %v1845_v54 = vmul.f32 0.5, %v684_v38  ;;  %1392 = vtanh.f32 %v656_v29  ;;  %v839_v49 = vsel %vm829_vm2, %v1731_v58, %v816_v60  ;;  %v788_v42 = vshra.s32 %v1787_v32, 3 }
 0x208   :  { %v857_v22 = vmul.f32 2.0, %v702_v47  ;;  %v1015_v56 = vadd.f32 %v999_v7, %v975_v21  ;;  %v1170_v40 = vadd.f32 -0.5, %v872_v6  ;;  %v944_v51 = vmul.f32 %v701_v62, %v701_v62 }
 0x209   :  { %v855_v4 = vmul.f32 2.0, %v1845_v54  ;;  %v870_v33 = vadd.f32 %v854_v39, %v1715_v48  ;;  %v758_v45 = vand.u32 7, %v1747_v31  ;;  %v842_v5 = vsel %vm829_vm2, %v1802_v52, %v819_v50 }
 0x20a   :  { %1039 = vrot.lane.b32.xlu1 %v1015_v56, %s1395_s4  ;;  %v904_v58 = vmul.f32 8.0, %v1170_v40  ;;  %v873_v60 = vadd.f32 %v857_v22, %v1729_v57  ;;  %v806_v48 = vand.u32 7, %v790_v53  ;;  %v942_v3 = vmul.f32 %v1832_v25, %v1832_v25 }
 0x20b   :  { %v1168_v30 = vadd.f32 -0.5, %v870_v33  ;;  %v871_v23 = vadd.f32 %v855_v4, %v839_v49  ;;  %v756_v34 = vand.u32 7, %v1787_v32  ;;  %v964_v57 = vmul.f32 %v1637_v12, %v944_v51 }
 0x20c   :  { %v924_v8 = vmul.f32 %v1635_v10, %v904_v58  ;;  %v1171_v9 = vadd.f32 -0.5, %v873_v60  ;;  %v945_v43 = vmul.f32 %v702_v47, %v702_v47  ;;  %v804_v16 = vand.u32 7, %v788_v42 }
 0x20d   :  { %v902_v11 = vmul.f32 8.0, %v1168_v30  ;;  %v1169_v15 = vadd.f32 -0.5, %v871_v23  ;;  %v774_v52 = vcvt.s32.f32 %v758_v45  ;;  %v1004_v53 = vmul.f32 %v1639_v13, %v701_v62 }
 0x20e   :  { %v1387_v50 = vpop.eup %1386  ;;  %v980_v31 = vadd.f32 %v964_v57, %v924_v8  ;;  %v905_v61 = vmul.f32 8.0, %v1171_v9  ;;  %v943_v35 = vmul.f32 %v1845_v54, %v1845_v54  ;;  %v962_v39 = vmul.f32 %v1637_v12, %v942_v3 }
 0x20f   :  { %v689_v28 = vadd.f32 1.0, %v1387_v50  ;;  %v922_v32 = vmul.f32 %v1635_v10, %v902_v11  ;;  %v903_v38 = vmul.f32 8.0, %v1169_v15  ;;  %v965_v6 = vmul.f32 %v1637_v12, %v945_v43 }
 0x210   :  { %v1389_v29 = vpop.eup %1388  ;;  %v1020_v21 = vadd.f32 %v1004_v53, %v980_v31  ;;  %v925_v7 = vmul.f32 %v1635_v10, %v905_v61  ;;  %v822_v49 = vcvt.s32.f32 %v806_v48  ;;  %v1005_v51 = vmul.f32 %v1639_v13, %v702_v47 }
 0x211   :  { %v705_v42 = vmul.f32 0.5, %v689_v28  ;;  %v687_v22 = vadd.f32 1.0, %v1389_v29  ;;  %v978_v62 = vadd.f32 %v962_v39, %v922_v32  ;;  %v923_v56 = vmul.f32 %v1635_v10, %v903_v38 }
 0x212   :  { %1049 = vrot.lane.b32.xlu0 %v1020_v21, %s1395_s4  ;;  %v981_v40 = vadd.f32 %v965_v6, %v925_v7  ;;  %v1002_v4 = vmul.f32 %v1639_v13, %v1832_v25  ;;  %v963_v33 = vmul.f32 %v1637_v12, %v943_v35  ;;  %v772_v30 = vcvt.s32.f32 %v756_v34 }
 0x213   :  { %v1391_v45 = vpop.eup %1390  ;;  %v860_v58 = vmul.f32 2.0, %v705_v42  ;;  %v703_v60 = vmul.f32 0.5, %v687_v22  ;;  %v820_v48 = vcvt.s32.f32 %v804_v16  ;;  %v1003_v25 = vmul.f32 %v1639_v13, %v1845_v54 }
 0x214   :  { %v1393_v3 = vpop.eup %1392  ;;  %v690_v23 = vadd.f32 1.0, %v1391_v45  ;;  %v1021_v8 = vadd.f32 %v1005_v51, %v981_v40  ;;  %v1018_v57 = vadd.f32 %v1002_v4, %v978_v62  ;;  %v979_v9 = vadd.f32 %v963_v33, %v923_v56 }
 0x215   :  { %v858_v43 = vmul.f32 2.0, %v703_v60  ;;  %v688_v11 = vadd.f32 1.0, %v1393_v3  ;;  %v876_v47 = vadd.f32 %v860_v58, %v844_v37  ;;  %v845_v34 = vsel %vm829_vm2, %v774_v52, %v822_v49 }
 0x216   :  { %v706_v15 = vmul.f32 0.5, %v690_v23  ;;  %1051 = vrot.lane.b32.xlu1 %v1021_v8, %s1395_s4  ;;  %1045 = vrot.lane.b32.xlu0 %v1018_v57, %s1395_s4  ;;  %v1019_v53 = vadd.f32 %v1003_v25, %v979_v9  ;;  %v843_v61 = vsel %vm829_vm2, %v772_v30, %v820_v48  ;;  %v946_v39 = vmul.f32 %v703_v60, %v703_v60 }
 0x217   :  { %v704_v50 = vmul.f32 0.5, %v688_v11  ;;  %v874_v31 = vadd.f32 %v858_v43, %v842_v5  ;;  %v1174_v35 = vadd.f32 -0.5, %v876_v47  ;;  %v948_v21 = vmul.f32 %v705_v42, %v705_v42 }
 0x218   :  { %v861_v16 = vmul.f32 2.0, %v706_v15  ;;  %v966_v6 = vmul.f32 %v1637_v12, %v946_v39  ;;  %v1006_v22 = vmul.f32 %v1639_v13, %v703_v60  ;;  %v949_v4 = vmul.f32 %v706_v15, %v706_v15 }
 0x219   :  { %v859_v28 = vmul.f32 2.0, %v704_v50  ;;  %v1172_v32 = vadd.f32 -0.5, %v874_v31  ;;  %v908_v38 = vmul.f32 8.0, %v1174_v35  ;;  %v947_v5 = vmul.f32 %v704_v50, %v704_v50 }
 0x21a   :  { %1047 = vrot.lane.b32.xlu1 %v1019_v53, %s1395_s4  ;;  %v877_v29 = vadd.f32 %v861_v16, %v845_v34  ;;  %v968_v51 = vmul.f32 %v1637_v12, %v948_v21  ;;  %v1007_v23 = vmul.f32 %v1639_v13, %v704_v50  ;;  %v1008_v60 = vmul.f32 %v1639_v13, %v705_v42 }
 0x21b   :  { %v906_v54 = vmul.f32 8.0, %v1172_v32  ;;  %v875_v37 = vadd.f32 %v859_v28, %v843_v61  ;;  %v928_v59 = vmul.f32 %v1635_v10, %v908_v38  ;;  %v967_v33 = vmul.f32 %v1637_v12, %v947_v5 }
 0x21c   :  { %v1175_v7 = vadd.f32 -0.5, %v877_v29  ;;  %v969_v8 = vmul.f32 %v1637_v12, %v949_v4  ;;  %v1009_v11 = vmul.f32 %v1639_v13, %v706_v15 }
 0x21d   :  { %v926_v52 = vmul.f32 %v1635_v10, %v906_v54  ;;  %v1173_v49 = vadd.f32 -0.5, %v875_v37  ;;  %v984_v30 = vadd.f32 %v968_v51, %v928_v59 }
 0x21e   :  { %v909_v62 = vmul.f32 8.0, %v1175_v7 }
 0x21f   :  { %v982_v56 = vadd.f32 %v966_v6, %v926_v52  ;;  %v907_v40 = vmul.f32 8.0, %v1173_v49  ;;  %v1024_v9 = vadd.f32 %v1008_v60, %v984_v30 }
 0x220   :  { %v929_v48 = vmul.f32 %v1635_v10, %v909_v62 }
 0x221   :  { %v1022_v45 = vadd.f32 %v1006_v22, %v982_v56  ;;  %v927_v58 = vmul.f32 %v1635_v10, %v907_v40  ;;  %v1027_v10 = vand.u32 127, %v709_v46 }
 0x222   :  { %v985_v43 = vadd.f32 %v969_v8, %v929_v48 }
 0x223   :  { %1053 = vrot.lane.b32.xlu0 %v1022_v45, %s1395_s4  ;;  %v983_v3 = vadd.f32 %v967_v33, %v927_v58  ;;  %vm1028_vm3 = vcmp.lt.s32.totalorder %v1027_v10, 64 }
 0x224   :  { %v1025_v25 = vadd.f32 %v1009_v11, %v985_v43 }
 0x225   :  { %v1023_v57 = vadd.f32 %v1007_v23, %v983_v3 }
 0x227   :  { %1055 = vrot.lane.b32.xlu1 %v1023_v57, %s1395_s4  ;;  %1057 = vrot.lane.b32.xlu0 %v1024_v9, %s1395_s4 }
 0x22b   :  { %1059 = vrot.lane.b32.xlu1 %v1025_v25, %s1395_s4 }
 0x264   :  { %v1034_v47 = vpop.permute.xlu1 %1033 }
 0x265   :  { %v1063_v42 = vsel %vm1028_vm3, %v1645_v17, %v1034_v47 }
 0x266   :  { %1079 = vst [vmem:[%s2001_s7 + $0x10] sm:$0xff] %v1063_v42  ;;  %v1030_v12 = vpop.permute.xlu0 %1029 }
 0x267   :  { %v1061_v50 = vsel %vm1028_vm3, %v1655_v27, %v1030_v12 }
 0x268   :  { %1077 = vst [vmem:[%s2001_s7] sm:$0xff] %v1061_v50  ;;  %v1036_v13 = vpop.permute.xlu1 %1035 }
 0x269   :  { %v1064_v46 = vsel %vm1028_vm3, %v1663_v36, %v1036_v13 }
 0x26a   :  { %1080 = vst [vmem:[%s2001_s7 + $0x18] sm:$0xff] %v1064_v46  ;;  %v1032_v17 = vpop.permute.xlu0 %1031 }
 0x26b   :  { %v1062_v15 = vsel %vm1028_vm3, %v1668_v44, %v1032_v17 }
 0x26c   :  { %1078 = vst [vmem:[%s2001_s7 + $0x8] sm:$0xff] %v1062_v15 }
 0x273   :  { %v1042_v27 = vpop.permute.xlu0 %1041 }
 0x274   :  { %v1067_v31 = vsel %vm1028_vm3, %v1685_v19, %v1042_v27 }
 0x275   :  { %1083 = vst [vmem:[%s2001_s7 + $0x30] sm:$0xff] %v1067_v31 }
 0x278   :  { %v1044_v36 = vpop.permute.xlu1 %1043  ;;  %v1038_v34 = vpop.permute.xlu0 %1037 }
 0x279   :  { %v1068_v16 = vsel %vm1028_vm3, %v1725_v55, %v1044_v36  ;;  %v1065_v44 = vsel %vm1028_vm3, %v1703_v41, %v1038_v34 }
 0x27a   :  { %1084 = vst [vmem:[%s2001_s7 + $0x38] sm:$0xff] %v1068_v16  ;;  %1081 = vst [vmem:[%s2001_s7 + $0x20] sm:$0xff] %v1065_v44 }
 0x27c   :  { %v1040_v19 = vpop.permute.xlu1 %1039 }
 0x27d   :  { %v1066_v53 = vsel %vm1028_vm3, %v1735_v63, %v1040_v19 }
 0x27e   :  { %1082 = vst [vmem:[%s2001_s7 + $0x28] sm:$0xff] %v1066_v53 }
 0x284   :  { %v1050_v55 = vpop.permute.xlu0 %1049 }
 0x285   :  { %v1071_v41 = vsel %vm1028_vm3, %v1760_v0, %v1050_v55 }
 0x286   :  { %1087 = vst [vmem:[%s2001_s7 + $0x50] sm:$0xff] %v1071_v41 }
 0x288   :  { %v1052_v61 = vpop.permute.xlu1 %1051  ;;  %v1046_v35 = vpop.permute.xlu0 %1045 }
 0x289   :  { %v1072_v28 = vsel %vm1028_vm3, %v1774_v20, %v1052_v61  ;;  %v1069_v63 = vsel %vm1028_vm3, %v1768_v26, %v1046_v35 }
 0x28a   :  { %1088 = vst [vmem:[%s2001_s7 + $0x58] sm:$0xff] %v1072_v28  ;;  %1085 = vst [vmem:[%s2001_s7 + $0x40] sm:$0xff] %v1069_v63 }
 0x28c   :  { %v1048_v0 = vpop.permute.xlu1 %1047 }
 0x28d   :  { %v1070_v32 = vsel %vm1028_vm3, %v1779_v2, %v1048_v0 }
 0x28e   :  { %1086 = vst [vmem:[%s2001_s7 + $0x48] sm:$0xff] %v1070_v32 }
 0x295   :  { %v1054_v20 = vpop.permute.xlu0 %1053 }
 0x296   :  { %v1073_v26 = vsel %vm1028_vm3, %v1821_v14, %v1054_v20 }
 0x297   :  { %1089 = vst [vmem:[%s2001_s7 + $0x60] sm:$0xff] %v1073_v26 }
 0x299   :  { %v1056_v39 = vpop.permute.xlu1 %1055  ;;  %v1058_v38 = vpop.permute.xlu0 %1057 }
 0x29a   :  { %v1074_v29 = vsel %vm1028_vm3, %v1835_v24, %v1056_v39  ;;  %v1075_v2 = vsel %vm1028_vm3, %v1814_v18, %v1058_v38 }
 0x29b   :  { %1090 = vst [vmem:[%s2001_s7 + $0x68] sm:$0xff] %v1074_v29  ;;  %1091 = vst [vmem:[%s2001_s7 + $0x70] sm:$0xff] %v1075_v2 }
 0x29d   :  { %v1060_v14 = vpop.permute.xlu1 %1059 }
 0x29e   :  { %v1076_v54 = vsel %vm1028_vm3, %v1829_v1, %v1060_v14 }
 0x29f   :  { %1092 = vst [vmem:[%s2001_s7 + $0x78] sm:$0xff] %v1076_v54 }

// kernel: detection_model_forward.8
= control target key start
LH: loop header
LB: loop body
LE: loop exit
PB: predicated region body
PF: predicated region fallthrough
CT: control target
= control target key end

     0   :  { %v608_v0 = vmov 0   ;;  %vm127_vm0 = vcmask 130048   ;;  %v361_v58 = vlaneseq  ;;  %s784_s1 = inlined_call_operand.vmem [shape: bf16[144,128], index: 1, kind: input, shape index: {}]   ;;  %s785_s0 = inlined_call_operand.vmem [shape: bf16[32,144], index: 0, kind: input, shape index: {}]   ;;  %s786_s3 = inlined_call_operand.vmem [shape: bf16[128,128], index: 3, kind: input, shape index: {}]   ;;  %s787_s2 = inlined_call_operand.vmem [shape: f32[1,128], index: 2, kind: input, shape index: {}]   ;;  %s788_s6 = inlined_call_operand.vmem [shape: bf16[32,128], index: 6, kind: output, shape index: {0}]   ;;  %s789_s4 = inlined_call_operand.vmem [shape: f32[1,128], index: 4, kind: input, shape index: {}]   ;;  %s790_s5 = inlined_call_operand.vmem [shape: f32[8,128], index: 5, kind: input, shape index: {}]   ;;  %s791_s7 = inlined_call_operand.vmem [shape: f32[32,128], index: 7, kind: output, shape index: {1}]  }
   0x1   :  { %134 = vmatprep.subr.bf16.mxu0 %v608_v0  ;;  %v569_v1 = vld [vmem:[%s784_s1 + $0x38] sm:$0xff]   ;;  %v570_v2 = vld [vmem:[%s784_s1 + $0x30] sm:$0xff]   ;;  %v571_v3 = vld [vmem:[%s784_s1 + $0x28] sm:$0xff]  }
   0x2   :  { %135 = vmatpush1.bf16.msra.mxu0 %v569_v1  ;;  %v572_v4 = vld [vmem:[%s784_s1 + $0x20] sm:$0xff]   ;;  %v573_v6 = vld [vmem:[%s784_s1 + $0x18] sm:$0xff]   ;;  %v574_v7 = vld [vmem:[%s784_s1 + $0x10] sm:$0xff]   ;;  %v739_v62 = vshrl.u32 %v361_v58, 7 }
   0x3   :  { %136 = vmatprep.subr.bf16.mxu0 %v608_v0  ;;  %v580_v5 = vld [vmem:[%s785_s0 + $0x4] ss:$8 sps:$4 sm:$0xff]   ;;  %v578_v11 = vld [vmem:[%s785_s0] ss:$8 sps:$4 sm:$0xff]   ;;  %v581_v12 = vld [vmem:[%s785_s0 + $0x14] ss:$8 sps:$4 sm:$0xff]  }
   0x4   :  { %503 = vmatprep.mubr.msk.bf16.mxu0 %vm127_vm0, %v580_v5  ;;  %v575_v8 = vld [vmem:[%s784_s1 + $0x8] sm:$0xff]   ;;  %v576_v9 = vld [vmem:[%s784_s1] sm:$0xff]   ;;  %v583_v13 = vld [vmem:[%s785_s0 + $0x10] ss:$8 sps:$4 sm:$0xff]  }
   0x5   :  { %v577_v10 = vld [vmem:[%s784_s1 + $0x40] sm:$0xff]   ;;  %v584_v14 = vld [vmem:[%s786_s3 + $0x38] sm:$0xff]   ;;  %v585_v15 = vld [vmem:[%s786_s3 + $0x30] sm:$0xff]  }
   0x6   :  { %137 = vmatpush1.bf16.msra.mxu0 %v570_v2  ;;  %547 = vmatprep.subr.bf16.mxu1 %v584_v14  ;;  %v586_v16 = vld [vmem:[%s786_s3 + $0x28] sm:$0xff]   ;;  %v587_v17 = vld [vmem:[%s786_s3 + $0x20] sm:$0xff]   ;;  %v588_v18 = vld [vmem:[%s786_s3 + $0x18] sm:$0xff]  }
   0x7   :  { %138 = vmatprep.subr.bf16.mxu0 %v608_v0  ;;  %548 = vmatpush3.bf16.msra.mxu1 %v584_v14  ;;  %v589_v19 = vld [vmem:[%s786_s3 + $0x10] sm:$0xff]   ;;  %v590_v20 = vld [vmem:[%s786_s3 + $0x8] sm:$0xff]   ;;  %v591_v21 = vld [vmem:[%s786_s3] sm:$0xff]  }
   0x8   :  { %549 = vmatprep.subr.bf16.mxu1 %v585_v15  ;;  %v489_v22 = vld [vmem:[%s787_s2] ss:$0 sm:$0xff] }
   0x9   :  { %v509_v57 = vld [vmem:[%s789_s4] ss:$0 sm:$0xff] }
   0xa   :  { %139 = vmatpush1.bf16.msra.mxu0 %v571_v3 }
   0xb   :  { %140 = vmatprep.subr.bf16.mxu0 %v608_v0  ;;  %550 = vmatpush3.bf16.msra.mxu1 %v585_v15  ;;  %v363_v15 = vadd.s32 8, %v739_v62 }
   0xc   :  { %551 = vmatprep.subr.bf16.mxu1 %v586_v16 }
   0xe   :  { %141 = vmatpush1.bf16.msra.mxu0 %v572_v4 }
   0xf   :  { %142 = vmatprep.subr.bf16.mxu0 %v608_v0  ;;  %552 = vmatpush3.bf16.msra.mxu1 %v586_v16  ;;  %v379_v16 = vshra.s32 %v739_v62, 2 }
  0x10   :  { %553 = vmatprep.subr.bf16.mxu1 %v587_v17 }
  0x12   :  { %143 = vmatpush1.bf16.msra.mxu0 %v573_v6  ;;  %v364_v6 = vadd.s32 16, %v739_v62 }
  0x13   :  { %144 = vmatprep.subr.bf16.mxu0 %v608_v0  ;;  %554 = vmatpush3.bf16.msra.mxu1 %v587_v17 }
  0x14   :  { %555 = vmatprep.subr.bf16.mxu1 %v588_v18  ;;  %v373_v17 = vand.u32 3, %v364_v6 }
  0x16   :  { %145 = vmatpush1.bf16.msra.mxu0 %v574_v7 }
  0x17   :  { %146 = vmatprep.subr.bf16.mxu0 %v608_v0  ;;  %556 = vmatpush3.bf16.msra.mxu1 %v588_v18 }
  0x18   :  { %557 = vmatprep.subr.bf16.mxu1 %v589_v19 }
  0x1a   :  { %147 = vmatpush1.bf16.msra.mxu0 %v575_v8 }
  0x1b   :  { %148 = vmatprep.subr.bf16.mxu0 %v608_v0  ;;  %558 = vmatpush3.bf16.msra.mxu1 %v589_v19 }
  0x1c   :  { %559 = vmatprep.subr.bf16.mxu1 %v590_v20 }
  0x1e   :  { %149 = vmatpush1.bf16.msra.mxu0 %v576_v9  ;;  %v359_v9 = vld [vmem:[%s790_s5] sm:$0xff]  ;;  %s609_s5 = smov 64  }
  0x1f   :  { %164 = vmatprep.subr.bf16.mxu0 %v608_v0  ;;  %560 = vmatpush3.bf16.msra.mxu1 %v590_v20  ;;  %vm391_vm1 = vcmp.gt.f32.partialorder %v359_v9, 0.5 }
  0x20   :  { %561 = vmatprep.subr.bf16.mxu1 %v591_v21  ;;  %v392_v14 = vsel %vm391_vm1, 1, %v608_v0  ;;  %v446_v0 = vsub.f32 1.0, %v359_v9 }
  0x22   :  { %165 = vmatpush2.bf16.msra.mxu0 %v577_v10 }
  0x23   :  { %562 = vmatpush3.bf16.msra.mxu1 %v591_v21  ;;  %v427_v21 = vrot.slane %v359_v9, 2 }
  0x25   :  { %167 = vmatmul.mubr.bf16.vlgmr.msra.gmra.mxu0 %v578_v11  ;;  %v381_v11 = vshra.s32 %v364_v6, 2 }
  0x26   :  { %504 = vmatprep.mubr.msk.bf16.mxu0 %vm127_vm0, %v581_v12  ;;  %v365_v12 = vadd.s32 24, %v739_v62 }
  0x27   :  { %v385_v18 = vand.u32 3, %v381_v11 }
  0x28   :  { %v382_v19 = vshra.s32 %v365_v12, 2 }
  0x2d   :  { %175 = vmatmul.mubr.bf16.gmra.mxu0 %v583_v13  ;;  %v395_v13 = vsub.s32 2, %v739_v62 }
  0x2f   :  { %v396_v20 = vrot.slane %v392_v14, %v395_v13 }
  0x31   :  { %vm397_vm2 = vcmp.eq.s32.totalorder %v396_v20, 1 }
  0xe5   :  { %v168_v23 = vpop.f32.mrf.mxu0 }
  0xe6   :  { %v169_v24 = vadd.f32 %v489_v22, %v168_v23  ;;  %v371_v23 = vand.u32 3, %v739_v62 }
  0xe7   :  { %v170_v25 = vpop.f32.mrf.mxu0 }
  0xe8   :  { %v183_v26 = vmul.f32 0.5, %v169_v24 }
  0xe9   :  { %v171_v27 = vpop.f32.mrf.mxu0 }
  0xea   :  { %592 = vtanh.f32 %v183_v26  ;;  %v172_v28 = vadd.f32 %v489_v22, %v171_v27  ;;  %v377_v26 = vcvt.s32.f32 %v373_v17  ;;  %v389_v27 = vcvt.s32.f32 %v385_v18 }
  0xeb   :  { %v173_v29 = vpop.f32.mrf.mxu0 }
  0xec   :  { %v184_v30 = vmul.f32 0.5, %v172_v28  ;;  %v386_v29 = vand.u32 3, %v382_v19 }
  0xed   :  { %v176_v31 = vpop.f32.mrf.mxu0 }
  0xee   :  { %594 = vtanh.f32 %v184_v30  ;;  %v177_v32 = vadd.f32 %v489_v22, %v176_v31 }
  0xef   :  { %v178_v33 = vpop.f32.mrf.mxu0 }
  0xf0   :  { %v185_v34 = vmul.f32 0.5, %v177_v32  ;;  %v447_v33 = vrot.slane %v359_v9, 1 }
  0xf1   :  { %v179_v35 = vpop.f32.mrf.mxu0 }
  0xf2   :  { %596 = vtanh.f32 %v185_v34  ;;  %v180_v36 = vadd.f32 %v489_v22, %v179_v35  ;;  %v380_v22 = vshra.s32 %v363_v15, 2  ;;  %v372_v34 = vand.u32 3, %v363_v15 }
  0xf3   :  { %v181_v37 = vpop.f32.mrf.mxu0 }
  0xf4   :  { %v186_v38 = vmul.f32 0.5, %v180_v36  ;;  %v384_v35 = vand.u32 3, %v380_v22 }
  0xf6   :  { %598 = vtanh.f32 %v186_v38  ;;  %v375_v38 = vcvt.s32.f32 %v371_v23 }
  0xf7   :  { %v593_v39 = vpop.eup %592 }
  0xf8   :  { %v191_v40 = vadd.f32 1.0, %v593_v39 }
  0xfa   :  { %v195_v42 = vmul.f32 0.5, %v191_v40 }
  0xfb   :  { %v595_v41 = vpop.eup %594 }
  0xfc   :  { %v192_v43 = vadd.f32 1.0, %v595_v41  ;;  %v199_v46 = vmul.f32 %v195_v42, %v169_v24  ;;  %v383_v24 = vand.u32 3, %v379_v16  ;;  %v400_v41 = vsel %vm397_vm2, %v377_v26, %v389_v27 }
  0xfd   :  { %v436_v42 = vsub.s32 1, %v739_v62 }
  0xfe   :  { %v196_v44 = vmul.f32 0.5, %v192_v43  ;;  %v387_v39 = vcvt.s32.f32 %v383_v24 }
  0xff   :  { %v597_v45 = vpop.eup %596 }
 0x100   :  { %v200_v47 = vmul.f32 %v196_v44, %v172_v28  ;;  %v193_v48 = vadd.f32 1.0, %v597_v45  ;;  %v374_v28 = vand.u32 3, %v365_v12  ;;  %v390_v44 = vcvt.s32.f32 %v386_v29 }
 0x102   :  { %v203_v49 = vpack.c.bf16 %v200_v47, %v199_v46  ;;  %v197_v51 = vmul.f32 0.5, %v193_v48  ;;  %v378_v43 = vcvt.s32.f32 %v374_v28 }
 0x103   :  { %v599_v50 = vpop.eup %598 }
 0x104   :  { %v194_v52 = vadd.f32 1.0, %v599_v50  ;;  %530 = vst [vmem:[%s788_s6] sm:$0xff] %v203_v49   ;;  %563 = vmatprep.mubr.bf16.mxu1 %v203_v49  ;;  %v201_v54 = vmul.f32 %v197_v51, %v177_v32  ;;  %v429_v32 = vmul.f32 %v427_v21, %v359_v9  ;;  %v420_v49 = vsub.s32 0, %v739_v62 }
 0x105   :  { %v449_v50 = vsub.f32 %v446_v0, %v447_v33  ;;  %v376_v51 = vcvt.s32.f32 %v372_v34 }
 0x106   :  { %v198_v53 = vmul.f32 0.5, %v194_v52  ;;  %v388_v52 = vcvt.s32.f32 %v384_v35  ;;  %v421_v6 = vrot.slane %v359_v9, %v420_v49 }
 0x108   :  { %v202_v55 = vmul.f32 %v198_v53, %v180_v36  ;;  %v399_v62 = vsel %vm397_vm2, %v376_v51, %v388_v52 }
 0x10a   :  { %v204_v56 = vpack.c.bf16 %v202_v55, %v201_v54 }
 0x10c   :  { %536 = vst [vmem:[%s788_s6 + $0x8] sm:$0xff] %v204_v56   ;;  %564 = vmatmul.mubr.bf16.vlgmr.msra.gmra.mxu1 %v204_v56  ;;  %v398_v56 = vsel %vm397_vm2, %v375_v38, %v387_v39 }
 0x1cc   :  { %v565_v59 = vpop.f32.mrf.mxu1 }
 0x1cd   :  { %v736_v60 = vadd.f32 %v565_v59, %v509_v57  ;;  %v437_v59 = vrot.slane %v429_v32, %v436_v42  ;;  %v463_v42 = vand.u32 127, %v361_v58 }
 0x1ce   :  { %v328_v61 = vpop.f32.mrf.mxu1 }
 0x1cf   :  { %v345_v63 = vmul.f32 0.5, %v736_v60  ;;  %v742_v1 = vadd.f32 %v509_v57, %v328_v61  ;;  %vm464_vm3 = vcmp.lt.s32.totalorder %v463_v42, 64 }
 0x1d0   :  { %v566_v2 = vpop.f32.mrf.mxu1 }
 0x1d1   :  { %600 = vtanh.f32 %v345_v63  ;;  %v343_v3 = vmul.f32 0.5, %v742_v1  ;;  %v745_v4 = vadd.f32 %v566_v2, %v509_v57  ;;  %v401_v63 = vsel %vm397_vm2, %v378_v43, %v390_v44 }
 0x1d2   :  { %v331_v5 = vpop.f32.mrf.mxu1 }
 0x1d3   :  { %602 = vtanh.f32 %v343_v3  ;;  %v346_v7 = vmul.f32 0.5, %v745_v4  ;;  %v749_v8 = vadd.f32 %v509_v57, %v331_v5 }
 0x1d5   :  { %604 = vtanh.f32 %v346_v7  ;;  %v344_v10 = vmul.f32 0.5, %v749_v8  ;;  %v453_v7 = vrot.slane %v449_v50, %v420_v49 }
 0x1d7   :  { %606 = vtanh.f32 %v344_v10 }
 0x1de   :  { %v601_v25 = vpop.eup %600 }
 0x1df   :  { %v353_v30 = vadd.f32 1.0, %v601_v25 }
 0x1e0   :  { %v603_v31 = vpop.eup %602 }
 0x1e1   :  { %v357_v36 = vmul.f32 0.5, %v353_v30  ;;  %v351_v37 = vadd.f32 1.0, %v603_v31 }
 0x1e2   :  { %v605_v40 = vpop.eup %604 }
 0x1e3   :  { %v355_v45 = vmul.f32 0.5, %v351_v37  ;;  %v354_v46 = vadd.f32 1.0, %v605_v40  ;;  %v404_v47 = vmul.f32 2.0, %v357_v36  ;;  %v432_v57 = vmul.f32 %v357_v36, %v357_v36 }
 0x1e4   :  { %v607_v48 = vpop.eup %606  ;;  %v456_v22 = vmul.f32 %v453_v7, %v357_v36 }
 0x1e5   :  { %v358_v53 = vmul.f32 0.5, %v354_v46  ;;  %v352_v54 = vadd.f32 1.0, %v607_v48  ;;  %v408_v55 = vadd.f32 %v404_v47, %v400_v41  ;;  %v402_v61 = vmul.f32 2.0, %v355_v45 }
 0x1e6   :  { %v440_v14 = vmul.f32 %v437_v59, %v432_v57  ;;  %v430_v16 = vmul.f32 %v355_v45, %v355_v45  ;;  %v454_v32 = vmul.f32 %v453_v7, %v355_v45 }
 0x1e7   :  { %v405_v2 = vmul.f32 2.0, %v358_v53  ;;  %v356_v3 = vmul.f32 0.5, %v352_v54  ;;  %v520_v5 = vadd.f32 -0.5, %v408_v55  ;;  %v406_v10 = vadd.f32 %v402_v61, %v398_v56 }
 0x1e8   :  { %v433_v19 = vmul.f32 %v358_v53, %v358_v53  ;;  %v438_v28 = vmul.f32 %v437_v59, %v430_v16  ;;  %v457_v34 = vmul.f32 %v453_v7, %v358_v53 }
 0x1e9   :  { %v403_v11 = vmul.f32 2.0, %v356_v3  ;;  %v416_v12 = vmul.f32 16.0, %v520_v5  ;;  %v409_v13 = vadd.f32 %v405_v2, %v401_v63  ;;  %v518_v15 = vadd.f32 -0.5, %v406_v10 }
 0x1ea   :  { %v431_v9 = vmul.f32 %v356_v3, %v356_v3  ;;  %v441_v30 = vmul.f32 %v437_v59, %v433_v19  ;;  %v455_v40 = vmul.f32 %v453_v7, %v356_v3 }
 0x1eb   :  { %v424_v17 = vmul.f32 %v421_v6, %v416_v12  ;;  %v521_v18 = vadd.f32 -0.5, %v409_v13  ;;  %v407_v21 = vadd.f32 %v403_v11, %v399_v62  ;;  %v414_v23 = vmul.f32 16.0, %v518_v15 }
 0x1ec   :  { %v439_v37 = vmul.f32 %v437_v59, %v431_v9 }
 0x1ed   :  { %v444_v24 = vadd.f32 %v440_v14, %v424_v17  ;;  %v417_v25 = vmul.f32 16.0, %v521_v18  ;;  %v519_v26 = vadd.f32 -0.5, %v407_v21  ;;  %v422_v27 = vmul.f32 %v421_v6, %v414_v23 }
 0x1ef   :  { %v460_v20 = vadd.f32 %v456_v22, %v444_v24  ;;  %v425_v29 = vmul.f32 %v421_v6, %v417_v25  ;;  %v415_v0 = vmul.f32 16.0, %v519_v26  ;;  %v442_v31 = vadd.f32 %v438_v28, %v422_v27 }
 0x1f1   :  { %469 = vrot.lane.b32.xlu1 %v460_v20, %s609_s5  ;;  %v445_v33 = vadd.f32 %v441_v30, %v425_v29  ;;  %v423_v35 = vmul.f32 %v421_v6, %v415_v0  ;;  %v458_v36 = vadd.f32 %v454_v32, %v442_v31 }
 0x1f3   :  { %v461_v38 = vadd.f32 %v457_v34, %v445_v33  ;;  %v443_v39 = vadd.f32 %v439_v37, %v423_v35  ;;  %465 = vrot.lane.b32.xlu0 %v458_v36, %s609_s5 }
 0x1f5   :  { %471 = vrot.lane.b32.xlu1 %v461_v38, %s609_s5  ;;  %v459_v41 = vadd.f32 %v455_v40, %v443_v39 }
 0x1f7   :  { %467 = vrot.lane.b32.xlu0 %v459_v41, %s609_s5 }
 0x263   :  { %v470_v43 = vpop.permute.xlu1 %469 }
 0x264   :  { %v475_v44 = vsel %vm464_vm3, %v736_v60, %v470_v43 }
 0x265   :  { %479 = vst [vmem:[%s791_s7 + $0x10] sm:$0xff] %v475_v44  ;;  %v466_v45 = vpop.permute.xlu0 %465 }
 0x266   :  { %v473_v46 = vsel %vm464_vm3, %v742_v1, %v466_v45 }
 0x267   :  { %v472_v47 = vpop.permute.xlu1 %471  ;;  %477 = vst [vmem:[%s791_s7] sm:$0xff] %v473_v46 }
 0x268   :  { %v476_v48 = vsel %vm464_vm3, %v745_v4, %v472_v47 }
 0x269   :  { %480 = vst [vmem:[%s791_s7 + $0x18] sm:$0xff] %v476_v48  ;;  %v468_v58 = vpop.permute.xlu0 %467 }
 0x26a   :  { %v474_v60 = vsel %vm464_vm3, %v749_v8, %v468_v58 }
 0x26b   :  { %478 = vst [vmem:[%s791_s7 + $0x8] sm:$0xff] %v474_v60 }

// kernel: detection_model_forward.9
= control target key start
LH: loop header
LB: loop body
LE: loop exit
PB: predicated region body
PF: predicated region fallthrough
CT: control target
= control target key end

     0   :  { %v625_v2 = vmov 0.0   ;;  %vm626_vm0 = vmmov 0   ;;  %vm190_vm1 = vcmask 261120   ;;  %s783_s0 = inlined_call_operand.vmem [shape: bf16[8,288], index: 0, kind: input, shape index: {}]   ;;  %s784_s1 = inlined_call_operand.vmem [shape: bf16[288,128], index: 1, kind: input, shape index: {}]   ;;  %s785_s2 = inlined_call_operand.vmem [shape: f32[1,128], index: 2, kind: input, shape index: {}]   ;;  %s786_s3 = inlined_call_operand.vmem [shape: bf16[128,128], index: 3, kind: input, shape index: {}]   ;;  %s787_s4 = inlined_call_operand.vmem [shape: f32[1,128], index: 4, kind: input, shape index: {}]   ;;  %s788_s5 = inlined_call_operand.vmem [shape: f32[8,128], index: 5, kind: input, shape index: {}]   ;;  %s789_s6 = inlined_call_operand.hbm [shape: bf16[8,128], index: 6, kind: output, shape index: {0}]   ;;  %s790_s7 = inlined_call_operand.vmem [shape: f32[8,128], index: 7, kind: output, shape index: {1}]  }
   0x1   :  { %v570_v0 = vld [vmem:[%s784_s1 + $0x78] sm:$0xff]   ;;  %537 = vmatprep.subr.bf16.mxu1 %v625_v2  ;;  %v572_v3 = vld [vmem:[%s784_s1 + $0x70] sm:$0xff]   ;;  %541 = vmatprep.mubr.msk.bf16.mxu1 %vm626_vm0, %v625_v2  ;;  %v574_v5 = vld [vmem:[%s784_s1 + $0x68] sm:$0xff]  }
   0x2   :  { %v571_v1 = vld [vmem:[%s784_s1 + $0x38] sm:$0xff]   ;;  %503 = vmatprep.subr.bf16.mxu0 %v570_v0  ;;  %v573_v4 = vld [vmem:[%s784_s1 + $0x30] sm:$0xff]   ;;  %v575_v6 = vld [vmem:[%s784_s1 + $0x28] sm:$0xff]  }
   0x3   :  { %504 = vmatpush3.bf16.msra.mxu0 %v571_v1  ;;  %v576_v7 = vld [vmem:[%s784_s1 + $0x60] sm:$0xff]   ;;  %v578_v9 = vld [vmem:[%s784_s1 + $0x58] sm:$0xff]   ;;  %v584_v10 = vld [vmem:[%s784_s1 + $0x88] sm:$0xff]  }
   0x4   :  { %505 = vmatprep.subr.bf16.mxu0 %v572_v3  ;;  %v577_v8 = vld [vmem:[%s784_s1 + $0x20] sm:$0xff]   ;;  %v579_v11 = vld [vmem:[%s784_s1 + $0x18] sm:$0xff]   ;;  %v580_v12 = vld [vmem:[%s784_s1 + $0x50] sm:$0xff]   ;;  %538 = vmatpush3.bf16.msra.mxu1 %v584_v10 }
   0x5   :  { %v581_v13 = vld [vmem:[%s784_s1 + $0x10] sm:$0xff]   ;;  %539 = vmatprep.subr.bf16.mxu1 %v625_v2  ;;  %v587_v14 = vld [vmem:[%s784_s1 + $0x80] sm:$0xff]   ;;  %v582_v15 = vld [vmem:[%s784_s1 + $0x48] sm:$0xff]  }
   0x6   :  { %v27_v16 = vld [vmem:[%s783_s0] sm:$0xff]  ;;  %v590_v17 = vld [vmem:[%s783_s0 + $0x8] ss:$0 sps:$4 sm:$0xff]  }
   0x7   :  { %506 = vmatpush3.bf16.msra.mxu0 %v573_v4  ;;  %v472_v18 = vcombine.high %v27_v16, %v27_v16  ;;  %v583_v19 = vld [vmem:[%s784_s1 + $0x8] sm:$0xff]   ;;  %v585_v20 = vld [vmem:[%s784_s1 + $0x40] sm:$0xff]  }
   0x8   :  { %507 = vmatprep.subr.bf16.mxu0 %v574_v5  ;;  %540 = vmatpush3.bf16.msra.mxu1 %v587_v14 }
   0x9   :  { %226 = vmatprep.mubr.bf16.mxu0 %v472_v18  ;;  %545 = vmatprep.subr.bf16.mxu1 %v625_v2 }
   0xb   :  { %508 = vmatpush3.bf16.msra.mxu0 %v575_v6  ;;  %542 = vmatmul.mubr.msk.bf16.vlgmr.msra.gmra.mxu1 %vm190_vm1, %v590_v17 }
   0xc   :  { %509 = vmatprep.subr.bf16.mxu0 %v576_v7  ;;  %561 = vmatprep.mubr.msk.bf16.mxu1 %vm626_vm0, %v625_v2 }
   0xf   :  { %510 = vmatpush3.bf16.msra.mxu0 %v577_v8 }
  0x10   :  { %511 = vmatprep.subr.bf16.mxu0 %v578_v9 }
  0x13   :  { %512 = vmatpush3.bf16.msra.mxu0 %v579_v11 }
  0x14   :  { %513 = vmatprep.subr.bf16.mxu0 %v580_v12 }
  0x17   :  { %514 = vmatpush3.bf16.msra.mxu0 %v581_v13 }
  0x18   :  { %515 = vmatprep.subr.bf16.mxu0 %v582_v15 }
  0x19   :  { %13 = vsyncpa [#allocation3], 0  ;;  %v586_v21 = vld [vmem:[%s784_s1] sm:$0xff]   ;;  %v471_v22 = vcombine.low %v27_v16, %v27_v16  ;;  %v591_v23 = vld [vmem:[%s786_s3 + $0x38] sm:$0xff]   ;;  %v398_v53 = vlaneseq  ;;  %v627_v61 = vmov 0  }
  0x1a   :  { %546 = vmatpush3.bf16.msra.mxu1 %v591_v23  ;;  %v592_v24 = vld [vmem:[%s786_s3 + $0x30] sm:$0xff]   ;;  %v593_v25 = vld [vmem:[%s786_s3 + $0x28] sm:$0xff]   ;;  %v594_v26 = vld [vmem:[%s786_s3 + $0x20] sm:$0xff]  }
  0x1b   :  { %516 = vmatpush3.bf16.msra.mxu0 %v583_v19  ;;  %547 = vmatprep.subr.bf16.mxu1 %v625_v2  ;;  %v595_v27 = vld [vmem:[%s786_s3 + $0x18] sm:$0xff]   ;;  %v596_v28 = vld [vmem:[%s786_s3 + $0x10] sm:$0xff]   ;;  %v597_v29 = vld [vmem:[%s786_s3 + $0x8] sm:$0xff]   ;;  %v399_v57 = vshrl.u32 %v398_v53, 7 }
  0x1c   :  { %517 = vmatprep.subr.bf16.mxu0 %v585_v20  ;;  %v598_v30 = vld [vmem:[%s786_s3] sm:$0xff]  }
  0x1d   :  { %v470_v36 = vld [vmem:[%s785_s2] ss:$0 sm:$0xff]  ;;  %v404_v59 = vshra.s32 %v399_v57, 1  ;;  %v411_v60 = vsub.s32 2, %v399_v57  ;;  %v402_v63 = vand.u32 1, %v399_v57  ;;  %v431_v13 = vsub.s32 1, %v399_v57 }
  0x1e   :  { %548 = vmatpush3.bf16.msra.mxu1 %v592_v24  ;;  %v493_v49 = vld [vmem:[%s787_s4] ss:$0 sm:$0xff]  ;;  %s628_s4 = smov [#allocation2]   ;;  %v421_v15 = vsub.s32 0, %v399_v57 }
  0x1f   :  { %518 = vmatpush3.bf16.msra.mxu0 %v586_v21  ;;  %549 = vmatprep.subr.bf16.mxu1 %v625_v2  ;;  %v396_v58 = vld [vmem:[%s788_s5] sm:$0xff]  ;;  %v405_v0 = vand.u32 1, %v404_v59  ;;  %v403_v3 = vcvt.s32.f32 %v402_v63  ;;  %s458_s5 = sshll.u32 %s628_s4, 4  ;;  %s459_s5 = int_to_ptr.vmem [resolvable:$true] %s458_s5 }
  0x20   :  { %vm407_vm2 = vcmp.gt.f32.partialorder %v396_v58, 0.5  ;;  %v425_v6 = vrot.slane %v396_v58, 2  ;;  %v435_v8 = vsub.f32 1.0, %v396_v58  ;;  %v436_v9 = vrot.slane %v396_v58, 1  ;;  %s603_s13 = scalar_lea.vmem %s459_s5, 64  ;;  %p608_p1 = scmp.lt.s32.totalorder %s459_s5, %s459_s5 }
  0x21   :  { %v408_v62 = vsel %vm407_vm2, 1, %v627_v61  ;;  %v406_v4 = vcvt.s32.f32 %v405_v0  ;;  %p604_p0 = scmp.ne.s32.totalorder %s459_s5, %s603_s13  ;;  %p609_p2 = scmp.lt.s32.totalorder %s603_s13, %s603_s13 }
  0x22   :  { %227 = vmatmul.mubr.bf16.vlgmr.msra.gmra.mxu0 %v471_v22  ;;  %550 = vmatpush3.bf16.msra.mxu1 %v593_v25  ;;  %v412_v1 = vrot.slane %v408_v62, %v411_v60  ;;  %v427_v12 = vmul.f32 %v425_v6, %v396_v58  ;;  %v438_v16 = vsub.f32 %v435_v8, %v436_v9 }
  0x23   :  { %551 = vmatprep.subr.bf16.mxu1 %v625_v2  ;;  %p610_p3 = por %p609_p2, %p608_p1 }
  0x24   :  { %vm413_vm3 = vcmp.eq.s32.totalorder %v412_v1, 1 }
  0x25   :  { %v414_v10 = vsel %vm413_vm3, %v403_v3, %v406_v4  ;;  %p611_p4 = pnand %p610_p3, %p604_p0 }
  0x26   :  { %552 = vmatpush3.bf16.msra.mxu1 %v594_v26 }
  0x27   :  { %553 = vmatprep.subr.bf16.mxu1 %v625_v2 }
  0x2a   :  { %554 = vmatpush3.bf16.msra.mxu1 %v595_v27 }
  0x2b   :  { %555 = vmatprep.subr.bf16.mxu1 %v625_v2 }
  0x2e   :  { %556 = vmatpush3.bf16.msra.mxu1 %v596_v28 }
  0x2f   :  { %557 = vmatprep.subr.bf16.mxu1 %v625_v2 }
  0x32   :  { %558 = vmatpush3.bf16.msra.mxu1 %v597_v29 }
  0x33   :  { %559 = vmatprep.subr.bf16.mxu1 %v625_v2 }
  0x36   :  { %560 = vmatpush3.bf16.msra.mxu1 %v598_v30 }
  0xcb   :  { %v268_v31 = vpop.f32.mrf.mxu1 }
  0xcd   :  { %v543_v32 = vpop.f32.mrf.mxu1 }
  0xcf   :  { %v271_v33 = vpop.f32.mrf.mxu1 }
  0xd1   :  { %v544_v34 = vpop.f32.mrf.mxu1 }
  0xe2   :  { %v519_v35 = vpop.f32.mrf.mxu0 }
  0xe4   :  { %v520_v37 = vpop.f32.mrf.mxu0 }
  0xe5   :  { %v521_v38 = vadd.f32 %v520_v37, %v519_v35 }
  0xe6   :  { %v522_v39 = vpop.f32.mrf.mxu0 }
  0xe7   :  { %v229_v40 = vadd.f32 %v521_v38, %v470_v36 }
  0xe8   :  { %v523_v41 = vpop.f32.mrf.mxu0 }
  0xe9   :  { %v269_v42 = vadd.f32 %v268_v31, %v229_v40 }
  0xeb   :  { %v274_v43 = vmul.f32 0.5, %v269_v42 }
  0xed   :  { %599 = vtanh.f32 %v274_v43 }
  0xfa   :  { %v600_v44 = vpop.eup %599 }
  0xfb   :  { %v276_v45 = vadd.f32 1.0, %v600_v44 }
  0xfd   :  { %v277_v46 = vmul.f32 0.5, %v276_v45 }
  0xff   :  { %v278_v47 = vmul.f32 %v277_v46, %v269_v42 }
 0x101   :  { %v279_v48 = vpack.c.bf16 %v278_v47, %v278_v47 }
 0x103   :  { %280 = vst [vmem:[#allocation2] sm:$0xf] %v279_v48  ;;  %562 = vmatmul.mubr.bf16.vlgmr.msra.gmra.mxu1 %v279_v48 }
 0x1c3   :  { %v386_v50 = vpop.f32.mrf.mxu1 }
 0x1c4   :  { %v387_v51 = vadd.f32 %v493_v49, %v386_v50 }
 0x1c5   :  { %v563_v52 = vpop.f32.mrf.mxu1 }
 0x1c6   :  { %v392_v54 = vmul.f32 0.5, %v387_v51 }
 0x1c7   :  { %v389_v55 = vpop.f32.mrf.mxu1 }
 0x1c8   :  { %601 = vtanh.f32 %v392_v54 }
 0x1c9   :  { %v564_v56 = vpop.f32.mrf.mxu1 }
 0x1d5   :  { %v602_v2 = vpop.eup %601 }
 0x1d6   :  { %v394_v5 = vadd.f32 1.0, %v602_v2 }
 0x1d8   :  { %v395_v7 = vmul.f32 0.5, %v394_v5 }
 0x1da   :  { %v415_v11 = vmul.f32 2.0, %v395_v7 }
 0x1dc   :  { %v416_v14 = vadd.f32 %v415_v11, %v414_v10 }
 0x1dd   :  { %614 = shalt.err (!%p611_p4)
}
 0x1de   :  { %461 = dma.vmem_to_hbm [thread:$0]  %s459_s5, 64, %s789_s6, [#allocation3]   ;;  %v502_v17 = vadd.f32 -0.5, %v416_v14  ;;  %v422_v18 = vrot.slane %v396_v58, %v421_v15  ;;  %v428_v19 = vmul.f32 %v395_v7, %v395_v7  ;;  %v432_v20 = vrot.slane %v427_v12, %v431_v13 }
 0x1df   :  { %v442_v22 = vrot.slane %v438_v16, %v421_v15  ;;  %s629_s0 = smov 64   ;;  %v446_v28 = vand.u32 127, %v398_v53 }
 0x1e0   :  { %v418_v21 = vmul.f32 32.0, %v502_v17  ;;  %v433_v24 = vmul.f32 %v432_v20, %v428_v19 }
 0x1e1   :  { %v443_v26 = vmul.f32 %v442_v22, %v395_v7  ;;  %vm447_vm4 = vcmp.lt.s32.totalorder %v446_v28, 64 }
 0x1e2   :  { %v423_v23 = vmul.f32 %v422_v18, %v418_v21 }
 0x1e4   :  { %v434_v25 = vadd.f32 %v433_v24, %v423_v23 }
 0x1e6   :  { %v444_v27 = vadd.f32 %v443_v26, %v434_v25 }
 0x1e8   :  { %448 = vrot.lane.b32.xlu0 %v444_v27, %s629_s0 }
 0x25a   :  { %v449_v29 = vpop.permute.xlu0 %448 }
 0x25b   :  { %v450_v30 = vsel %vm447_vm4, %v387_v51, %v449_v29 }
 0x25c   :  { %451 = vst [vmem:[%s790_s7] sm:$0xff] %v450_v30 }
 0x25d   :  { %623 = dma.done.wait [#allocation3], 64  }
 0x25e   :  { %624 = vsyncadd [#allocation3], 4294967232 }
 0x25f   :  { %469 = vsyncpa [#allocation3], 1 }

</bundles_post_ra>
